<compile_context>
chip_gen: v5e
topology: v5e:2x2
jax: 0.10.0
libtpu: 0.0.40
codegen_flags: <defaults>
</compile_context>

<pallas_src>
import functools

import jax
import jax.numpy as jnp
from jax import lax
from jax.experimental import pallas as pl
from jax.experimental.pallas import tpu as pltpu


# ---------------------------------------------------------------------------
# Fused conv(5x5, stride 1, pad 2) + bias + ReLU + 2x2 max-pool.
#
# The wrapper lays every image out as a "kh-grouped column" panel of
# (R_img, Kg) = (n_rows * XE, Kg) rows:
#   * conv1 (Cin=1):  full 25-tap im2col  -> n_kh = 1, Kg = 25, XE = 32
#   * conv2 (Cin=16): kw-only expansion   -> n_kh = 5, Kg = 80, XE = 16
# so each kh group is ONE contiguous, sublane-aligned (h_chunk*XE, Kg) slice and
# the conv is n_kh MXU matmuls per image.  Columns x in [W, XE) of every row are
# out-of-range conv positions (harmless values); the pool epilogue never reads
# them (slab length is W, horizontal stride-2 reads stay < W).
# ---------------------------------------------------------------------------

def _conv_gemm_pool_kernel(x_ref, w_ref, b_ref, o_ref, y_scr, v_scr, p_scr, *,
                           n_img, R_img, n_kh, XE, H, W, h_chunk):
    """One grid step = n_img images.

    x_ref : (n_img*R_img, Kg)   bf16 column panels (row = y*XE + x within image)
    w_ref : (n_kh, Kg, Cout)    bf16 kh-grouped weights
    b_ref : (1, Cout)           f32 bias
    o_ref : (n_img, Ho, Wo, Cout)  pooled output (bf16)
    y_scr : (H*XE, Cout) f32    pre-pool activations of the current image
    v_scr : (W, Cout)   f32     vertical-max row buffer
    p_scr : (Ho, Wo, Cout)      pooled image buffer (out dtype)
    """
    Ho, Wo = H // 2, W // 2
    Mc = h_chunk * XE

    def per_image(b, carry):
        base = pl.multiple_of(b * R_img, 8)

        # ---- conv as n_kh matmuls with K = Kg, h_chunk output rows at a time
        for y0 in range(0, H, h_chunk):
            acc = jnp.dot(x_ref[pl.ds(base + y0 * XE, Mc), :], w_ref[0],
                          preferred_element_type=jnp.float32)
            for kh in range(1, n_kh):
                acc = acc + jnp.dot(
                    x_ref[pl.ds(base + (y0 + kh) * XE, Mc), :], w_ref[kh],
                    preferred_element_type=jnp.float32)
            # bias + ReLU fused, stored to the pre-pool scratch
            y_scr[pl.ds(y0 * XE, Mc), :] = jnp.maximum(acc + b_ref[...], 0.0)

        # ---- fused 2x2 max pool: vertical max on contiguous slabs first,
        # then one stride-2 pair for the horizontal max.
        for yo in range(Ho):
            v_scr[...] = jnp.maximum(y_scr[pl.ds((2 * yo) * XE, W), :],
                                     y_scr[pl.ds((2 * yo + 1) * XE, W), :])
            p = jnp.maximum(v_scr[pl.ds(0, Wo, stride=2), :],
                            v_scr[pl.ds(1, Wo, stride=2), :])
            p_scr[yo] = p.astype(p_scr.dtype)
        o_ref[b] = p_scr[...]                       # one store per image
        return carry

    lax.fori_loop(0, n_img, per_image, 0)


def conv_gemm_pool(x_cols, w_groups, bias, *, b_tile, R_img, n_kh, XE, H, W,
                   h_chunk, out_dtype=jnp.bfloat16):
    Mtot, Kg = x_cols.shape
    assert Mtot % R_img == 0
    Bp = Mtot // R_img
    assert Bp % b_tile == 0
    n_kh_w, Kg_w, Cout = w_groups.shape
    assert (n_kh_w, Kg_w) == (n_kh, Kg)
    # invariants the pool epilogue relies on (garbage columns never read):
    assert XE % 8 == 0 and R_img % 8 == 0 and W <= XE
    assert H % 2 == 0 and W % 2 == 0 and H % h_chunk == 0
    assert (H + n_kh - 1) * XE <= R_img            # kh slices stay inside the image
    Ho, Wo = H // 2, W // 2

    kernel = functools.partial(_conv_gemm_pool_kernel, n_img=b_tile,
                               R_img=R_img, n_kh=n_kh, XE=XE, H=H, W=W,
                               h_chunk=h_chunk)
    return pl.pallas_call(
        kernel,
        out_shape=jax.ShapeDtypeStruct((Bp, Ho, Wo, Cout), out_dtype),
        grid=(Bp // b_tile,),
        in_specs=[
            pl.BlockSpec((b_tile * R_img, Kg), lambda i: (i, 0)),
            pl.BlockSpec((n_kh, Kg, Cout), lambda i: (0, 0, 0)),
            pl.BlockSpec((1, Cout), lambda i: (0, 0)),
        ],
        out_specs=pl.BlockSpec((b_tile, Ho, Wo, Cout), lambda i: (i, 0, 0, 0)),
        scratch_shapes=[pltpu.VMEM((H * XE, Cout), jnp.float32),
                        pltpu.VMEM((W, Cout), jnp.float32),
                        pltpu.VMEM((Ho, Wo, Cout), out_dtype)],
        compiler_params=pltpu.CompilerParams(
            dimension_semantics=("parallel",)),
    )(x_cols, w_groups, bias)


# ---------------- linear head: tiled GEMM + bias (N padded to 128) -----------

def _linear_kernel(x_ref, w_ref, b_ref, o_ref):
    o_ref[...] = (jnp.dot(x_ref[...], w_ref[...],
                          preferred_element_type=jnp.float32) + b_ref[...])


def linear(x, w, b, *, tm):
    Bp, Kdim = x.shape
    N = w.shape[1]
    return pl.pallas_call(
        _linear_kernel,
        out_shape=jax.ShapeDtypeStruct((Bp, N), jnp.float32),
        grid=(pl.cdiv(Bp, tm),),
        in_specs=[pl.BlockSpec((tm, Kdim), lambda i: (i, 0)),
                  pl.BlockSpec((Kdim, N), lambda i: (0, 0)),
                  pl.BlockSpec((1, N), lambda i: (0, 0))],
        out_specs=pl.BlockSpec((tm, N), lambda i: (i, 0)),
        compiler_params=pltpu.CompilerParams(
            dimension_semantics=("parallel",)),
    )(x, w, b)


# ---------------- parameters & glue ----------------

def init_params(key):
    ks = jax.random.split(key, 6)
    return dict(
        conv1_w=0.1 * jax.random.normal(ks[0], (16, 1, 5, 5), jnp.float32),    # OIHW
        conv1_b=0.1 * jax.random.normal(ks[1], (16,), jnp.float32),
        conv2_w=0.05 * jax.random.normal(ks[2], (32, 16, 5, 5), jnp.float32),  # OIHW
        conv2_b=0.1 * jax.random.normal(ks[3], (32,), jnp.float32),
        lin_w=0.02 * jax.random.normal(ks[4], (10, 32 * 7 * 7), jnp.float32),  # (out, in)
        lin_b=0.1 * jax.random.normal(ks[5], (10,), jnp.float32),
    )


def prepare_params(params):
    """One-time weight layout prep (hoisted out of the forward pass)."""
    # conv1: OIHW (16,1,5,5) -> (1, 25, 16): one full-tap group, tap = kh*5 + kw.
    w1 = jnp.transpose(params["conv1_w"], (2, 3, 1, 0)).reshape(1, 25, 16)
    # conv2: OIHW (32,16,5,5) -> (5, 80, 32): kh groups, K index = kw*16 + ci.
    w2 = jnp.transpose(params["conv2_w"], (2, 3, 1, 0)).reshape(5, 80, 32)
    # head: permute columns from PyTorch NCHW-flatten (c,y,x) to NHWC-flatten
    # (y,x,c) order, then zero-pad N from 10 to 128 (lane-dense stores).
    w3 = jnp.transpose(params["lin_w"].reshape(10, 32, 7, 7),
                       (2, 3, 1, 0)).reshape(7 * 7 * 32, 10)
    w3 = jnp.pad(w3, ((0, 0), (0, 118)))
    b3 = jnp.pad(params["lin_b"], (0, 118)).reshape(1, 128)
    return dict(
        w1=w1.astype(jnp.bfloat16), b1=params["conv1_b"].reshape(1, 16),
        w2=w2.astype(jnp.bfloat16), b2=params["conv2_b"].reshape(1, 32),
        w3=w3.astype(jnp.bfloat16), b3=b3,
    )


B_TILE = 8  # images per conv grid step (keeps VMEM well under the v7x scoped limit)


@jax.jit
def cnn_forward(x_nchw, prep):
    B = x_nchw.shape[0]
    b_tile = min(B_TILE, B)
    Bp = int(pl.cdiv(B, b_tile)) * b_tile
    x = x_nchw[:, 0]                                        # (B, 28, 28)
    if Bp != B:
        x = jnp.pad(x, ((0, Bp - B), (0, 0), (0, 0)))

    # ---- conv1: full 25-tap im2col, x-extent padded to 32 for alignment ----
    xp = jnp.pad(x, ((0, 0), (2, 2), (2, 6)))               # (Bp, 32, 36)
    c1 = jnp.stack([xp[:, kh:kh + 28, kw:kw + 32]
                    for kh in range(5) for kw in range(5)], axis=-1)
    c1 = c1.reshape(Bp * 28 * 32, 25).astype(jnp.bfloat16)
    y1 = conv_gemm_pool(c1, prep["w1"], prep["b1"], b_tile=b_tile,
                        R_img=28 * 32, n_kh=1, XE=32, H=28, W=28, h_chunk=7)
    # y1: (Bp, 14, 14, 16) bf16

    # ---- conv2: kw-fused columns (K = 5*16 = 80), x-extent 16 ---------------
    y1p = jnp.pad(y1, ((0, 0), (2, 2), (2, 4), (0, 0)))     # (Bp, 18, 20, 16)
    c2 = jnp.concatenate([y1p[:, :, kw:kw + 16, :] for kw in range(5)], axis=-1)
    c2 = c2.reshape(Bp * 18 * 16, 80)                       # bf16
    y2 = conv_gemm_pool(c2, prep["w2"], prep["b2"], b_tile=b_tile,
                        R_img=18 * 16, n_kh=5, XE=16, H=14, W=14, h_chunk=14)
    # y2: (Bp, 7, 7, 32) bf16

    # ---- linear head (columns pre-permuted to NHWC-flatten order, N=128) ----
    flat = y2.reshape(Bp, 7 * 7 * 32)
    logits = linear(flat, prep["w3"], prep["b3"], tm=min(128, Bp))  # (Bp, 128)
    return logits[:B, :10]


def reference_forward(x_nchw, params):
    dn = ("NCHW", "OIHW", "NCHW")
    y = lax.conv_general_dilated(x_nchw, params["conv1_w"], (1, 1),
                                 [(2, 2), (2, 2)], dimension_numbers=dn,
                                 precision=lax.Precision.HIGHEST)
    y = jnp.maximum(y + params["conv1_b"][None, :, None, None], 0.0)
    y = lax.reduce_window(y, -jnp.inf, lax.max, (1, 1, 2, 2), (1, 1, 2, 2), "VALID")
    y = lax.conv_general_dilated(y, params["conv2_w"], (1, 1),
                                 [(2, 2), (2, 2)], dimension_numbers=dn,
                                 precision=lax.Precision.HIGHEST)
    y = jnp.maximum(y + params["conv2_b"][None, :, None, None], 0.0)
    y = lax.reduce_window(y, -jnp.inf, lax.max, (1, 1, 2, 2), (1, 1, 2, 2), "VALID")
    flat = y.reshape(y.shape[0], -1)
    return (jnp.dot(flat, params["lin_w"].T, precision=lax.Precision.HIGHEST)
            + params["lin_b"])


if __name__ == "__main__":
    key = jax.random.PRNGKey(0)
    kx, kp = jax.random.split(key)
    x = jax.random.normal(kx, (2, 1, 28, 28), jnp.float32)   # NCHW, MNIST-sized
    params = init_params(kp)
    prep = prepare_params(params)

    out = jax.block_until_ready(cnn_forward(x, prep))
    assert out.shape == (2, 10), out.shape

    ref = reference_forward(x, params)
    err = float(jnp.max(jnp.abs(out - ref)))
    # bf16 matmul inputs / bf16 inter-layer activations with f32 accumulation:
    # expected |err| ~ 1e-2 on ~0.3-std logits; 5e-2 still catches layout bugs.
    assert err < 5e-2, f"mismatch vs reference: {err}"

    print("KERNEL_OK")
</pallas_src>

<mosaic_0001>
module attributes {stable_mosaic.version = 11 : i64} {
  func.func @_conv_gemm_pool_kernel(%arg0: i32, %arg1: memref<1792x25xbf16, #tpu.memory_space<vmem>>, %arg2: memref<1x25x16xbf16, #tpu.memory_space<vmem>>, %arg3: memref<1x16xf32, #tpu.memory_space<vmem>>, %arg4: memref<2x14x14x16xbf16, #tpu.memory_space<vmem>>, %arg5: memref<896x16xf32, #tpu.memory_space<vmem>>, %arg6: memref<28x16xf32, #tpu.memory_space<vmem>>, %arg7: memref<14x14x16xbf16, #tpu.memory_space<vmem>>) attributes {dimension_semantics = [#tpu.dimension_semantics<parallel>], iteration_bounds = array<i64: 1>, scalar_prefetch = 0 : i64, scratch_operands = 3 : i64, tpu.core_type = #tpu.core_type<tc>, window_params = [{transform_indices = @transform_0, window_bounds = array<i64: 1792, 25>}, {pipeline_mode = #tpu.pipeline_mode<synchronous>, transform_indices = @transform_1, window_bounds = array<i64: 1, 25, 16>}, {pipeline_mode = #tpu.pipeline_mode<synchronous>, transform_indices = @transform_2, window_bounds = array<i64: 1, 16>}, {transform_indices = @transform_3, window_bounds = array<i64: 2, 14, 14, 16>}]} {
    %c0_i32 = arith.constant 0 : i32
    %c2_i32 = arith.constant 2 : i32
    %0 = arith.addi %c0_i32, %c2_i32 : i32
    %c1_i32 = arith.constant 1 : i32
    scf.for %arg8 = %c0_i32 to %0 step %c1_i32  : i32 {
      %c896_i32 = arith.constant 896 : i32
      %1 = arith.muli %arg8, %c896_i32 : i32
      %2 = tpu.assume_multiple %1, 8 : i32
      %c0_i32_1 = arith.constant 0 : i32
      %3 = arith.addi %2, %c0_i32_1 : i32
      %4 = arith.index_cast %3 : i32 to index
      %c0 = arith.constant 0 : index
      %5 = vector.load %arg1[%4, %c0] : memref<1792x25xbf16, #tpu.memory_space<vmem>>, vector<224x25xbf16>
      %c0_2 = arith.constant 0 : index
      %c0_3 = arith.constant 0 : index
      %c0_4 = arith.constant 0 : index
      %6 = vector.load %arg2[%c0_2, %c0_3, %c0_4] : memref<1x25x16xbf16, #tpu.memory_space<vmem>>, vector<1x25x16xbf16>
      %7 = vector.shape_cast %6 : vector<1x25x16xbf16> to vector<25x16xbf16>
      %cst = arith.constant dense<0.000000e+00> : vector<224x16xf32>
      %8 = tpu.matmul %5, %7, %cst {dimension_numbers = #tpu.dot_dimension_numbers<[1], [0], [0], [1], [0, 0, 1, 1], [], []>} : vector<224x25xbf16>, vector<25x16xbf16>, vector<224x16xf32> -> vector<224x16xf32>
      %c0_5 = arith.constant 0 : index
      %c0_6 = arith.constant 0 : index
      %9 = vector.load %arg3[%c0_5, %c0_6] : memref<1x16xf32, #tpu.memory_space<vmem>>, vector<1x16xf32>
      %10 = vector.broadcast %9 : vector<1x16xf32> to vector<224x16xf32>
      %11 = arith.addf %8, %10 : vector<224x16xf32>
      %cst_7 = arith.constant 0.000000e+00 : f32
      %12 = vector.broadcast %cst_7 : f32 to vector<224x16xf32>
      %13 = arith.maximumf %11, %12 : vector<224x16xf32>
      %c0_8 = arith.constant 0 : index
      %c0_9 = arith.constant 0 : index
      %14 = vector.load %arg5[%c0_8, %c0_9] : memref<896x16xf32, #tpu.memory_space<vmem>>, vector<224x16xf32>
      tpu.vector_store %arg5[%c0_8, %c0_9], %13 {strides = array<i32>} : memref<896x16xf32, #tpu.memory_space<vmem>>, vector<224x16xf32>,
      %c224_i32 = arith.constant 224 : i32
      %15 = arith.addi %2, %c224_i32 : i32
      %16 = arith.index_cast %15 : i32 to index
      %c0_10 = arith.constant 0 : index
      %17 = vector.load %arg1[%16, %c0_10] : memref<1792x25xbf16, #tpu.memory_space<vmem>>, vector<224x25xbf16>
      %c0_11 = arith.constant 0 : index
      %c0_12 = arith.constant 0 : index
      %c0_13 = arith.constant 0 : index
      %18 = vector.load %arg2[%c0_11, %c0_12, %c0_13] : memref<1x25x16xbf16, #tpu.memory_space<vmem>>, vector<1x25x16xbf16>
      %19 = vector.shape_cast %18 : vector<1x25x16xbf16> to vector<25x16xbf16>
      %cst_14 = arith.constant dense<0.000000e+00> : vector<224x16xf32>
      %20 = tpu.matmul %17, %19, %cst_14 {dimension_numbers = #tpu.dot_dimension_numbers<[1], [0], [0], [1], [0, 0, 1, 1], [], []>} : vector<224x25xbf16>, vector<25x16xbf16>, vector<224x16xf32> -> vector<224x16xf32>
      %c0_15 = arith.constant 0 : index
      %c0_16 = arith.constant 0 : index
      %21 = vector.load %arg3[%c0_15, %c0_16] : memref<1x16xf32, #tpu.memory_space<vmem>>, vector<1x16xf32>
      %22 = vector.broadcast %21 : vector<1x16xf32> to vector<224x16xf32>
      %23 = arith.addf %20, %22 : vector<224x16xf32>
      %cst_17 = arith.constant 0.000000e+00 : f32
      %24 = vector.broadcast %cst_17 : f32 to vector<224x16xf32>
      %25 = arith.maximumf %23, %24 : vector<224x16xf32>
      %c224 = arith.constant 224 : index
      %c0_18 = arith.constant 0 : index
      %26 = vector.load %arg5[%c224, %c0_18] : memref<896x16xf32, #tpu.memory_space<vmem>>, vector<224x16xf32>
      tpu.vector_store %arg5[%c224, %c0_18], %25 {strides = array<i32>} : memref<896x16xf32, #tpu.memory_space<vmem>>, vector<224x16xf32>,
      %c448_i32 = arith.constant 448 : i32
      %27 = arith.addi %2, %c448_i32 : i32
      %28 = arith.index_cast %27 : i32 to index
      %c0_19 = arith.constant 0 : index
      %29 = vector.load %arg1[%28, %c0_19] : memref<1792x25xbf16, #tpu.memory_space<vmem>>, vector<224x25xbf16>
      %c0_20 = arith.constant 0 : index
      %c0_21 = arith.constant 0 : index
      %c0_22 = arith.constant 0 : index
      %30 = vector.load %arg2[%c0_20, %c0_21, %c0_22] : memref<1x25x16xbf16, #tpu.memory_space<vmem>>, vector<1x25x16xbf16>
      %31 = vector.shape_cast %30 : vector<1x25x16xbf16> to vector<25x16xbf16>
      %cst_23 = arith.constant dense<0.000000e+00> : vector<224x16xf32>
      %32 = tpu.matmul %29, %31, %cst_23 {dimension_numbers = #tpu.dot_dimension_numbers<[1], [0], [0], [1], [0, 0, 1, 1], [], []>} : vector<224x25xbf16>, vector<25x16xbf16>, vector<224x16xf32> -> vector<224x16xf32>
      %c0_24 = arith.constant 0 : index
      %c0_25 = arith.constant 0 : index
      %33 = vector.load %arg3[%c0_24, %c0_25] : memref<1x16xf32, #tpu.memory_space<vmem>>, vector<1x16xf32>
      %34 = vector.broadcast %33 : vector<1x16xf32> to vector<224x16xf32>
      %35 = arith.addf %32, %34 : vector<224x16xf32>
      %cst_26 = arith.constant 0.000000e+00 : f32
      %36 = vector.broadcast %cst_26 : f32 to vector<224x16xf32>
      %37 = arith.maximumf %35, %36 : vector<224x16xf32>
      %c448 = arith.constant 448 : index
      %c0_27 = arith.constant 0 : index
      %38 = vector.load %arg5[%c448, %c0_27] : memref<896x16xf32, #tpu.memory_space<vmem>>, vector<224x16xf32>
      tpu.vector_store %arg5[%c448, %c0_27], %37 {strides = array<i32>} : memref<896x16xf32, #tpu.memory_space<vmem>>, vector<224x16xf32>,
      %c672_i32 = arith.constant 672 : i32
      %39 = arith.addi %2, %c672_i32 : i32
      %40 = arith.index_cast %39 : i32 to index
      %c0_28 = arith.constant 0 : index
      %41 = vector.load %arg1[%40, %c0_28] : memref<1792x25xbf16, #tpu.memory_space<vmem>>, vector<224x25xbf16>
      %c0_29 = arith.constant 0 : index
      %c0_30 = arith.constant 0 : index
      %c0_31 = arith.constant 0 : index
      %42 = vector.load %arg2[%c0_29, %c0_30, %c0_31] : memref<1x25x16xbf16, #tpu.memory_space<vmem>>, vector<1x25x16xbf16>
      %43 = vector.shape_cast %42 : vector<1x25x16xbf16> to vector<25x16xbf16>
      %cst_32 = arith.constant dense<0.000000e+00> : vector<224x16xf32>
      %44 = tpu.matmul %41, %43, %cst_32 {dimension_numbers = #tpu.dot_dimension_numbers<[1], [0], [0], [1], [0, 0, 1, 1], [], []>} : vector<224x25xbf16>, vector<25x16xbf16>, vector<224x16xf32> -> vector<224x16xf32>
      %c0_33 = arith.constant 0 : index
      %c0_34 = arith.constant 0 : index
      %45 = vector.load %arg3[%c0_33, %c0_34] : memref<1x16xf32, #tpu.memory_space<vmem>>, vector<1x16xf32>
      %46 = vector.broadcast %45 : vector<1x16xf32> to vector<224x16xf32>
      %47 = arith.addf %44, %46 : vector<224x16xf32>
      %cst_35 = arith.constant 0.000000e+00 : f32
      %48 = vector.broadcast %cst_35 : f32 to vector<224x16xf32>
      %49 = arith.maximumf %47, %48 : vector<224x16xf32>
      %c672 = arith.constant 672 : index
      %c0_36 = arith.constant 0 : index
      %50 = vector.load %arg5[%c672, %c0_36] : memref<896x16xf32, #tpu.memory_space<vmem>>, vector<224x16xf32>
      tpu.vector_store %arg5[%c672, %c0_36], %49 {strides = array<i32>} : memref<896x16xf32, #tpu.memory_space<vmem>>, vector<224x16xf32>,
      %c0_37 = arith.constant 0 : index
      %c0_38 = arith.constant 0 : index
      %51 = vector.load %arg5[%c0_37, %c0_38] : memref<896x16xf32, #tpu.memory_space<vmem>>, vector<28x16xf32>
      %c32 = arith.constant 32 : index
      %c0_39 = arith.constant 0 : index
      %52 = vector.load %arg5[%c32, %c0_39] : memref<896x16xf32, #tpu.memory_space<vmem>>, vector<28x16xf32>
      %53 = arith.maximumf %51, %52 : vector<28x16xf32>
      %c0_40 = arith.constant 0 : index
      %c0_41 = arith.constant 0 : index
      %54 = vector.load %arg6[%c0_40, %c0_41] : memref<28x16xf32, #tpu.memory_space<vmem>>, vector<28x16xf32>
      tpu.vector_store %arg6[%c0_40, %c0_41], %53 {strides = array<i32>} : memref<28x16xf32, #tpu.memory_space<vmem>>, vector<28x16xf32>,
      %c0_42 = arith.constant 0 : index
      %c0_43 = arith.constant 0 : index
      %55 = tpu.strided_load %arg6[%c0_42, %c0_43] {strides = array<i32: 2, 1>} : memref<28x16xf32, #tpu.memory_space<vmem>>, vector<14x16xf32>
      %c1 = arith.constant 1 : index
      %c0_44 = arith.constant 0 : index
      %56 = tpu.strided_load %arg6[%c1, %c0_44] {strides = array<i32: 2, 1>} : memref<28x16xf32, #tpu.memory_space<vmem>>, vector<14x16xf32>
      %57 = arith.maximumf %55, %56 : vector<14x16xf32>
      %58 = arith.truncf %57 : vector<14x16xf32> to vector<14x16xbf16>
      %c0_45 = arith.constant 0 : index
      %c0_46 = arith.constant 0 : index
      %c0_47 = arith.constant 0 : index
      %59 = vector.load %arg7[%c0_45, %c0_46, %c0_47] : memref<14x14x16xbf16, #tpu.memory_space<vmem>>, vector<1x14x16xbf16>
      %60 = vector.shape_cast %59 : vector<1x14x16xbf16> to vector<14x16xbf16>
      %61 = vector.shape_cast %58 : vector<14x16xbf16> to vector<1x14x16xbf16>
      tpu.vector_store %arg7[%c0_45, %c0_46, %c0_47], %61 {strides = array<i32>} : memref<14x14x16xbf16, #tpu.memory_space<vmem>>, vector<1x14x16xbf16>,
      %c64 = arith.constant 64 : index
      %c0_48 = arith.constant 0 : index
      %62 = vector.load %arg5[%c64, %c0_48] : memref<896x16xf32, #tpu.memory_space<vmem>>, vector<28x16xf32>
      %c96 = arith.constant 96 : index
      %c0_49 = arith.constant 0 : index
      %63 = vector.load %arg5[%c96, %c0_49] : memref<896x16xf32, #tpu.memory_space<vmem>>, vector<28x16xf32>
      %64 = arith.maximumf %62, %63 : vector<28x16xf32>
      %c0_50 = arith.constant 0 : index
      %c0_51 = arith.constant 0 : index
      %65 = vector.load %arg6[%c0_50, %c0_51] : memref<28x16xf32, #tpu.memory_space<vmem>>, vector<28x16xf32>
      tpu.vector_store %arg6[%c0_50, %c0_51], %64 {strides = array<i32>} : memref<28x16xf32, #tpu.memory_space<vmem>>, vector<28x16xf32>,
      %c0_52 = arith.constant 0 : index
      %c0_53 = arith.constant 0 : index
      %66 = tpu.strided_load %arg6[%c0_52, %c0_53] {strides = array<i32: 2, 1>} : memref<28x16xf32, #tpu.memory_space<vmem>>, vector<14x16xf32>
      %c1_54 = arith.constant 1 : index
      %c0_55 = arith.constant 0 : index
      %67 = tpu.strided_load %arg6[%c1_54, %c0_55] {strides = array<i32: 2, 1>} : memref<28x16xf32, #tpu.memory_space<vmem>>, vector<14x16xf32>
      %68 = arith.maximumf %66, %67 : vector<14x16xf32>
      %69 = arith.truncf %68 : vector<14x16xf32> to vector<14x16xbf16>
      %c1_56 = arith.constant 1 : index
      %c0_57 = arith.constant 0 : index
      %c0_58 = arith.constant 0 : index
      %70 = vector.load %arg7[%c1_56, %c0_57, %c0_58] : memref<14x14x16xbf16, #tpu.memory_space<vmem>>, vector<1x14x16xbf16>
      %71 = vector.shape_cast %70 : vector<1x14x16xbf16> to vector<14x16xbf16>
      %72 = vector.shape_cast %69 : vector<14x16xbf16> to vector<1x14x16xbf16>
      tpu.vector_store %arg7[%c1_56, %c0_57, %c0_58], %72 {strides = array<i32>} : memref<14x14x16xbf16, #tpu.memory_space<vmem>>, vector<1x14x16xbf16>,
      %c128 = arith.constant 128 : index
      %c0_59 = arith.constant 0 : index
      %73 = vector.load %arg5[%c128, %c0_59] : memref<896x16xf32, #tpu.memory_space<vmem>>, vector<28x16xf32>
      %c160 = arith.constant 160 : index
      %c0_60 = arith.constant 0 : index
      %74 = vector.load %arg5[%c160, %c0_60] : memref<896x16xf32, #tpu.memory_space<vmem>>, vector<28x16xf32>
      %75 = arith.maximumf %73, %74 : vector<28x16xf32>
      %c0_61 = arith.constant 0 : index
      %c0_62 = arith.constant 0 : index
      %76 = vector.load %arg6[%c0_61, %c0_62] : memref<28x16xf32, #tpu.memory_space<vmem>>, vector<28x16xf32>
      tpu.vector_store %arg6[%c0_61, %c0_62], %75 {strides = array<i32>} : memref<28x16xf32, #tpu.memory_space<vmem>>, vector<28x16xf32>,
      %c0_63 = arith.constant 0 : index
      %c0_64 = arith.constant 0 : index
      %77 = tpu.strided_load %arg6[%c0_63, %c0_64] {strides = array<i32: 2, 1>} : memref<28x16xf32, #tpu.memory_space<vmem>>, vector<14x16xf32>
      %c1_65 = arith.constant 1 : index
      %c0_66 = arith.constant 0 : index
      %78 = tpu.strided_load %arg6[%c1_65, %c0_66] {strides = array<i32: 2, 1>} : memref<28x16xf32, #tpu.memory_space<vmem>>, vector<14x16xf32>
      %79 = arith.maximumf %77, %78 : vector<14x16xf32>
      %80 = arith.truncf %79 : vector<14x16xf32> to vector<14x16xbf16>
      %c2 = arith.constant 2 : index
      %c0_67 = arith.constant 0 : index
      %c0_68 = arith.constant 0 : index
      %81 = vector.load %arg7[%c2, %c0_67, %c0_68] : memref<14x14x16xbf16, #tpu.memory_space<vmem>>, vector<1x14x16xbf16>
      %82 = vector.shape_cast %81 : vector<1x14x16xbf16> to vector<14x16xbf16>
      %83 = vector.shape_cast %80 : vector<14x16xbf16> to vector<1x14x16xbf16>
      tpu.vector_store %arg7[%c2, %c0_67, %c0_68], %83 {strides = array<i32>} : memref<14x14x16xbf16, #tpu.memory_space<vmem>>, vector<1x14x16xbf16>,
      %c192 = arith.constant 192 : index
      %c0_69 = arith.constant 0 : index
      %84 = vector.load %arg5[%c192, %c0_69] : memref<896x16xf32, #tpu.memory_space<vmem>>, vector<28x16xf32>
      %c224_70 = arith.constant 224 : index
      %c0_71 = arith.constant 0 : index
      %85 = vector.load %arg5[%c224_70, %c0_71] : memref<896x16xf32, #tpu.memory_space<vmem>>, vector<28x16xf32>
      %86 = arith.maximumf %84, %85 : vector<28x16xf32>
      %c0_72 = arith.constant 0 : index
      %c0_73 = arith.constant 0 : index
      %87 = vector.load %arg6[%c0_72, %c0_73] : memref<28x16xf32, #tpu.memory_space<vmem>>, vector<28x16xf32>
      tpu.vector_store %arg6[%c0_72, %c0_73], %86 {strides = array<i32>} : memref<28x16xf32, #tpu.memory_space<vmem>>, vector<28x16xf32>,
      %c0_74 = arith.constant 0 : index
      %c0_75 = arith.constant 0 : index
      %88 = tpu.strided_load %arg6[%c0_74, %c0_75] {strides = array<i32: 2, 1>} : memref<28x16xf32, #tpu.memory_space<vmem>>, vector<14x16xf32>
      %c1_76 = arith.constant 1 : index
      %c0_77 = arith.constant 0 : index
      %89 = tpu.strided_load %arg6[%c1_76, %c0_77] {strides = array<i32: 2, 1>} : memref<28x16xf32, #tpu.memory_space<vmem>>, vector<14x16xf32>
      %90 = arith.maximumf %88, %89 : vector<14x16xf32>
      %91 = arith.truncf %90 : vector<14x16xf32> to vector<14x16xbf16>
      %c3 = arith.constant 3 : index
      %c0_78 = arith.constant 0 : index
      %c0_79 = arith.constant 0 : index
      %92 = vector.load %arg7[%c3, %c0_78, %c0_79] : memref<14x14x16xbf16, #tpu.memory_space<vmem>>, vector<1x14x16xbf16>
      %93 = vector.shape_cast %92 : vector<1x14x16xbf16> to vector<14x16xbf16>
      %94 = vector.shape_cast %91 : vector<14x16xbf16> to vector<1x14x16xbf16>
      tpu.vector_store %arg7[%c3, %c0_78, %c0_79], %94 {strides = array<i32>} : memref<14x14x16xbf16, #tpu.memory_space<vmem>>, vector<1x14x16xbf16>,
      %c256 = arith.constant 256 : index
      %c0_80 = arith.constant 0 : index
      %95 = vector.load %arg5[%c256, %c0_80] : memref<896x16xf32, #tpu.memory_space<vmem>>, vector<28x16xf32>
      %c288 = arith.constant 288 : index
      %c0_81 = arith.constant 0 : index
      %96 = vector.load %arg5[%c288, %c0_81] : memref<896x16xf32, #tpu.memory_space<vmem>>, vector<28x16xf32>
      %97 = arith.maximumf %95, %96 : vector<28x16xf32>
      %c0_82 = arith.constant 0 : index
      %c0_83 = arith.constant 0 : index
      %98 = vector.load %arg6[%c0_82, %c0_83] : memref<28x16xf32, #tpu.memory_space<vmem>>, vector<28x16xf32>
      tpu.vector_store %arg6[%c0_82, %c0_83], %97 {strides = array<i32>} : memref<28x16xf32, #tpu.memory_space<vmem>>, vector<28x16xf32>,
      %c0_84 = arith.constant 0 : index
      %c0_85 = arith.constant 0 : index
      %99 = tpu.strided_load %arg6[%c0_84, %c0_85] {strides = array<i32: 2, 1>} : memref<28x16xf32, #tpu.memory_space<vmem>>, vector<14x16xf32>
      %c1_86 = arith.constant 1 : index
      %c0_87 = arith.constant 0 : index
      %100 = tpu.strided_load %arg6[%c1_86, %c0_87] {strides = array<i32: 2, 1>} : memref<28x16xf32, #tpu.memory_space<vmem>>, vector<14x16xf32>
      %101 = arith.maximumf %99, %100 : vector<14x16xf32>
      %102 = arith.truncf %101 : vector<14x16xf32> to vector<14x16xbf16>
      %c4 = arith.constant 4 : index
      %c0_88 = arith.constant 0 : index
      %c0_89 = arith.constant 0 : index
      %103 = vector.load %arg7[%c4, %c0_88, %c0_89] : memref<14x14x16xbf16, #tpu.memory_space<vmem>>, vector<1x14x16xbf16>
      %104 = vector.shape_cast %103 : vector<1x14x16xbf16> to vector<14x16xbf16>
      %105 = vector.shape_cast %102 : vector<14x16xbf16> to vector<1x14x16xbf16>
      tpu.vector_store %arg7[%c4, %c0_88, %c0_89], %105 {strides = array<i32>} : memref<14x14x16xbf16, #tpu.memory_space<vmem>>, vector<1x14x16xbf16>,
      %c320 = arith.constant 320 : index
      %c0_90 = arith.constant 0 : index
      %106 = vector.load %arg5[%c320, %c0_90] : memref<896x16xf32, #tpu.memory_space<vmem>>, vector<28x16xf32>
      %c352 = arith.constant 352 : index
      %c0_91 = arith.constant 0 : index
      %107 = vector.load %arg5[%c352, %c0_91] : memref<896x16xf32, #tpu.memory_space<vmem>>, vector<28x16xf32>
      %108 = arith.maximumf %106, %107 : vector<28x16xf32>
      %c0_92 = arith.constant 0 : index
      %c0_93 = arith.constant 0 : index
      %109 = vector.load %arg6[%c0_92, %c0_93] : memref<28x16xf32, #tpu.memory_space<vmem>>, vector<28x16xf32>
      tpu.vector_store %arg6[%c0_92, %c0_93], %108 {strides = array<i32>} : memref<28x16xf32, #tpu.memory_space<vmem>>, vector<28x16xf32>,
      %c0_94 = arith.constant 0 : index
      %c0_95 = arith.constant 0 : index
      %110 = tpu.strided_load %arg6[%c0_94, %c0_95] {strides = array<i32: 2, 1>} : memref<28x16xf32, #tpu.memory_space<vmem>>, vector<14x16xf32>
      %c1_96 = arith.constant 1 : index
      %c0_97 = arith.constant 0 : index
      %111 = tpu.strided_load %arg6[%c1_96, %c0_97] {strides = array<i32: 2, 1>} : memref<28x16xf32, #tpu.memory_space<vmem>>, vector<14x16xf32>
      %112 = arith.maximumf %110, %111 : vector<14x16xf32>
      %113 = arith.truncf %112 : vector<14x16xf32> to vector<14x16xbf16>
      %c5 = arith.constant 5 : index
      %c0_98 = arith.constant 0 : index
      %c0_99 = arith.constant 0 : index
      %114 = vector.load %arg7[%c5, %c0_98, %c0_99] : memref<14x14x16xbf16, #tpu.memory_space<vmem>>, vector<1x14x16xbf16>
      %115 = vector.shape_cast %114 : vector<1x14x16xbf16> to vector<14x16xbf16>
      %116 = vector.shape_cast %113 : vector<14x16xbf16> to vector<1x14x16xbf16>
      tpu.vector_store %arg7[%c5, %c0_98, %c0_99], %116 {strides = array<i32>} : memref<14x14x16xbf16, #tpu.memory_space<vmem>>, vector<1x14x16xbf16>,
      %c384 = arith.constant 384 : index
      %c0_100 = arith.constant 0 : index
      %117 = vector.load %arg5[%c384, %c0_100] : memref<896x16xf32, #tpu.memory_space<vmem>>, vector<28x16xf32>
      %c416 = arith.constant 416 : index
      %c0_101 = arith.constant 0 : index
      %118 = vector.load %arg5[%c416, %c0_101] : memref<896x16xf32, #tpu.memory_space<vmem>>, vector<28x16xf32>
      %119 = arith.maximumf %117, %118 : vector<28x16xf32>
      %c0_102 = arith.constant 0 : index
      %c0_103 = arith.constant 0 : index
      %120 = vector.load %arg6[%c0_102, %c0_103] : memref<28x16xf32, #tpu.memory_space<vmem>>, vector<28x16xf32>
      tpu.vector_store %arg6[%c0_102, %c0_103], %119 {strides = array<i32>} : memref<28x16xf32, #tpu.memory_space<vmem>>, vector<28x16xf32>,
      %c0_104 = arith.constant 0 : index
      %c0_105 = arith.constant 0 : index
      %121 = tpu.strided_load %arg6[%c0_104, %c0_105] {strides = array<i32: 2, 1>} : memref<28x16xf32, #tpu.memory_space<vmem>>, vector<14x16xf32>
      %c1_106 = arith.constant 1 : index
      %c0_107 = arith.constant 0 : index
      %122 = tpu.strided_load %arg6[%c1_106, %c0_107] {strides = array<i32: 2, 1>} : memref<28x16xf32, #tpu.memory_space<vmem>>, vector<14x16xf32>
      %123 = arith.maximumf %121, %122 : vector<14x16xf32>
      %124 = arith.truncf %123 : vector<14x16xf32> to vector<14x16xbf16>
      %c6 = arith.constant 6 : index
      %c0_108 = arith.constant 0 : index
      %c0_109 = arith.constant 0 : index
      %125 = vector.load %arg7[%c6, %c0_108, %c0_109] : memref<14x14x16xbf16, #tpu.memory_space<vmem>>, vector<1x14x16xbf16>
      %126 = vector.shape_cast %125 : vector<1x14x16xbf16> to vector<14x16xbf16>
      %127 = vector.shape_cast %124 : vector<14x16xbf16> to vector<1x14x16xbf16>
      tpu.vector_store %arg7[%c6, %c0_108, %c0_109], %127 {strides = array<i32>} : memref<14x14x16xbf16, #tpu.memory_space<vmem>>, vector<1x14x16xbf16>,
      %c448_110 = arith.constant 448 : index
      %c0_111 = arith.constant 0 : index
      %128 = vector.load %arg5[%c448_110, %c0_111] : memref<896x16xf32, #tpu.memory_space<vmem>>, vector<28x16xf32>
      %c480 = arith.constant 480 : index
      %c0_112 = arith.constant 0 : index
      %129 = vector.load %arg5[%c480, %c0_112] : memref<896x16xf32, #tpu.memory_space<vmem>>, vector<28x16xf32>
      %130 = arith.maximumf %128, %129 : vector<28x16xf32>
      %c0_113 = arith.constant 0 : index
      %c0_114 = arith.constant 0 : index
      %131 = vector.load %arg6[%c0_113, %c0_114] : memref<28x16xf32, #tpu.memory_space<vmem>>, vector<28x16xf32>
      tpu.vector_store %arg6[%c0_113, %c0_114], %130 {strides = array<i32>} : memref<28x16xf32, #tpu.memory_space<vmem>>, vector<28x16xf32>,
      %c0_115 = arith.constant 0 : index
      %c0_116 = arith.constant 0 : index
      %132 = tpu.strided_load %arg6[%c0_115, %c0_116] {strides = array<i32: 2, 1>} : memref<28x16xf32, #tpu.memory_space<vmem>>, vector<14x16xf32>
      %c1_117 = arith.constant 1 : index
      %c0_118 = arith.constant 0 : index
      %133 = tpu.strided_load %arg6[%c1_117, %c0_118] {strides = array<i32: 2, 1>} : memref<28x16xf32, #tpu.memory_space<vmem>>, vector<14x16xf32>
      %134 = arith.maximumf %132, %133 : vector<14x16xf32>
      %135 = arith.truncf %134 : vector<14x16xf32> to vector<14x16xbf16>
      %c7 = arith.constant 7 : index
      %c0_119 = arith.constant 0 : index
      %c0_120 = arith.constant 0 : index
      %136 = vector.load %arg7[%c7, %c0_119, %c0_120] : memref<14x14x16xbf16, #tpu.memory_space<vmem>>, vector<1x14x16xbf16>
      %137 = vector.shape_cast %136 : vector<1x14x16xbf16> to vector<14x16xbf16>
      %138 = vector.shape_cast %135 : vector<14x16xbf16> to vector<1x14x16xbf16>
      tpu.vector_store %arg7[%c7, %c0_119, %c0_120], %138 {strides = array<i32>} : memref<14x14x16xbf16, #tpu.memory_space<vmem>>, vector<1x14x16xbf16>,
      %c512 = arith.constant 512 : index
      %c0_121 = arith.constant 0 : index
      %139 = vector.load %arg5[%c512, %c0_121] : memref<896x16xf32, #tpu.memory_space<vmem>>, vector<28x16xf32>
      %c544 = arith.constant 544 : index
      %c0_122 = arith.constant 0 : index
      %140 = vector.load %arg5[%c544, %c0_122] : memref<896x16xf32, #tpu.memory_space<vmem>>, vector<28x16xf32>
      %141 = arith.maximumf %139, %140 : vector<28x16xf32>
      %c0_123 = arith.constant 0 : index
      %c0_124 = arith.constant 0 : index
      %142 = vector.load %arg6[%c0_123, %c0_124] : memref<28x16xf32, #tpu.memory_space<vmem>>, vector<28x16xf32>
      tpu.vector_store %arg6[%c0_123, %c0_124], %141 {strides = array<i32>} : memref<28x16xf32, #tpu.memory_space<vmem>>, vector<28x16xf32>,
      %c0_125 = arith.constant 0 : index
      %c0_126 = arith.constant 0 : index
      %143 = tpu.strided_load %arg6[%c0_125, %c0_126] {strides = array<i32: 2, 1>} : memref<28x16xf32, #tpu.memory_space<vmem>>, vector<14x16xf32>
      %c1_127 = arith.constant 1 : index
      %c0_128 = arith.constant 0 : index
      %144 = tpu.strided_load %arg6[%c1_127, %c0_128] {strides = array<i32: 2, 1>} : memref<28x16xf32, #tpu.memory_space<vmem>>, vector<14x16xf32>
      %145 = arith.maximumf %143, %144 : vector<14x16xf32>
      %146 = arith.truncf %145 : vector<14x16xf32> to vector<14x16xbf16>
      %c8 = arith.constant 8 : index
      %c0_129 = arith.constant 0 : index
      %c0_130 = arith.constant 0 : index
      %147 = vector.load %arg7[%c8, %c0_129, %c0_130] : memref<14x14x16xbf16, #tpu.memory_space<vmem>>, vector<1x14x16xbf16>
      %148 = vector.shape_cast %147 : vector<1x14x16xbf16> to vector<14x16xbf16>
      %149 = vector.shape_cast %146 : vector<14x16xbf16> to vector<1x14x16xbf16>
      tpu.vector_store %arg7[%c8, %c0_129, %c0_130], %149 {strides = array<i32>} : memref<14x14x16xbf16, #tpu.memory_space<vmem>>, vector<1x14x16xbf16>,
      %c576 = arith.constant 576 : index
      %c0_131 = arith.constant 0 : index
      %150 = vector.load %arg5[%c576, %c0_131] : memref<896x16xf32, #tpu.memory_space<vmem>>, vector<28x16xf32>
      %c608 = arith.constant 608 : index
      %c0_132 = arith.constant 0 : index
      %151 = vector.load %arg5[%c608, %c0_132] : memref<896x16xf32, #tpu.memory_space<vmem>>, vector<28x16xf32>
      %152 = arith.maximumf %150, %151 : vector<28x16xf32>
      %c0_133 = arith.constant 0 : index
      %c0_134 = arith.constant 0 : index
      %153 = vector.load %arg6[%c0_133, %c0_134] : memref<28x16xf32, #tpu.memory_space<vmem>>, vector<28x16xf32>
      tpu.vector_store %arg6[%c0_133, %c0_134], %152 {strides = array<i32>} : memref<28x16xf32, #tpu.memory_space<vmem>>, vector<28x16xf32>,
      %c0_135 = arith.constant 0 : index
      %c0_136 = arith.constant 0 : index
      %154 = tpu.strided_load %arg6[%c0_135, %c0_136] {strides = array<i32: 2, 1>} : memref<28x16xf32, #tpu.memory_space<vmem>>, vector<14x16xf32>
      %c1_137 = arith.constant 1 : index
      %c0_138 = arith.constant 0 : index
      %155 = tpu.strided_load %arg6[%c1_137, %c0_138] {strides = array<i32: 2, 1>} : memref<28x16xf32, #tpu.memory_space<vmem>>, vector<14x16xf32>
      %156 = arith.maximumf %154, %155 : vector<14x16xf32>
      %157 = arith.truncf %156 : vector<14x16xf32> to vector<14x16xbf16>
      %c9 = arith.constant 9 : index
      %c0_139 = arith.constant 0 : index
      %c0_140 = arith.constant 0 : index
      %158 = vector.load %arg7[%c9, %c0_139, %c0_140] : memref<14x14x16xbf16, #tpu.memory_space<vmem>>, vector<1x14x16xbf16>
      %159 = vector.shape_cast %158 : vector<1x14x16xbf16> to vector<14x16xbf16>
      %160 = vector.shape_cast %157 : vector<14x16xbf16> to vector<1x14x16xbf16>
      tpu.vector_store %arg7[%c9, %c0_139, %c0_140], %160 {strides = array<i32>} : memref<14x14x16xbf16, #tpu.memory_space<vmem>>, vector<1x14x16xbf16>,
      %c640 = arith.constant 640 : index
      %c0_141 = arith.constant 0 : index
      %161 = vector.load %arg5[%c640, %c0_141] : memref<896x16xf32, #tpu.memory_space<vmem>>, vector<28x16xf32>
      %c672_142 = arith.constant 672 : index
      %c0_143 = arith.constant 0 : index
      %162 = vector.load %arg5[%c672_142, %c0_143] : memref<896x16xf32, #tpu.memory_space<vmem>>, vector<28x16xf32>
      %163 = arith.maximumf %161, %162 : vector<28x16xf32>
      %c0_144 = arith.constant 0 : index
      %c0_145 = arith.constant 0 : index
      %164 = vector.load %arg6[%c0_144, %c0_145] : memref<28x16xf32, #tpu.memory_space<vmem>>, vector<28x16xf32>
      tpu.vector_store %arg6[%c0_144, %c0_145], %163 {strides = array<i32>} : memref<28x16xf32, #tpu.memory_space<vmem>>, vector<28x16xf32>,
      %c0_146 = arith.constant 0 : index
      %c0_147 = arith.constant 0 : index
      %165 = tpu.strided_load %arg6[%c0_146, %c0_147] {strides = array<i32: 2, 1>} : memref<28x16xf32, #tpu.memory_space<vmem>>, vector<14x16xf32>
      %c1_148 = arith.constant 1 : index
      %c0_149 = arith.constant 0 : index
      %166 = tpu.strided_load %arg6[%c1_148, %c0_149] {strides = array<i32: 2, 1>} : memref<28x16xf32, #tpu.memory_space<vmem>>, vector<14x16xf32>
      %167 = arith.maximumf %165, %166 : vector<14x16xf32>
      %168 = arith.truncf %167 : vector<14x16xf32> to vector<14x16xbf16>
      %c10 = arith.constant 10 : index
      %c0_150 = arith.constant 0 : index
      %c0_151 = arith.constant 0 : index
      %169 = vector.load %arg7[%c10, %c0_150, %c0_151] : memref<14x14x16xbf16, #tpu.memory_space<vmem>>, vector<1x14x16xbf16>
      %170 = vector.shape_cast %169 : vector<1x14x16xbf16> to vector<14x16xbf16>
      %171 = vector.shape_cast %168 : vector<14x16xbf16> to vector<1x14x16xbf16>
      tpu.vector_store %arg7[%c10, %c0_150, %c0_151], %171 {strides = array<i32>} : memref<14x14x16xbf16, #tpu.memory_space<vmem>>, vector<1x14x16xbf16>,
      %c704 = arith.constant 704 : index
      %c0_152 = arith.constant 0 : index
      %172 = vector.load %arg5[%c704, %c0_152] : memref<896x16xf32, #tpu.memory_space<vmem>>, vector<28x16xf32>
      %c736 = arith.constant 736 : index
      %c0_153 = arith.constant 0 : index
      %173 = vector.load %arg5[%c736, %c0_153] : memref<896x16xf32, #tpu.memory_space<vmem>>, vector<28x16xf32>
      %174 = arith.maximumf %172, %173 : vector<28x16xf32>
      %c0_154 = arith.constant 0 : index
      %c0_155 = arith.constant 0 : index
      %175 = vector.load %arg6[%c0_154, %c0_155] : memref<28x16xf32, #tpu.memory_space<vmem>>, vector<28x16xf32>
      tpu.vector_store %arg6[%c0_154, %c0_155], %174 {strides = array<i32>} : memref<28x16xf32, #tpu.memory_space<vmem>>, vector<28x16xf32>,
      %c0_156 = arith.constant 0 : index
      %c0_157 = arith.constant 0 : index
      %176 = tpu.strided_load %arg6[%c0_156, %c0_157] {strides = array<i32: 2, 1>} : memref<28x16xf32, #tpu.memory_space<vmem>>, vector<14x16xf32>
      %c1_158 = arith.constant 1 : index
      %c0_159 = arith.constant 0 : index
      %177 = tpu.strided_load %arg6[%c1_158, %c0_159] {strides = array<i32: 2, 1>} : memref<28x16xf32, #tpu.memory_space<vmem>>, vector<14x16xf32>
      %178 = arith.maximumf %176, %177 : vector<14x16xf32>
      %179 = arith.truncf %178 : vector<14x16xf32> to vector<14x16xbf16>
      %c11 = arith.constant 11 : index
      %c0_160 = arith.constant 0 : index
      %c0_161 = arith.constant 0 : index
      %180 = vector.load %arg7[%c11, %c0_160, %c0_161] : memref<14x14x16xbf16, #tpu.memory_space<vmem>>, vector<1x14x16xbf16>
      %181 = vector.shape_cast %180 : vector<1x14x16xbf16> to vector<14x16xbf16>
      %182 = vector.shape_cast %179 : vector<14x16xbf16> to vector<1x14x16xbf16>
      tpu.vector_store %arg7[%c11, %c0_160, %c0_161], %182 {strides = array<i32>} : memref<14x14x16xbf16, #tpu.memory_space<vmem>>, vector<1x14x16xbf16>,
      %c768 = arith.constant 768 : index
      %c0_162 = arith.constant 0 : index
      %183 = vector.load %arg5[%c768, %c0_162] : memref<896x16xf32, #tpu.memory_space<vmem>>, vector<28x16xf32>
      %c800 = arith.constant 800 : index
      %c0_163 = arith.constant 0 : index
      %184 = vector.load %arg5[%c800, %c0_163] : memref<896x16xf32, #tpu.memory_space<vmem>>, vector<28x16xf32>
      %185 = arith.maximumf %183, %184 : vector<28x16xf32>
      %c0_164 = arith.constant 0 : index
      %c0_165 = arith.constant 0 : index
      %186 = vector.load %arg6[%c0_164, %c0_165] : memref<28x16xf32, #tpu.memory_space<vmem>>, vector<28x16xf32>
      tpu.vector_store %arg6[%c0_164, %c0_165], %185 {strides = array<i32>} : memref<28x16xf32, #tpu.memory_space<vmem>>, vector<28x16xf32>,
      %c0_166 = arith.constant 0 : index
      %c0_167 = arith.constant 0 : index
      %187 = tpu.strided_load %arg6[%c0_166, %c0_167] {strides = array<i32: 2, 1>} : memref<28x16xf32, #tpu.memory_space<vmem>>, vector<14x16xf32>
      %c1_168 = arith.constant 1 : index
      %c0_169 = arith.constant 0 : index
      %188 = tpu.strided_load %arg6[%c1_168, %c0_169] {strides = array<i32: 2, 1>} : memref<28x16xf32, #tpu.memory_space<vmem>>, vector<14x16xf32>
      %189 = arith.maximumf %187, %188 : vector<14x16xf32>
      %190 = arith.truncf %189 : vector<14x16xf32> to vector<14x16xbf16>
      %c12 = arith.constant 12 : index
      %c0_170 = arith.constant 0 : index
      %c0_171 = arith.constant 0 : index
      %191 = vector.load %arg7[%c12, %c0_170, %c0_171] : memref<14x14x16xbf16, #tpu.memory_space<vmem>>, vector<1x14x16xbf16>
      %192 = vector.shape_cast %191 : vector<1x14x16xbf16> to vector<14x16xbf16>
      %193 = vector.shape_cast %190 : vector<14x16xbf16> to vector<1x14x16xbf16>
      tpu.vector_store %arg7[%c12, %c0_170, %c0_171], %193 {strides = array<i32>} : memref<14x14x16xbf16, #tpu.memory_space<vmem>>, vector<1x14x16xbf16>,
      %c832 = arith.constant 832 : index
      %c0_172 = arith.constant 0 : index
      %194 = vector.load %arg5[%c832, %c0_172] : memref<896x16xf32, #tpu.memory_space<vmem>>, vector<28x16xf32>
      %c864 = arith.constant 864 : index
      %c0_173 = arith.constant 0 : index
      %195 = vector.load %arg5[%c864, %c0_173] : memref<896x16xf32, #tpu.memory_space<vmem>>, vector<28x16xf32>
      %196 = arith.maximumf %194, %195 : vector<28x16xf32>
      %c0_174 = arith.constant 0 : index
      %c0_175 = arith.constant 0 : index
      %197 = vector.load %arg6[%c0_174, %c0_175] : memref<28x16xf32, #tpu.memory_space<vmem>>, vector<28x16xf32>
      tpu.vector_store %arg6[%c0_174, %c0_175], %196 {strides = array<i32>} : memref<28x16xf32, #tpu.memory_space<vmem>>, vector<28x16xf32>,
      %c0_176 = arith.constant 0 : index
      %c0_177 = arith.constant 0 : index
      %198 = tpu.strided_load %arg6[%c0_176, %c0_177] {strides = array<i32: 2, 1>} : memref<28x16xf32, #tpu.memory_space<vmem>>, vector<14x16xf32>
      %c1_178 = arith.constant 1 : index
      %c0_179 = arith.constant 0 : index
      %199 = tpu.strided_load %arg6[%c1_178, %c0_179] {strides = array<i32: 2, 1>} : memref<28x16xf32, #tpu.memory_space<vmem>>, vector<14x16xf32>
      %200 = arith.maximumf %198, %199 : vector<14x16xf32>
      %201 = arith.truncf %200 : vector<14x16xf32> to vector<14x16xbf16>
      %c13 = arith.constant 13 : index
      %c0_180 = arith.constant 0 : index
      %c0_181 = arith.constant 0 : index
      %202 = vector.load %arg7[%c13, %c0_180, %c0_181] : memref<14x14x16xbf16, #tpu.memory_space<vmem>>, vector<1x14x16xbf16>
      %203 = vector.shape_cast %202 : vector<1x14x16xbf16> to vector<14x16xbf16>
      %204 = vector.shape_cast %201 : vector<14x16xbf16> to vector<1x14x16xbf16>
      tpu.vector_store %arg7[%c13, %c0_180, %c0_181], %204 {strides = array<i32>} : memref<14x14x16xbf16, #tpu.memory_space<vmem>>, vector<1x14x16xbf16>,
      %c0_182 = arith.constant 0 : index
      %c0_183 = arith.constant 0 : index
      %c0_184 = arith.constant 0 : index
      %205 = vector.load %arg7[%c0_182, %c0_183, %c0_184] : memref<14x14x16xbf16, #tpu.memory_space<vmem>>, vector<14x14x16xbf16>
      %206 = arith.index_cast %arg8 : i32 to index
      %c0_185 = arith.constant 0 : index
      %c0_186 = arith.constant 0 : index
      %c0_187 = arith.constant 0 : index
      %207 = vector.load %arg4[%206, %c0_185, %c0_186, %c0_187] : memref<2x14x14x16xbf16, #tpu.memory_space<vmem>>, vector<1x14x14x16xbf16>
      %208 = vector.shape_cast %207 : vector<1x14x14x16xbf16> to vector<14x14x16xbf16>
      %209 = vector.shape_cast %205 : vector<14x14x16xbf16> to vector<1x14x14x16xbf16>
      tpu.vector_store %arg4[%206, %c0_185, %c0_186, %c0_187], %209 {strides = array<i32>} : memref<2x14x14x16xbf16, #tpu.memory_space<vmem>>, vector<1x14x14x16xbf16>,
    }
    %c2_i32_0 = arith.constant 2 : i32
    return
  }
  func.func @transform_0(%arg0: i32) -> (i32, i32) {
    %c0_i32 = arith.constant 0 : i32
    %c0_i32_0 = arith.constant 0 : i32
    return %arg0, %c0_i32 : i32, i32
  }
  func.func @transform_1(%arg0: i32) -> (i32, i32, i32) {
    %c0_i32 = arith.constant 0 : i32
    %c0_i32_0 = arith.constant 0 : i32
    %c0_i32_1 = arith.constant 0 : i32
    %c0_i32_2 = arith.constant 0 : i32
    return %c0_i32, %c0_i32_0, %c0_i32_1 : i32, i32, i32
  }
  func.func @transform_2(%arg0: i32) -> (i32, i32) {
    %c0_i32 = arith.constant 0 : i32
    %c0_i32_0 = arith.constant 0 : i32
    %c0_i32_1 = arith.constant 0 : i32
    return %c0_i32, %c0_i32_0 : i32, i32
  }
  func.func @transform_3(%arg0: i32) -> (i32, i32, i32, i32) {
    %c0_i32 = arith.constant 0 : i32
    %c0_i32_0 = arith.constant 0 : i32
    %c0_i32_1 = arith.constant 0 : i32
    %c0_i32_2 = arith.constant 0 : i32
    return %arg0, %c0_i32, %c0_i32_0, %c0_i32_1 : i32, i32, i32, i32
  }
}

module attributes {stable_mosaic.version = 11 : i64} {
  func.func @_conv_gemm_pool_kernel(%arg0: i32, %arg1: memref<576x80xbf16, #tpu.memory_space<vmem>>, %arg2: memref<5x80x32xbf16, #tpu.memory_space<vmem>>, %arg3: memref<1x32xf32, #tpu.memory_space<vmem>>, %arg4: memref<2x7x7x32xbf16, #tpu.memory_space<vmem>>, %arg5: memref<224x32xf32, #tpu.memory_space<vmem>>, %arg6: memref<14x32xf32, #tpu.memory_space<vmem>>, %arg7: memref<7x7x32xbf16, #tpu.memory_space<vmem>>) attributes {dimension_semantics = [#tpu.dimension_semantics<parallel>], iteration_bounds = array<i64: 1>, scalar_prefetch = 0 : i64, scratch_operands = 3 : i64, tpu.core_type = #tpu.core_type<tc>, window_params = [{transform_indices = @transform_0, window_bounds = array<i64: 576, 80>}, {pipeline_mode = #tpu.pipeline_mode<synchronous>, transform_indices = @transform_1, window_bounds = array<i64: 5, 80, 32>}, {pipeline_mode = #tpu.pipeline_mode<synchronous>, transform_indices = @transform_2, window_bounds = array<i64: 1, 32>}, {transform_indices = @transform_3, window_bounds = array<i64: 2, 7, 7, 32>}]} {
    %c0_i32 = arith.constant 0 : i32
    %c2_i32 = arith.constant 2 : i32
    %0 = arith.addi %c0_i32, %c2_i32 : i32
    %c1_i32 = arith.constant 1 : i32
    scf.for %arg8 = %c0_i32 to %0 step %c1_i32  : i32 {
      %c288_i32 = arith.constant 288 : i32
      %1 = arith.muli %arg8, %c288_i32 : i32
      %2 = tpu.assume_multiple %1, 8 : i32
      %c0_i32_1 = arith.constant 0 : i32
      %3 = arith.addi %2, %c0_i32_1 : i32
      %4 = arith.index_cast %3 : i32 to index
      %c0 = arith.constant 0 : index
      %5 = vector.load %arg1[%4, %c0] : memref<576x80xbf16, #tpu.memory_space<vmem>>, vector<224x80xbf16>
      %c0_2 = arith.constant 0 : index
      %c0_3 = arith.constant 0 : index
      %c0_4 = arith.constant 0 : index
      %6 = vector.load %arg2[%c0_2, %c0_3, %c0_4] : memref<5x80x32xbf16, #tpu.memory_space<vmem>>, vector<1x80x32xbf16>
      %7 = vector.shape_cast %6 : vector<1x80x32xbf16> to vector<80x32xbf16>
      %cst = arith.constant dense<0.000000e+00> : vector<224x32xf32>
      %8 = tpu.matmul %5, %7, %cst {dimension_numbers = #tpu.dot_dimension_numbers<[1], [0], [0], [1], [0, 0, 1, 1], [], []>} : vector<224x80xbf16>, vector<80x32xbf16>, vector<224x32xf32> -> vector<224x32xf32>
      %c16_i32 = arith.constant 16 : i32
      %9 = arith.addi %2, %c16_i32 : i32
      %10 = arith.index_cast %9 : i32 to index
      %c0_5 = arith.constant 0 : index
      %11 = vector.load %arg1[%10, %c0_5] : memref<576x80xbf16, #tpu.memory_space<vmem>>, vector<224x80xbf16>
      %c1 = arith.constant 1 : index
      %c0_6 = arith.constant 0 : index
      %c0_7 = arith.constant 0 : index
      %12 = vector.load %arg2[%c1, %c0_6, %c0_7] : memref<5x80x32xbf16, #tpu.memory_space<vmem>>, vector<1x80x32xbf16>
      %13 = vector.shape_cast %12 : vector<1x80x32xbf16> to vector<80x32xbf16>
      %cst_8 = arith.constant dense<0.000000e+00> : vector<224x32xf32>
      %14 = tpu.matmul %11, %13, %cst_8 {dimension_numbers = #tpu.dot_dimension_numbers<[1], [0], [0], [1], [0, 0, 1, 1], [], []>} : vector<224x80xbf16>, vector<80x32xbf16>, vector<224x32xf32> -> vector<224x32xf32>
      %15 = arith.addf %8, %14 : vector<224x32xf32>
      %c32_i32 = arith.constant 32 : i32
      %16 = arith.addi %2, %c32_i32 : i32
      %17 = arith.index_cast %16 : i32 to index
      %c0_9 = arith.constant 0 : index
      %18 = vector.load %arg1[%17, %c0_9] : memref<576x80xbf16, #tpu.memory_space<vmem>>, vector<224x80xbf16>
      %c2 = arith.constant 2 : index
      %c0_10 = arith.constant 0 : index
      %c0_11 = arith.constant 0 : index
      %19 = vector.load %arg2[%c2, %c0_10, %c0_11] : memref<5x80x32xbf16, #tpu.memory_space<vmem>>, vector<1x80x32xbf16>
      %20 = vector.shape_cast %19 : vector<1x80x32xbf16> to vector<80x32xbf16>
      %cst_12 = arith.constant dense<0.000000e+00> : vector<224x32xf32>
      %21 = tpu.matmul %18, %20, %cst_12 {dimension_numbers = #tpu.dot_dimension_numbers<[1], [0], [0], [1], [0, 0, 1, 1], [], []>} : vector<224x80xbf16>, vector<80x32xbf16>, vector<224x32xf32> -> vector<224x32xf32>
      %22 = arith.addf %15, %21 : vector<224x32xf32>
      %c48_i32 = arith.constant 48 : i32
      %23 = arith.addi %2, %c48_i32 : i32
      %24 = arith.index_cast %23 : i32 to index
      %c0_13 = arith.constant 0 : index
      %25 = vector.load %arg1[%24, %c0_13] : memref<576x80xbf16, #tpu.memory_space<vmem>>, vector<224x80xbf16>
      %c3 = arith.constant 3 : index
      %c0_14 = arith.constant 0 : index
      %c0_15 = arith.constant 0 : index
      %26 = vector.load %arg2[%c3, %c0_14, %c0_15] : memref<5x80x32xbf16, #tpu.memory_space<vmem>>, vector<1x80x32xbf16>
      %27 = vector.shape_cast %26 : vector<1x80x32xbf16> to vector<80x32xbf16>
      %cst_16 = arith.constant dense<0.000000e+00> : vector<224x32xf32>
      %28 = tpu.matmul %25, %27, %cst_16 {dimension_numbers = #tpu.dot_dimension_numbers<[1], [0], [0], [1], [0, 0, 1, 1], [], []>} : vector<224x80xbf16>, vector<80x32xbf16>, vector<224x32xf32> -> vector<224x32xf32>
      %29 = arith.addf %22, %28 : vector<224x32xf32>
      %c64_i32 = arith.constant 64 : i32
      %30 = arith.addi %2, %c64_i32 : i32
      %31 = arith.index_cast %30 : i32 to index
      %c0_17 = arith.constant 0 : index
      %32 = vector.load %arg1[%31, %c0_17] : memref<576x80xbf16, #tpu.memory_space<vmem>>, vector<224x80xbf16>
      %c4 = arith.constant 4 : index
      %c0_18 = arith.constant 0 : index
      %c0_19 = arith.constant 0 : index
      %33 = vector.load %arg2[%c4, %c0_18, %c0_19] : memref<5x80x32xbf16, #tpu.memory_space<vmem>>, vector<1x80x32xbf16>
      %34 = vector.shape_cast %33 : vector<1x80x32xbf16> to vector<80x32xbf16>
      %cst_20 = arith.constant dense<0.000000e+00> : vector<224x32xf32>
      %35 = tpu.matmul %32, %34, %cst_20 {dimension_numbers = #tpu.dot_dimension_numbers<[1], [0], [0], [1], [0, 0, 1, 1], [], []>} : vector<224x80xbf16>, vector<80x32xbf16>, vector<224x32xf32> -> vector<224x32xf32>
      %36 = arith.addf %29, %35 : vector<224x32xf32>
      %c0_21 = arith.constant 0 : index
      %c0_22 = arith.constant 0 : index
      %37 = vector.load %arg3[%c0_21, %c0_22] : memref<1x32xf32, #tpu.memory_space<vmem>>, vector<1x32xf32>
      %38 = vector.broadcast %37 : vector<1x32xf32> to vector<224x32xf32>
      %39 = arith.addf %36, %38 : vector<224x32xf32>
      %cst_23 = arith.constant 0.000000e+00 : f32
      %40 = vector.broadcast %cst_23 : f32 to vector<224x32xf32>
      %41 = arith.maximumf %39, %40 : vector<224x32xf32>
      %c0_24 = arith.constant 0 : index
      %c0_25 = arith.constant 0 : index
      %42 = vector.load %arg5[%c0_24, %c0_25] : memref<224x32xf32, #tpu.memory_space<vmem>>, vector<224x32xf32>
      tpu.vector_store %arg5[%c0_24, %c0_25], %41 {strides = array<i32>} : memref<224x32xf32, #tpu.memory_space<vmem>>, vector<224x32xf32>,
      %c0_26 = arith.constant 0 : index
      %c0_27 = arith.constant 0 : index
      %43 = vector.load %arg5[%c0_26, %c0_27] : memref<224x32xf32, #tpu.memory_space<vmem>>, vector<14x32xf32>
      %c16 = arith.constant 16 : index
      %c0_28 = arith.constant 0 : index
      %44 = vector.load %arg5[%c16, %c0_28] : memref<224x32xf32, #tpu.memory_space<vmem>>, vector<14x32xf32>
      %45 = arith.maximumf %43, %44 : vector<14x32xf32>
      %c0_29 = arith.constant 0 : index
      %c0_30 = arith.constant 0 : index
      %46 = vector.load %arg6[%c0_29, %c0_30] : memref<14x32xf32, #tpu.memory_space<vmem>>, vector<14x32xf32>
      tpu.vector_store %arg6[%c0_29, %c0_30], %45 {strides = array<i32>} : memref<14x32xf32, #tpu.memory_space<vmem>>, vector<14x32xf32>,
      %c0_31 = arith.constant 0 : index
      %c0_32 = arith.constant 0 : index
      %47 = tpu.strided_load %arg6[%c0_31, %c0_32] {strides = array<i32: 2, 1>} : memref<14x32xf32, #tpu.memory_space<vmem>>, vector<7x32xf32>
      %c1_33 = arith.constant 1 : index
      %c0_34 = arith.constant 0 : index
      %48 = tpu.strided_load %arg6[%c1_33, %c0_34] {strides = array<i32: 2, 1>} : memref<14x32xf32, #tpu.memory_space<vmem>>, vector<7x32xf32>
      %49 = arith.maximumf %47, %48 : vector<7x32xf32>
      %50 = arith.truncf %49 : vector<7x32xf32> to vector<7x32xbf16>
      %c0_35 = arith.constant 0 : index
      %c0_36 = arith.constant 0 : index
      %c0_37 = arith.constant 0 : index
      %51 = vector.load %arg7[%c0_35, %c0_36, %c0_37] : memref<7x7x32xbf16, #tpu.memory_space<vmem>>, vector<1x7x32xbf16>
      %52 = vector.shape_cast %51 : vector<1x7x32xbf16> to vector<7x32xbf16>
      %53 = vector.shape_cast %50 : vector<7x32xbf16> to vector<1x7x32xbf16>
      tpu.vector_store %arg7[%c0_35, %c0_36, %c0_37], %53 {strides = array<i32>} : memref<7x7x32xbf16, #tpu.memory_space<vmem>>, vector<1x7x32xbf16>,
      %c32 = arith.constant 32 : index
      %c0_38 = arith.constant 0 : index
      %54 = vector.load %arg5[%c32, %c0_38] : memref<224x32xf32, #tpu.memory_space<vmem>>, vector<14x32xf32>
      %c48 = arith.constant 48 : index
      %c0_39 = arith.constant 0 : index
      %55 = vector.load %arg5[%c48, %c0_39] : memref<224x32xf32, #tpu.memory_space<vmem>>, vector<14x32xf32>
      %56 = arith.maximumf %54, %55 : vector<14x32xf32>
      %c0_40 = arith.constant 0 : index
      %c0_41 = arith.constant 0 : index
      %57 = vector.load %arg6[%c0_40, %c0_41] : memref<14x32xf32, #tpu.memory_space<vmem>>, vector<14x32xf32>
      tpu.vector_store %arg6[%c0_40, %c0_41], %56 {strides = array<i32>} : memref<14x32xf32, #tpu.memory_space<vmem>>, vector<14x32xf32>,
      %c0_42 = arith.constant 0 : index
      %c0_43 = arith.constant 0 : index
      %58 = tpu.strided_load %arg6[%c0_42, %c0_43] {strides = array<i32: 2, 1>} : memref<14x32xf32, #tpu.memory_space<vmem>>, vector<7x32xf32>
      %c1_44 = arith.constant 1 : index
      %c0_45 = arith.constant 0 : index
      %59 = tpu.strided_load %arg6[%c1_44, %c0_45] {strides = array<i32: 2, 1>} : memref<14x32xf32, #tpu.memory_space<vmem>>, vector<7x32xf32>
      %60 = arith.maximumf %58, %59 : vector<7x32xf32>
      %61 = arith.truncf %60 : vector<7x32xf32> to vector<7x32xbf16>
      %c1_46 = arith.constant 1 : index
      %c0_47 = arith.constant 0 : index
      %c0_48 = arith.constant 0 : index
      %62 = vector.load %arg7[%c1_46, %c0_47, %c0_48] : memref<7x7x32xbf16, #tpu.memory_space<vmem>>, vector<1x7x32xbf16>
      %63 = vector.shape_cast %62 : vector<1x7x32xbf16> to vector<7x32xbf16>
      %64 = vector.shape_cast %61 : vector<7x32xbf16> to vector<1x7x32xbf16>
      tpu.vector_store %arg7[%c1_46, %c0_47, %c0_48], %64 {strides = array<i32>} : memref<7x7x32xbf16, #tpu.memory_space<vmem>>, vector<1x7x32xbf16>,
      %c64 = arith.constant 64 : index
      %c0_49 = arith.constant 0 : index
      %65 = vector.load %arg5[%c64, %c0_49] : memref<224x32xf32, #tpu.memory_space<vmem>>, vector<14x32xf32>
      %c80 = arith.constant 80 : index
      %c0_50 = arith.constant 0 : index
      %66 = vector.load %arg5[%c80, %c0_50] : memref<224x32xf32, #tpu.memory_space<vmem>>, vector<14x32xf32>
      %67 = arith.maximumf %65, %66 : vector<14x32xf32>
      %c0_51 = arith.constant 0 : index
      %c0_52 = arith.constant 0 : index
      %68 = vector.load %arg6[%c0_51, %c0_52] : memref<14x32xf32, #tpu.memory_space<vmem>>, vector<14x32xf32>
      tpu.vector_store %arg6[%c0_51, %c0_52], %67 {strides = array<i32>} : memref<14x32xf32, #tpu.memory_space<vmem>>, vector<14x32xf32>,
      %c0_53 = arith.constant 0 : index
      %c0_54 = arith.constant 0 : index
      %69 = tpu.strided_load %arg6[%c0_53, %c0_54] {strides = array<i32: 2, 1>} : memref<14x32xf32, #tpu.memory_space<vmem>>, vector<7x32xf32>
      %c1_55 = arith.constant 1 : index
      %c0_56 = arith.constant 0 : index
      %70 = tpu.strided_load %arg6[%c1_55, %c0_56] {strides = array<i32: 2, 1>} : memref<14x32xf32, #tpu.memory_space<vmem>>, vector<7x32xf32>
      %71 = arith.maximumf %69, %70 : vector<7x32xf32>
      %72 = arith.truncf %71 : vector<7x32xf32> to vector<7x32xbf16>
      %c2_57 = arith.constant 2 : index
      %c0_58 = arith.constant 0 : index
      %c0_59 = arith.constant 0 : index
      %73 = vector.load %arg7[%c2_57, %c0_58, %c0_59] : memref<7x7x32xbf16, #tpu.memory_space<vmem>>, vector<1x7x32xbf16>
      %74 = vector.shape_cast %73 : vector<1x7x32xbf16> to vector<7x32xbf16>
      %75 = vector.shape_cast %72 : vector<7x32xbf16> to vector<1x7x32xbf16>
      tpu.vector_store %arg7[%c2_57, %c0_58, %c0_59], %75 {strides = array<i32>} : memref<7x7x32xbf16, #tpu.memory_space<vmem>>, vector<1x7x32xbf16>,
      %c96 = arith.constant 96 : index
      %c0_60 = arith.constant 0 : index
      %76 = vector.load %arg5[%c96, %c0_60] : memref<224x32xf32, #tpu.memory_space<vmem>>, vector<14x32xf32>
      %c112 = arith.constant 112 : index
      %c0_61 = arith.constant 0 : index
      %77 = vector.load %arg5[%c112, %c0_61] : memref<224x32xf32, #tpu.memory_space<vmem>>, vector<14x32xf32>
      %78 = arith.maximumf %76, %77 : vector<14x32xf32>
      %c0_62 = arith.constant 0 : index
      %c0_63 = arith.constant 0 : index
      %79 = vector.load %arg6[%c0_62, %c0_63] : memref<14x32xf32, #tpu.memory_space<vmem>>, vector<14x32xf32>
      tpu.vector_store %arg6[%c0_62, %c0_63], %78 {strides = array<i32>} : memref<14x32xf32, #tpu.memory_space<vmem>>, vector<14x32xf32>,
      %c0_64 = arith.constant 0 : index
      %c0_65 = arith.constant 0 : index
      %80 = tpu.strided_load %arg6[%c0_64, %c0_65] {strides = array<i32: 2, 1>} : memref<14x32xf32, #tpu.memory_space<vmem>>, vector<7x32xf32>
      %c1_66 = arith.constant 1 : index
      %c0_67 = arith.constant 0 : index
      %81 = tpu.strided_load %arg6[%c1_66, %c0_67] {strides = array<i32: 2, 1>} : memref<14x32xf32, #tpu.memory_space<vmem>>, vector<7x32xf32>
      %82 = arith.maximumf %80, %81 : vector<7x32xf32>
      %83 = arith.truncf %82 : vector<7x32xf32> to vector<7x32xbf16>
      %c3_68 = arith.constant 3 : index
      %c0_69 = arith.constant 0 : index
      %c0_70 = arith.constant 0 : index
      %84 = vector.load %arg7[%c3_68, %c0_69, %c0_70] : memref<7x7x32xbf16, #tpu.memory_space<vmem>>, vector<1x7x32xbf16>
      %85 = vector.shape_cast %84 : vector<1x7x32xbf16> to vector<7x32xbf16>
      %86 = vector.shape_cast %83 : vector<7x32xbf16> to vector<1x7x32xbf16>
      tpu.vector_store %arg7[%c3_68, %c0_69, %c0_70], %86 {strides = array<i32>} : memref<7x7x32xbf16, #tpu.memory_space<vmem>>, vector<1x7x32xbf16>,
      %c128 = arith.constant 128 : index
      %c0_71 = arith.constant 0 : index
      %87 = vector.load %arg5[%c128, %c0_71] : memref<224x32xf32, #tpu.memory_space<vmem>>, vector<14x32xf32>
      %c144 = arith.constant 144 : index
      %c0_72 = arith.constant 0 : index
      %88 = vector.load %arg5[%c144, %c0_72] : memref<224x32xf32, #tpu.memory_space<vmem>>, vector<14x32xf32>
      %89 = arith.maximumf %87, %88 : vector<14x32xf32>
      %c0_73 = arith.constant 0 : index
      %c0_74 = arith.constant 0 : index
      %90 = vector.load %arg6[%c0_73, %c0_74] : memref<14x32xf32, #tpu.memory_space<vmem>>, vector<14x32xf32>
      tpu.vector_store %arg6[%c0_73, %c0_74], %89 {strides = array<i32>} : memref<14x32xf32, #tpu.memory_space<vmem>>, vector<14x32xf32>,
      %c0_75 = arith.constant 0 : index
      %c0_76 = arith.constant 0 : index
      %91 = tpu.strided_load %arg6[%c0_75, %c0_76] {strides = array<i32: 2, 1>} : memref<14x32xf32, #tpu.memory_space<vmem>>, vector<7x32xf32>
      %c1_77 = arith.constant 1 : index
      %c0_78 = arith.constant 0 : index
      %92 = tpu.strided_load %arg6[%c1_77, %c0_78] {strides = array<i32: 2, 1>} : memref<14x32xf32, #tpu.memory_space<vmem>>, vector<7x32xf32>
      %93 = arith.maximumf %91, %92 : vector<7x32xf32>
      %94 = arith.truncf %93 : vector<7x32xf32> to vector<7x32xbf16>
      %c4_79 = arith.constant 4 : index
      %c0_80 = arith.constant 0 : index
      %c0_81 = arith.constant 0 : index
      %95 = vector.load %arg7[%c4_79, %c0_80, %c0_81] : memref<7x7x32xbf16, #tpu.memory_space<vmem>>, vector<1x7x32xbf16>
      %96 = vector.shape_cast %95 : vector<1x7x32xbf16> to vector<7x32xbf16>
      %97 = vector.shape_cast %94 : vector<7x32xbf16> to vector<1x7x32xbf16>
      tpu.vector_store %arg7[%c4_79, %c0_80, %c0_81], %97 {strides = array<i32>} : memref<7x7x32xbf16, #tpu.memory_space<vmem>>, vector<1x7x32xbf16>,
      %c160 = arith.constant 160 : index
      %c0_82 = arith.constant 0 : index
      %98 = vector.load %arg5[%c160, %c0_82] : memref<224x32xf32, #tpu.memory_space<vmem>>, vector<14x32xf32>
      %c176 = arith.constant 176 : index
      %c0_83 = arith.constant 0 : index
      %99 = vector.load %arg5[%c176, %c0_83] : memref<224x32xf32, #tpu.memory_space<vmem>>, vector<14x32xf32>
      %100 = arith.maximumf %98, %99 : vector<14x32xf32>
      %c0_84 = arith.constant 0 : index
      %c0_85 = arith.constant 0 : index
      %101 = vector.load %arg6[%c0_84, %c0_85] : memref<14x32xf32, #tpu.memory_space<vmem>>, vector<14x32xf32>
      tpu.vector_store %arg6[%c0_84, %c0_85], %100 {strides = array<i32>} : memref<14x32xf32, #tpu.memory_space<vmem>>, vector<14x32xf32>,
      %c0_86 = arith.constant 0 : index
      %c0_87 = arith.constant 0 : index
      %102 = tpu.strided_load %arg6[%c0_86, %c0_87] {strides = array<i32: 2, 1>} : memref<14x32xf32, #tpu.memory_space<vmem>>, vector<7x32xf32>
      %c1_88 = arith.constant 1 : index
      %c0_89 = arith.constant 0 : index
      %103 = tpu.strided_load %arg6[%c1_88, %c0_89] {strides = array<i32: 2, 1>} : memref<14x32xf32, #tpu.memory_space<vmem>>, vector<7x32xf32>
      %104 = arith.maximumf %102, %103 : vector<7x32xf32>
      %105 = arith.truncf %104 : vector<7x32xf32> to vector<7x32xbf16>
      %c5 = arith.constant 5 : index
      %c0_90 = arith.constant 0 : index
      %c0_91 = arith.constant 0 : index
      %106 = vector.load %arg7[%c5, %c0_90, %c0_91] : memref<7x7x32xbf16, #tpu.memory_space<vmem>>, vector<1x7x32xbf16>
      %107 = vector.shape_cast %106 : vector<1x7x32xbf16> to vector<7x32xbf16>
      %108 = vector.shape_cast %105 : vector<7x32xbf16> to vector<1x7x32xbf16>
      tpu.vector_store %arg7[%c5, %c0_90, %c0_91], %108 {strides = array<i32>} : memref<7x7x32xbf16, #tpu.memory_space<vmem>>, vector<1x7x32xbf16>,
      %c192 = arith.constant 192 : index
      %c0_92 = arith.constant 0 : index
      %109 = vector.load %arg5[%c192, %c0_92] : memref<224x32xf32, #tpu.memory_space<vmem>>, vector<14x32xf32>
      %c208 = arith.constant 208 : index
      %c0_93 = arith.constant 0 : index
      %110 = vector.load %arg5[%c208, %c0_93] : memref<224x32xf32, #tpu.memory_space<vmem>>, vector<14x32xf32>
      %111 = arith.maximumf %109, %110 : vector<14x32xf32>
      %c0_94 = arith.constant 0 : index
      %c0_95 = arith.constant 0 : index
      %112 = vector.load %arg6[%c0_94, %c0_95] : memref<14x32xf32, #tpu.memory_space<vmem>>, vector<14x32xf32>
      tpu.vector_store %arg6[%c0_94, %c0_95], %111 {strides = array<i32>} : memref<14x32xf32, #tpu.memory_space<vmem>>, vector<14x32xf32>,
      %c0_96 = arith.constant 0 : index
      %c0_97 = arith.constant 0 : index
      %113 = tpu.strided_load %arg6[%c0_96, %c0_97] {strides = array<i32: 2, 1>} : memref<14x32xf32, #tpu.memory_space<vmem>>, vector<7x32xf32>
      %c1_98 = arith.constant 1 : index
      %c0_99 = arith.constant 0 : index
      %114 = tpu.strided_load %arg6[%c1_98, %c0_99] {strides = array<i32: 2, 1>} : memref<14x32xf32, #tpu.memory_space<vmem>>, vector<7x32xf32>
      %115 = arith.maximumf %113, %114 : vector<7x32xf32>
      %116 = arith.truncf %115 : vector<7x32xf32> to vector<7x32xbf16>
      %c6 = arith.constant 6 : index
      %c0_100 = arith.constant 0 : index
      %c0_101 = arith.constant 0 : index
      %117 = vector.load %arg7[%c6, %c0_100, %c0_101] : memref<7x7x32xbf16, #tpu.memory_space<vmem>>, vector<1x7x32xbf16>
      %118 = vector.shape_cast %117 : vector<1x7x32xbf16> to vector<7x32xbf16>
      %119 = vector.shape_cast %116 : vector<7x32xbf16> to vector<1x7x32xbf16>
      tpu.vector_store %arg7[%c6, %c0_100, %c0_101], %119 {strides = array<i32>} : memref<7x7x32xbf16, #tpu.memory_space<vmem>>, vector<1x7x32xbf16>,
      %c0_102 = arith.constant 0 : index
      %c0_103 = arith.constant 0 : index
      %c0_104 = arith.constant 0 : index
      %120 = vector.load %arg7[%c0_102, %c0_103, %c0_104] : memref<7x7x32xbf16, #tpu.memory_space<vmem>>, vector<7x7x32xbf16>
      %121 = arith.index_cast %arg8 : i32 to index
      %c0_105 = arith.constant 0 : index
      %c0_106 = arith.constant 0 : index
      %c0_107 = arith.constant 0 : index
      %122 = vector.load %arg4[%121, %c0_105, %c0_106, %c0_107] : memref<2x7x7x32xbf16, #tpu.memory_space<vmem>>, vector<1x7x7x32xbf16>
      %123 = vector.shape_cast %122 : vector<1x7x7x32xbf16> to vector<7x7x32xbf16>
      %124 = vector.shape_cast %120 : vector<7x7x32xbf16> to vector<1x7x7x32xbf16>
      tpu.vector_store %arg4[%121, %c0_105, %c0_106, %c0_107], %124 {strides = array<i32>} : memref<2x7x7x32xbf16, #tpu.memory_space<vmem>>, vector<1x7x7x32xbf16>,
    }
    %c2_i32_0 = arith.constant 2 : i32
    return
  }
  func.func @transform_0(%arg0: i32) -> (i32, i32) {
    %c0_i32 = arith.constant 0 : i32
    %c0_i32_0 = arith.constant 0 : i32
    return %arg0, %c0_i32 : i32, i32
  }
  func.func @transform_1(%arg0: i32) -> (i32, i32, i32) {
    %c0_i32 = arith.constant 0 : i32
    %c0_i32_0 = arith.constant 0 : i32
    %c0_i32_1 = arith.constant 0 : i32
    %c0_i32_2 = arith.constant 0 : i32
    return %c0_i32, %c0_i32_0, %c0_i32_1 : i32, i32, i32
  }
  func.func @transform_2(%arg0: i32) -> (i32, i32) {
    %c0_i32 = arith.constant 0 : i32
    %c0_i32_0 = arith.constant 0 : i32
    %c0_i32_1 = arith.constant 0 : i32
    return %c0_i32, %c0_i32_0 : i32, i32
  }
  func.func @transform_3(%arg0: i32) -> (i32, i32, i32, i32) {
    %c0_i32 = arith.constant 0 : i32
    %c0_i32_0 = arith.constant 0 : i32
    %c0_i32_1 = arith.constant 0 : i32
    %c0_i32_2 = arith.constant 0 : i32
    return %arg0, %c0_i32, %c0_i32_0, %c0_i32_1 : i32, i32, i32, i32
  }
}

module attributes {stable_mosaic.version = 11 : i64} {
  func.func @_linear_kernel(%arg0: i32, %arg1: memref<2x1568xbf16, #tpu.memory_space<vmem>>, %arg2: memref<1568x128xbf16, #tpu.memory_space<vmem>>, %arg3: memref<1x128xf32, #tpu.memory_space<vmem>>, %arg4: memref<2x128xf32, #tpu.memory_space<vmem>>) attributes {dimension_semantics = [#tpu.dimension_semantics<parallel>], iteration_bounds = array<i64: 1>, scalar_prefetch = 0 : i64, scratch_operands = 0 : i64, tpu.core_type = #tpu.core_type<tc>, window_params = [{transform_indices = @transform_0, window_bounds = array<i64: 2, 1568>}, {pipeline_mode = #tpu.pipeline_mode<synchronous>, transform_indices = @transform_1, window_bounds = array<i64: 1568, 128>}, {pipeline_mode = #tpu.pipeline_mode<synchronous>, transform_indices = @transform_2, window_bounds = array<i64: 1, 128>}, {transform_indices = @transform_3, window_bounds = array<i64: 2, 128>}]} {
    %c0 = arith.constant 0 : index
    %c0_0 = arith.constant 0 : index
    %0 = vector.load %arg1[%c0, %c0_0] : memref<2x1568xbf16, #tpu.memory_space<vmem>>, vector<2x1568xbf16>
    %c0_1 = arith.constant 0 : index
    %c0_2 = arith.constant 0 : index
    %1 = vector.load %arg2[%c0_1, %c0_2] : memref<1568x128xbf16, #tpu.memory_space<vmem>>, vector<1568x128xbf16>
    %cst = arith.constant dense<0.000000e+00> : vector<2x128xf32>
    %2 = tpu.matmul %0, %1, %cst {dimension_numbers = #tpu.dot_dimension_numbers<[1], [0], [0], [1], [0, 0, 1, 1], [], []>} : vector<2x1568xbf16>, vector<1568x128xbf16>, vector<2x128xf32> -> vector<2x128xf32>
    %c0_3 = arith.constant 0 : index
    %c0_4 = arith.constant 0 : index
    %3 = vector.load %arg3[%c0_3, %c0_4] : memref<1x128xf32, #tpu.memory_space<vmem>>, vector<1x128xf32>
    %4 = vector.broadcast %3 : vector<1x128xf32> to vector<2x128xf32>
    %5 = arith.addf %2, %4 : vector<2x128xf32>
    %c0_5 = arith.constant 0 : index
    %c0_6 = arith.constant 0 : index
    %6 = vector.load %arg4[%c0_5, %c0_6] : memref<2x128xf32, #tpu.memory_space<vmem>>, vector<2x128xf32>
    tpu.vector_store %arg4[%c0_5, %c0_6], %5 {strides = array<i32>} : memref<2x128xf32, #tpu.memory_space<vmem>>, vector<2x128xf32>,
    return
  }
  func.func @transform_0(%arg0: i32) -> (i32, i32) {
    %c0_i32 = arith.constant 0 : i32
    %c0_i32_0 = arith.constant 0 : i32
    return %arg0, %c0_i32 : i32, i32
  }
  func.func @transform_1(%arg0: i32) -> (i32, i32) {
    %c0_i32 = arith.constant 0 : i32
    %c0_i32_0 = arith.constant 0 : i32
    %c0_i32_1 = arith.constant 0 : i32
    return %c0_i32, %c0_i32_0 : i32, i32
  }
  func.func @transform_2(%arg0: i32) -> (i32, i32) {
    %c0_i32 = arith.constant 0 : i32
    %c0_i32_0 = arith.constant 0 : i32
    %c0_i32_1 = arith.constant 0 : i32
    return %c0_i32, %c0_i32_0 : i32, i32
  }
  func.func @transform_3(%arg0: i32) -> (i32, i32) {
    %c0_i32 = arith.constant 0 : i32
    %c0_i32_0 = arith.constant 0 : i32
    return %arg0, %c0_i32 : i32, i32
  }
}

</mosaic_0001>

<bundles_post_ra>
// kernel: cnn_forward.3
= control target key start
LH: loop header
LB: loop body
LE: loop exit
PB: predicated region body
PF: predicated region fallthrough
CT: control target
= control target key end

     0   :  { %s2123_s12 = smov 0   ;;  %s2716_s0 = inlined_call_operand.vmem [shape: bf16[1792,25], index: 0, kind: input, shape index: {}]   ;;  %s2717_s1 = inlined_call_operand.vmem [shape: bf16[1,25,16], index: 1, kind: input, shape index: {}]   ;;  %s2718_s2 = inlined_call_operand.vmem [shape: f32[1,16], index: 2, kind: input, shape index: {}]   ;;  %s2719_s3 = inlined_call_operand.vmem [shape: bf16[2,14,14,16], index: 3, kind: output, shape index: {}]  }
   0x1 LB: > { %v1758_v0 = vld [vmem:[%s2717_s1 + $0x8] sm:$0xf]  ;;  %v2027_v1 = vld [vmem:[%s2717_s1 + $0x8] sm:$0x10]  ;;  %vm186_vm0 = vcmask 1043456   ;;  %vm187_vm1 = vcmask 1044480   ;;  %s2100_s12 = sphi %s2123_s12, %s20_s12  }
   0x2   : > { %v1759_v2 = vor.u32 %v2027_v1, %v1758_v0  ;;  %v1837_v3 = vld [vmem:[%s2717_s1 + $0x8] sm:$0xf]  ;;  %v2043_v4 = vld [vmem:[%s2717_s1 + $0x8] sm:$0x10]  ;;  %v2102_v5 = vmov 65535   ;;  %s2147_s25 = smul.u32 896, %s2100_s12 }
   0x3   : > { %v188_v6 = vsel %vm186_vm0, 4294967295, %v2102_v5  ;;  %v1838_v7 = vor.u32 %v2043_v4, %v1837_v3  ;;  %v1916_v8 = vld [vmem:[%s2717_s1 + $0x8] sm:$0xf]  ;;  %v2059_v9 = vld [vmem:[%s2717_s1 + $0x8] sm:$0x10]  ;;  %v2026_v18 = vld [vmem:[%s2717_s1] sm:$0xff] }
   0x4   : > { %v189_v10 = vsel %vm187_vm1, %v188_v6, 0  ;;  %v1917_v11 = vor.u32 %v2059_v9, %v1916_v8  ;;  %v1995_v12 = vld [vmem:[%s2717_s1 + $0x8] sm:$0xf]  ;;  %v2075_v15 = vld [vmem:[%s2717_s1 + $0x8] sm:$0x10]  ;;  %s22_s30 = sshra.s32 %s2147_s25, 3 }
   0x5   : > { %v191_v13 = vand.u32 %v1759_v2, %v189_v10  ;;  %v494_v14 = vand.u32 %v1838_v7, %v189_v10  ;;  %s329_s4 = sadd.s32 224, %s2147_s25  ;;  %v1996_v17 = vor.u32 %v2075_v15, %v1995_v12  ;;  %v2042_v19 = vld [vmem:[%s2717_s1] sm:$0xff]  ;;  %s1695_s9 = sshll.u32 %s22_s30, 2  ;;  %vm143_vm2 = vcmask 203776  }
   0x6   : > { %v796_v16 = vand.u32 %v1917_v11, %v189_v10  ;;  %v2058_v20 = vld [vmem:[%s2717_s1] sm:$0xff]  ;;  %s2169_s15 = scalar_lea.vmem %s2716_s0, %s1695_s9  ;;  %s330_s16 = sshra.s32 %s329_s4, 3  ;;  %vm300_vm3 = vcmask 130048   ;;  %vm1250_vm4 = vcmask 125952   ;;  %vm1264_vm5 = vcmask 124928  }
   0x7   : > { %199 = vmatpush.bf16.msra.mxu0 %v191_v13  ;;  %502 = vmatpush.bf16.msra.mxu1 %v494_v14  ;;  %v1098_v21 = vand.u32 %v1996_v17, %v189_v10  ;;  %s1774_s17 = sshll.u32 %s330_s16, 2  ;;  %s631_s18 = sadd.s32 448, %s2147_s25  ;;  %v2012_v22 = vld [vmem:[%s2169_s15] sm:$0xff]  ;;  %v2013_v27 = vld [vmem:[%s2169_s15 + $0x8] sm:$0xff]  ;;  %v2014_v31 = vld [vmem:[%s2169_s15 + $0x10] sm:$0xff] }
   0x8   : > { %804 = vmatpush.bf16.msra.mxu2 %v796_v16  ;;  %s2176_s21 = scalar_lea.vmem %s2716_s0, %s1774_s17  ;;  %s632_s22 = sshra.s32 %s631_s18, 3  ;;  %v2074_v24 = vld [vmem:[%s2717_s1] sm:$0xff]  ;;  %v2015_v35 = vld [vmem:[%s2169_s15 + $0x18] sm:$0xff]  ;;  %v2017_v43 = vld [vmem:[%s2169_s15 + $0x28] sm:$0xff] }
   0x9   : > { %1106 = vmatpush.bf16.msra.mxu3 %v1098_v21  ;;  %v2028_v23 = vld [vmem:[%s2176_s21] sm:$0xff]  ;;  %s1853_s23 = sshll.u32 %s632_s22, 2  ;;  %s933_s27 = sadd.s32 672, %s2147_s25  ;;  %v2029_v28 = vld [vmem:[%s2176_s21 + $0x8] sm:$0xff]  ;;  %v2030_v32 = vld [vmem:[%s2176_s21 + $0x10] sm:$0xff] }
   0xa   : > { %s2186_s30 = scalar_lea.vmem %s2716_s0, %s1853_s23  ;;  %s934_s4 = sshra.s32 %s933_s27, 3  ;;  %v2031_v36 = vld [vmem:[%s2176_s21 + $0x18] sm:$0xff]  ;;  %v2016_v39 = vld [vmem:[%s2169_s15 + $0x20] sm:$0xff]  ;;  %v2033_v44 = vld [vmem:[%s2176_s21 + $0x28] sm:$0xff] }
   0xb   : > { %200 = vmatpush.bf16.msra.mxu0 %v2026_v18  ;;  %503 = vmatpush.bf16.msra.mxu1 %v2042_v19  ;;  %v2044_v25 = vld [vmem:[%s2186_s30] sm:$0xff]  ;;  %s1932_s5 = sshll.u32 %s934_s4, 2  ;;  %v2045_v29 = vld [vmem:[%s2186_s30 + $0x8] sm:$0xff]  ;;  %v2046_v33 = vld [vmem:[%s2186_s30 + $0x10] sm:$0xff]  ;;  %s2076_s18 = smul.u32 112, %s2100_s12 }
   0xc   : > { %805 = vmatpush.bf16.msra.mxu2 %v2058_v20  ;;  %s2194_s25 = scalar_lea.vmem %s2716_s0, %s1932_s5  ;;  %v2047_v37 = vld [vmem:[%s2186_s30 + $0x18] sm:$0xff]  ;;  %v2032_v40 = vld [vmem:[%s2176_s21 + $0x20] sm:$0xff]  ;;  %v2049_v45 = vld [vmem:[%s2186_s30 + $0x28] sm:$0xff]  ;;  %s20_s12 = sadd.s32 1, %s2100_s12  }
   0xd   : > { %1107 = vmatpush.bf16.msra.mxu3 %v2074_v24  ;;  %v2060_v26 = vld [vmem:[%s2194_s25] sm:$0xff]  ;;  %v2061_v30 = vld [vmem:[%s2194_s25 + $0x8] sm:$0xff]  ;;  %v2062_v34 = vld [vmem:[%s2194_s25 + $0x10] sm:$0xff]  ;;  %s2397_s22 = scalar_lea.vmem %s2719_s3, %s2076_s18  ;;  %p17_p0 = scmp.ge.s32.totalorder %s20_s12, 2  }
   0xe   : > { %1760 = vmatmul.msk.bf16.vlgmr.msra.gmra.mxu0 %vm143_vm2, %v2012_v22  ;;  %1839 = vmatmul.msk.bf16.vlgmr.msra.gmra.mxu1 %vm143_vm2, %v2028_v23  ;;  %v2063_v38 = vld [vmem:[%s2194_s25 + $0x18] sm:$0xff]  ;;  %v2048_v41 = vld [vmem:[%s2186_s30 + $0x20] sm:$0xff]  ;;  %v2065_v46 = vld [vmem:[%s2194_s25 + $0x28] sm:$0xff] }
   0xf   : > { %1918 = vmatmul.msk.bf16.vlgmr.msra.gmra.mxu2 %vm143_vm2, %v2044_v25  ;;  %v2064_v42 = vld [vmem:[%s2194_s25 + $0x20] sm:$0xff]  ;;  %v2018_v47 = vld [vmem:[%s2169_s15 + $0x30] sm:$0xff]  ;;  %v2019_v51 = vld [vmem:[%s2169_s15 + $0x38] sm:$0xff] }
  0x10   : > { %1997 = vmatmul.msk.bf16.vlgmr.msra.gmra.mxu3 %vm143_vm2, %v2060_v26  ;;  %v2034_v48 = vld [vmem:[%s2176_s21 + $0x30] sm:$0xff]  ;;  %v2035_v52 = vld [vmem:[%s2176_s21 + $0x38] sm:$0xff]  ;;  %v2258_v55 = vld [vmem:[%s2718_s2] ss:$0 sm:$0xff] }
  0x11   : > { %v2050_v49 = vld [vmem:[%s2186_s30 + $0x30] sm:$0xff]  ;;  %v2051_v53 = vld [vmem:[%s2186_s30 + $0x38] sm:$0xff]  ;;  %v2263_v56 = vld [vmem:[%s2718_s2] ss:$0 sm:$0xff] }
  0x12   : > { %v2066_v50 = vld [vmem:[%s2194_s25 + $0x30] sm:$0xff]  ;;  %v2067_v54 = vld [vmem:[%s2194_s25 + $0x38] sm:$0xff]  ;;  %v2020_v57 = vld [vmem:[%s2169_s15 + $0x40] sm:$0xff] }
  0x13   : > { %v2036_v58 = vld [vmem:[%s2176_s21 + $0x40] sm:$0xff]  ;;  %v2021_v15 = vld [vmem:[%s2169_s15 + $0x48] sm:$0xff] }
  0x14   : > { %v2052_v61 = vld [vmem:[%s2186_s30 + $0x40] sm:$0xff]  ;;  %v2037_v16 = vld [vmem:[%s2176_s21 + $0x48] sm:$0xff] }
  0x15   : > { %v2276_v2 = vld [vmem:[%s2718_s2] ss:$0 sm:$0xff]  ;;  %v2053_v20 = vld [vmem:[%s2186_s30 + $0x48] sm:$0xff] }
  0x16   : > { %v2068_v3 = vld [vmem:[%s2194_s25 + $0x40] sm:$0xff] }
  0x1e   : > { %1761 = vmatmul.msk.bf16.gmra.mxu0 %vm143_vm2, %v2013_v27  ;;  %1840 = vmatmul.msk.bf16.gmra.mxu1 %vm143_vm2, %v2029_v28  ;;  %v2069_v27 = vld [vmem:[%s2194_s25 + $0x48] sm:$0xff] }
  0x1f   : > { %1919 = vmatmul.msk.bf16.gmra.mxu2 %vm143_vm2, %v2045_v29 }
  0x20   : > { %1998 = vmatmul.msk.bf16.gmra.mxu3 %vm143_vm2, %v2061_v30 }
  0x2e   : > { %1762 = vmatmul.msk.bf16.gmra.mxu0 %vm143_vm2, %v2014_v31  ;;  %1841 = vmatmul.msk.bf16.gmra.mxu1 %vm143_vm2, %v2030_v32 }
  0x2f   : > { %1920 = vmatmul.msk.bf16.gmra.mxu2 %vm143_vm2, %v2046_v33 }
  0x30   : > { %1999 = vmatmul.msk.bf16.gmra.mxu3 %vm143_vm2, %v2062_v34 }
  0x3e   : > { %1763 = vmatmul.msk.bf16.gmra.mxu0 %vm143_vm2, %v2015_v35  ;;  %1842 = vmatmul.msk.bf16.gmra.mxu1 %vm143_vm2, %v2031_v36 }
  0x3f   : > { %1921 = vmatmul.msk.bf16.gmra.mxu2 %vm143_vm2, %v2047_v37 }
  0x40   : > { %2000 = vmatmul.msk.bf16.gmra.mxu3 %vm143_vm2, %v2063_v38 }
  0x4e   : > { %1764 = vmatmul.msk.bf16.gmra.mxu0 %vm143_vm2, %v2016_v39  ;;  %1843 = vmatmul.msk.bf16.gmra.mxu1 %vm143_vm2, %v2032_v40  ;;  %v2022_v39 = vld [vmem:[%s2169_s15 + $0x50] sm:$0xff] }
  0x4f   : > { %1922 = vmatmul.msk.bf16.gmra.mxu2 %vm143_vm2, %v2048_v41  ;;  %v2038_v40 = vld [vmem:[%s2176_s21 + $0x50] sm:$0xff] }
  0x50   : > { %2001 = vmatmul.msk.bf16.gmra.mxu3 %vm143_vm2, %v2064_v42 }
  0x5e   : > { %1765 = vmatmul.msk.bf16.gmra.mxu0 %vm143_vm2, %v2017_v43  ;;  %1844 = vmatmul.msk.bf16.gmra.mxu1 %vm143_vm2, %v2033_v44  ;;  %v2054_v44 = vld [vmem:[%s2186_s30 + $0x50] sm:$0xff] }
  0x5f   : > { %1923 = vmatmul.msk.bf16.gmra.mxu2 %vm143_vm2, %v2049_v45 }
  0x60   : > { %2002 = vmatmul.msk.bf16.gmra.mxu3 %vm143_vm2, %v2065_v46 }
  0x6e   : > { %1766 = vmatmul.msk.bf16.gmra.mxu0 %vm143_vm2, %v2018_v47  ;;  %1845 = vmatmul.msk.bf16.gmra.mxu1 %vm143_vm2, %v2034_v48 }
  0x6f   : > { %1924 = vmatmul.msk.bf16.gmra.mxu2 %vm143_vm2, %v2050_v49 }
  0x70   : > { %2003 = vmatmul.msk.bf16.gmra.mxu3 %vm143_vm2, %v2066_v50 }
  0x7e   : > { %1767 = vmatmul.msk.bf16.gmra.mxu0 %vm143_vm2, %v2019_v51  ;;  %1846 = vmatmul.msk.bf16.gmra.mxu1 %vm143_vm2, %v2035_v52  ;;  %v2070_v51 = vld [vmem:[%s2194_s25 + $0x50] sm:$0xff] }
  0x7f   : > { %1925 = vmatmul.msk.bf16.gmra.mxu2 %vm143_vm2, %v2051_v53 }
  0x80   : > { %2004 = vmatmul.msk.bf16.gmra.mxu3 %vm143_vm2, %v2067_v54 }
  0x8b   : > { %v202_v59 = vpop.f32.mrf.mxu0  ;;  %v505_v60 = vpop.f32.mrf.mxu1 }
  0x8c   : > { %v203_v62 = vadd.f32 %v2258_v55, %v202_v59  ;;  %v506_v63 = vadd.f32 %v2263_v56, %v505_v60 }
  0x8e   : > { %v272_v0 = vmax.f32 %v203_v62, 0.0  ;;  %v575_v1 = vmax.f32 %v506_v63, 0.0  ;;  %1768 = vmatmul.msk.bf16.gmra.mxu0 %vm143_vm2, %v2020_v57  ;;  %1847 = vmatmul.msk.bf16.gmra.mxu1 %vm143_vm2, %v2036_v58 }
  0x8f   : > { %1926 = vmatmul.msk.bf16.gmra.mxu2 %vm143_vm2, %v2052_v61 }
  0x90   : > { %301 = vst.msk [vmem:[#allocation2] sm:$0xff] %vm300_vm3, %v272_v0  ;;  %2005 = vmatmul.msk.bf16.gmra.mxu3 %vm143_vm2, %v2068_v3  ;;  %v2334_v0 = vld [vmem:[%s2718_s2] ss:$0 sm:$0xff] }
  0x91   : > { %603 = vst.msk [vmem:[#allocation2 + $0xe0] sm:$0xff] %vm300_vm3, %v575_v1 }
  0x92   : > { %v807_v4 = vpop.f32.mrf.mxu2 }
  0x93   : > { %v808_v5 = vadd.f32 %v2276_v2, %v807_v4  ;;  %v204_v6 = vpop.f32.mrf.mxu0  ;;  %v507_v7 = vpop.f32.mrf.mxu1 }
  0x94   : > { %v205_v8 = vadd.f32 %v2258_v55, %v204_v6  ;;  %v508_v9 = vadd.f32 %v2263_v56, %v507_v7  ;;  %v2285_v11 = vpop.f32.mrf.mxu3 }
  0x95   : > { %v877_v10 = vmax.f32 %v808_v5, 0.0  ;;  %v1110_v5 = vadd.f32 %v2334_v0, %v2285_v11 }
  0x96   : > { %v273_v12 = vmax.f32 %v205_v8, 0.0  ;;  %v576_v13 = vmax.f32 %v508_v9, 0.0 }
  0x97   : > { %905 = vst.msk [vmem:[#allocation2 + $0x1c0] sm:$0xff] %vm300_vm3, %v877_v10  ;;  %v1235_v1 = vld [vmem:[#allocation2] sm:$0xff]  ;;  %v1179_v7 = vmax.f32 %v1110_v5, 0.0  ;;  %v2023_v10 = vld [vmem:[%s2169_s15 + $0x58] sm:$0xff] }
  0x98   : > { %302 = vst.msk [vmem:[#allocation2 + $0x8] sm:$0xff] %vm300_vm3, %v273_v12  ;;  %v2039_v12 = vld [vmem:[%s2176_s21 + $0x58] sm:$0xff] }
  0x99   : > { %604 = vst.msk [vmem:[#allocation2 + $0xe8] sm:$0xff] %vm300_vm3, %v576_v13 }
  0x9a   : > { %v809_v14 = vpop.f32.mrf.mxu2  ;;  %1207 = vst.msk [vmem:[#allocation2 + $0x2a0] sm:$0xff] %vm300_vm3, %v1179_v7  ;;  %v2072_v7 = vld [vmem:[%s2194_s25 + $0x60] sm:$0xff] }
  0x9b   : > { %v810_v17 = vadd.f32 %v2276_v2, %v809_v14  ;;  %v207_v18 = vpop.f32.mrf.mxu0  ;;  %v510_v19 = vpop.f32.mrf.mxu1 }
  0x9c   : > { %v208_v21 = vadd.f32 %v2258_v55, %v207_v18  ;;  %v511_v22 = vadd.f32 %v2263_v56, %v510_v19  ;;  %v1111_v24 = vpop.f32.mrf.mxu3 }
  0x9d   : > { %v878_v23 = vmax.f32 %v810_v17, 0.0  ;;  %v1112_v6 = vadd.f32 %v2334_v0, %v1111_v24 }
  0x9e   : > { %v274_v25 = vmax.f32 %v208_v21, 0.0  ;;  %v577_v26 = vmax.f32 %v511_v22, 0.0  ;;  %1769 = vmatmul.msk.bf16.gmra.mxu0 %vm143_vm2, %v2021_v15  ;;  %1848 = vmatmul.msk.bf16.gmra.mxu1 %vm143_vm2, %v2037_v16  ;;  %v2055_v16 = vld [vmem:[%s2186_s30 + $0x58] sm:$0xff] }
  0x9f   : > { %906 = vst.msk [vmem:[#allocation2 + $0x1c8] sm:$0xff] %vm300_vm3, %v878_v23  ;;  %1927 = vmatmul.msk.bf16.gmra.mxu2 %vm143_vm2, %v2053_v20  ;;  %v1180_v9 = vmax.f32 %v1112_v6, 0.0  ;;  %v1236_v22 = vld [vmem:[#allocation2 + $0x8] sm:$0xff] }
  0xa0   : > { %303 = vst.msk [vmem:[#allocation2 + $0x10] sm:$0xff] %vm300_vm3, %v274_v25  ;;  %2006 = vmatmul.msk.bf16.gmra.mxu3 %vm143_vm2, %v2069_v27  ;;  %v2071_v25 = vld [vmem:[%s2194_s25 + $0x58] sm:$0xff] }
  0xa1   : > { %605 = vst.msk [vmem:[#allocation2 + $0xf0] sm:$0xff] %vm300_vm3, %v577_v26 }
  0xa2   : > { %v812_v28 = vpop.f32.mrf.mxu2  ;;  %1208 = vst.msk [vmem:[#allocation2 + $0x2a8] sm:$0xff] %vm300_vm3, %v1180_v9 }
  0xa3   : > { %v813_v29 = vadd.f32 %v2276_v2, %v812_v28  ;;  %v209_v30 = vpop.f32.mrf.mxu0  ;;  %v512_v31 = vpop.f32.mrf.mxu1 }
  0xa4   : > { %v210_v32 = vadd.f32 %v2258_v55, %v209_v30  ;;  %v513_v33 = vadd.f32 %v2263_v56, %v512_v31  ;;  %v2307_v35 = vpop.f32.mrf.mxu3 }
  0xa5   : > { %v879_v34 = vmax.f32 %v813_v29, 0.0 }
  0xa6   : > { %v275_v36 = vmax.f32 %v210_v32, 0.0  ;;  %v578_v37 = vmax.f32 %v513_v33, 0.0 }
  0xa7   : > { %907 = vst.msk [vmem:[#allocation2 + $0x1d0] sm:$0xff] %vm300_vm3, %v879_v34 }
  0xa8   : > { %304 = vst.msk [vmem:[#allocation2 + $0x18] sm:$0xff] %vm300_vm3, %v275_v36 }
  0xa9   : > { %606 = vst.msk [vmem:[#allocation2 + $0xf8] sm:$0xff] %vm300_vm3, %v578_v37  ;;  %v1115_v37 = vadd.f32 %v2334_v0, %v2307_v35 }
  0xaa   : > { %v814_v38 = vpop.f32.mrf.mxu2 }
  0xab   : > { %v815_v41 = vadd.f32 %v2276_v2, %v814_v38  ;;  %v212_v42 = vpop.f32.mrf.mxu0  ;;  %v515_v43 = vpop.f32.mrf.mxu1 }
  0xac   : > { %v213_v45 = vadd.f32 %v2258_v55, %v212_v42  ;;  %v516_v46 = vadd.f32 %v2263_v56, %v515_v43  ;;  %v2318_v48 = vpop.f32.mrf.mxu3  ;;  %v1181_v43 = vmax.f32 %v1115_v37, 0.0 }
  0xad   : > { %v880_v47 = vmax.f32 %v815_v41, 0.0  ;;  %v1117_v38 = vadd.f32 %v2334_v0, %v2318_v48 }
  0xae   : > { %v276_v49 = vmax.f32 %v213_v45, 0.0  ;;  %v579_v50 = vmax.f32 %v516_v46, 0.0  ;;  %1770 = vmatmul.msk.bf16.gmra.mxu0 %vm143_vm2, %v2022_v39  ;;  %1849 = vmatmul.msk.bf16.gmra.mxu1 %vm143_vm2, %v2038_v40  ;;  %v1237_v39 = vld [vmem:[#allocation2 + $0x10] sm:$0xff]  ;;  %1209 = vst.msk [vmem:[#allocation2 + $0x2b0] sm:$0xff] %vm300_vm3, %v1181_v43 }
  0xaf   : > { %908 = vst.msk [vmem:[#allocation2 + $0x1d8] sm:$0xff] %vm300_vm3, %v880_v47  ;;  %1928 = vmatmul.msk.bf16.gmra.mxu2 %vm143_vm2, %v2054_v44  ;;  %v1182_v44 = vmax.f32 %v1117_v38, 0.0 }
  0xb0   : > { %305 = vst.msk [vmem:[#allocation2 + $0x20] sm:$0xff] %vm300_vm3, %v276_v49  ;;  %2007 = vmatmul.msk.bf16.gmra.mxu3 %vm143_vm2, %v2070_v51  ;;  %v2024_v49 = vld [vmem:[%s2169_s15 + $0x60] sm:$0xff] }
  0xb1   : > { %607 = vst.msk [vmem:[#allocation2 + $0x100] sm:$0xff] %vm300_vm3, %v579_v50  ;;  %v2040_v50 = vld [vmem:[%s2176_s21 + $0x60] sm:$0xff] }
  0xb2   : > { %v817_v52 = vpop.f32.mrf.mxu2  ;;  %1210 = vst.msk [vmem:[#allocation2 + $0x2b8] sm:$0xff] %vm300_vm3, %v1182_v44 }
  0xb3   : > { %v818_v53 = vadd.f32 %v2276_v2, %v817_v52  ;;  %v214_v54 = vpop.f32.mrf.mxu0  ;;  %v517_v57 = vpop.f32.mrf.mxu1 }
  0xb4   : > { %v215_v58 = vadd.f32 %v2258_v55, %v214_v54  ;;  %v518_v59 = vadd.f32 %v2263_v56, %v517_v57  ;;  %v1119_v61 = vpop.f32.mrf.mxu3  ;;  %v2056_v54 = vld [vmem:[%s2186_s30 + $0x60] sm:$0xff] }
  0xb5   : > { %v881_v60 = vmax.f32 %v818_v53, 0.0  ;;  %v1120_v41 = vadd.f32 %v2334_v0, %v1119_v61 }
  0xb6   : > { %v277_v62 = vmax.f32 %v215_v58, 0.0  ;;  %v580_v63 = vmax.f32 %v518_v59, 0.0 }
  0xb7   : > { %v1239_v3 = vld [vmem:[#allocation2 + $0x20] sm:$0xff]  ;;  %909 = vst.msk [vmem:[#allocation2 + $0x1e0] sm:$0xff] %vm300_vm3, %v881_v60  ;;  %v1183_v35 = vmax.f32 %v1120_v41, 0.0 }
  0xb8   : > { %v1243_v4 = vmax.f32 %v1235_v1, %v1239_v3  ;;  %306 = vst.msk [vmem:[#allocation2 + $0x28] sm:$0xff] %vm300_vm3, %v277_v62  ;;  %v1238_v3 = vld [vmem:[#allocation2 + $0x18] sm:$0xf] }
  0xb9   : > { %608 = vst.msk [vmem:[#allocation2 + $0x108] sm:$0xff] %vm300_vm3, %v580_v63 }
  0xba   : > { %1247 = vst.msk [vmem:[#allocation3] sm:$0xff] %vm300_vm3, %v1243_v4  ;;  %v819_v8 = vpop.f32.mrf.mxu2 }
  0xbb   : > { %v820_v13 = vadd.f32 %v2276_v2, %v819_v8  ;;  %v217_v14 = vpop.f32.mrf.mxu0  ;;  %v520_v15 = vpop.f32.mrf.mxu1  ;;  %1211 = vst.msk [vmem:[#allocation2 + $0x2c0] sm:$0xff] %vm300_vm3, %v1183_v35 }
  0xbc   : > { %v218_v11 = vadd.f32 %v2258_v55, %v217_v14  ;;  %v521_v17 = vadd.f32 %v2263_v56, %v520_v15  ;;  %v1121_v19 = vpop.f32.mrf.mxu3 }
  0xbd   : > { %v882_v18 = vmax.f32 %v820_v13, 0.0  ;;  %v1122_v57 = vadd.f32 %v2334_v0, %v1121_v19 }
  0xbe   : > { %v278_v20 = vmax.f32 %v218_v11, 0.0  ;;  %v581_v21 = vmax.f32 %v521_v17, 0.0  ;;  %1771 = vmatmul.msk.bf16.gmra.mxu0 %vm143_vm2, %v2023_v10  ;;  %1850 = vmatmul.msk.bf16.gmra.mxu1 %vm143_vm2, %v2039_v12 }
  0xbf   : > { %v1240_v23 = vld [vmem:[#allocation2 + $0x28] sm:$0xff]  ;;  %910 = vst.msk [vmem:[#allocation2 + $0x1e8] sm:$0xff] %vm300_vm3, %v882_v18  ;;  %1929 = vmatmul.msk.bf16.gmra.mxu2 %vm143_vm2, %v2055_v16  ;;  %v1184_v5 = vmax.f32 %v1122_v57, 0.0 }
  0xc0   : > { %v1244_v24 = vmax.f32 %v1236_v22, %v1240_v23  ;;  %307 = vst.msk [vmem:[#allocation2 + $0x30] sm:$0xff] %vm300_vm3, %v278_v20  ;;  %2008 = vmatmul.msk.bf16.gmra.mxu3 %vm143_vm2, %v2071_v25  ;;  %v2025_v25 = vld [vmem:[%s2169_s15 + $0x68] sm:$0xff] }
  0xc1   : > { %609 = vst.msk [vmem:[#allocation2 + $0x110] sm:$0xff] %vm300_vm3, %v581_v21 }
  0xc2   : > { %1248 = vst.msk [vmem:[#allocation3 + $0x8] sm:$0xff] %vm300_vm3, %v1244_v24  ;;  %v822_v26 = vpop.f32.mrf.mxu2 }
  0xc3   : > { %v823_v27 = vadd.f32 %v2276_v2, %v822_v26  ;;  %v219_v28 = vpop.f32.mrf.mxu0  ;;  %v522_v29 = vpop.f32.mrf.mxu1  ;;  %1212 = vst.msk [vmem:[#allocation2 + $0x2c8] sm:$0xff] %vm300_vm3, %v1184_v5  ;;  %v2041_v26 = vld [vmem:[%s2176_s21 + $0x68] sm:$0xff] }
  0xc4   : > { %v220_v30 = vadd.f32 %v2258_v55, %v219_v28  ;;  %v523_v31 = vadd.f32 %v2263_v56, %v522_v29  ;;  %v1124_v33 = vpop.f32.mrf.mxu3 }
  0xc5   : > { %v883_v32 = vmax.f32 %v823_v27, 0.0  ;;  %v1125_v8 = vadd.f32 %v2334_v0, %v1124_v33 }
  0xc6   : > { %v279_v34 = vmax.f32 %v220_v30, 0.0  ;;  %v582_v36 = vmax.f32 %v523_v31, 0.0  ;;  %v2057_v31 = vld [vmem:[%s2186_s30 + $0x68] sm:$0xff] }
  0xc7   : > { %v1241_v40 = vld [vmem:[#allocation2 + $0x30] sm:$0xff]  ;;  %911 = vst.msk [vmem:[#allocation2 + $0x1f0] sm:$0xff] %vm300_vm3, %v883_v32  ;;  %v1185_v14 = vmax.f32 %v1125_v8, 0.0 }
  0xc8   : > { %v1245_v42 = vmax.f32 %v1237_v39, %v1241_v40  ;;  %308 = vst.msk [vmem:[#allocation2 + $0x38] sm:$0xff] %vm300_vm3, %v279_v34 }
  0xc9   : > { %v1252_v45 = vld [vmem:[#allocation3] ss:$2 sm:$0xff]  ;;  %v1256_v46 = vld [vmem:[#allocation3 + $0x1] ss:$2 sm:$0xff]  ;;  %610 = vst.msk [vmem:[#allocation2 + $0x118] sm:$0xff] %vm300_vm3, %v582_v36 }
  0xca   : > { %v1259_v47 = vmax.f32 %v1252_v45, %v1256_v46  ;;  %1249 = vst.msk [vmem:[#allocation3 + $0x10] sm:$0xff] %vm300_vm3, %v1245_v42  ;;  %v824_v48 = vpop.f32.mrf.mxu2  ;;  %v2073_v45 = vld [vmem:[%s2194_s25 + $0x68] sm:$0xff] }
  0xcb   : > { %v825_v51 = vadd.f32 %v2276_v2, %v824_v48  ;;  %v222_v52 = vpop.f32.mrf.mxu0  ;;  %v525_v53 = vpop.f32.mrf.mxu1  ;;  %1213 = vst.msk [vmem:[#allocation2 + $0x2d0] sm:$0xff] %vm300_vm3, %v1185_v14 }
  0xcc   : > { %v1261_v58 = vpack.c.bf16 %v1259_v47, %v1259_v47  ;;  %v223_v59 = vadd.f32 %v2258_v55, %v222_v52  ;;  %v526_v60 = vadd.f32 %v2263_v56, %v525_v53  ;;  %v1126_v62 = vpop.f32.mrf.mxu3 }
  0xcd   : > { %v884_v61 = vmax.f32 %v825_v51, 0.0  ;;  %v1127_v27 = vadd.f32 %v2334_v0, %v1126_v62 }
  0xce   : > { %1263 = vst.msk [vmem:[#allocation4] sm:$0xf] %vm1250_vm4, %v1261_v58  ;;  %v280_v63 = vmax.f32 %v223_v59, 0.0  ;;  %v583_v1 = vmax.f32 %v526_v60, 0.0  ;;  %1772 = vmatmul.msk.bf16.gmra.mxu0 %vm143_vm2, %v2024_v49  ;;  %1851 = vmatmul.msk.bf16.gmra.mxu1 %vm143_vm2, %v2040_v50 }
  0xcf   : > { %v1242_v4 = vld [vmem:[#allocation2 + $0x38] sm:$0xf]  ;;  %912 = vst.msk [vmem:[#allocation2 + $0x1f8] sm:$0xff] %vm300_vm3, %v884_v61  ;;  %1930 = vmatmul.msk.bf16.gmra.mxu2 %vm143_vm2, %v2056_v54  ;;  %v1186_v37 = vmax.f32 %v1127_v27, 0.0 }
  0xd0   : > { %v1246_v6 = vmax.f32 %v1238_v3, %v1242_v4  ;;  %309 = vst.msk [vmem:[#allocation2 + $0x40] sm:$0xff] %vm300_vm3, %v280_v63  ;;  %2009 = vmatmul.msk.bf16.gmra.mxu3 %vm143_vm2, %v2072_v7 }
  0xd1   : > { %611 = vst.msk [vmem:[#allocation2 + $0x120] sm:$0xff] %vm300_vm3, %v583_v1 }
  0xd2   : > { %1251 = vst.msk [vmem:[#allocation3 + $0x18] sm:$0xf] %vm1250_vm4, %v1246_v6  ;;  %v827_v9 = vpop.f32.mrf.mxu2 }
  0xd3   : > { %v828_v10 = vadd.f32 %v2276_v2, %v827_v9  ;;  %v224_v12 = vpop.f32.mrf.mxu0  ;;  %v527_v13 = vpop.f32.mrf.mxu1  ;;  %1214 = vst.msk [vmem:[#allocation2 + $0x2d8] sm:$0xff] %vm300_vm3, %v1186_v37 }
  0xd4   : > { %v225_v15 = vadd.f32 %v2258_v55, %v224_v12  ;;  %v528_v16 = vadd.f32 %v2263_v56, %v527_v13  ;;  %v1129_v18 = vpop.f32.mrf.mxu3 }
  0xd5   : > { %v1617_v11 = vld [vmem:[#allocation4] sm:$0xf]  ;;  %v885_v17 = vmax.f32 %v828_v10, 0.0  ;;  %v1130_v41 = vadd.f32 %v2334_v0, %v1129_v18 }
  0xd6   : > { %1648 = vst.msk [vmem:[%s2397_s22] sm:$0xf] %vm1250_vm4, %v1617_v11  ;;  %v281_v19 = vmax.f32 %v225_v15, 0.0  ;;  %v584_v20 = vmax.f32 %v528_v16, 0.0 }
  0xd7   : > { %913 = vst.msk [vmem:[#allocation2 + $0x200] sm:$0xff] %vm300_vm3, %v885_v17  ;;  %v1187_v43 = vmax.f32 %v1130_v41, 0.0 }
  0xd8   : > { %310 = vst.msk [vmem:[#allocation2 + $0x48] sm:$0xff] %vm300_vm3, %v281_v19 }
  0xd9   : > { %v1254_v21 = vld [vmem:[#allocation3 + $0x10] ss:$2 sm:$0x3f]  ;;  %v1258_v22 = vld [vmem:[#allocation3 + $0x11] ss:$2 sm:$0x3f] }
  0xda   : > { %v1260_v23 = vmax.f32 %v1254_v21, %v1258_v22  ;;  %612 = vst.msk [vmem:[#allocation2 + $0x128] sm:$0xff] %vm300_vm3, %v584_v20  ;;  %v829_v24 = vpop.f32.mrf.mxu2  ;;  %v1266_v20 = vld [vmem:[#allocation2 + $0x40] sm:$0xff] }
  0xdb   : > { %v830_v28 = vadd.f32 %v2276_v2, %v829_v24  ;;  %v227_v29 = vpop.f32.mrf.mxu0  ;;  %v530_v30 = vpop.f32.mrf.mxu1  ;;  %1215 = vst.msk [vmem:[#allocation2 + $0x2e0] sm:$0xff] %vm300_vm3, %v1187_v43 }
  0xdc   : > { %v1262_v32 = vpack.c.bf16 %v1260_v23, %v1260_v23  ;;  %v228_v33 = vadd.f32 %v2258_v55, %v227_v29  ;;  %v531_v34 = vadd.f32 %v2263_v56, %v530_v30  ;;  %v1131_v38 = vpop.f32.mrf.mxu3 }
  0xdd   : > { %v886_v36 = vmax.f32 %v830_v28, 0.0  ;;  %v1132_v42 = vadd.f32 %v2334_v0, %v1131_v38 }
  0xde   : > { %1265 = vst.msk [vmem:[#allocation4 + $0x4] sm:$0x7] %vm1264_vm5, %v1262_v32  ;;  %v282_v39 = vmax.f32 %v228_v33, 0.0  ;;  %v585_v40 = vmax.f32 %v531_v34, 0.0  ;;  %1773 = vmatmul.msk.bf16.gmra.mxu0 %vm143_vm2, %v2025_v25  ;;  %1852 = vmatmul.msk.bf16.gmra.mxu1 %vm143_vm2, %v2041_v26 }
  0xdf   : > { %914 = vst.msk [vmem:[#allocation2 + $0x208] sm:$0xff] %vm300_vm3, %v886_v36  ;;  %1931 = vmatmul.msk.bf16.gmra.mxu2 %vm143_vm2, %v2057_v31  ;;  %v1188_v44 = vmax.f32 %v1132_v42, 0.0  ;;  %v1267_v33 = vld [vmem:[#allocation2 + $0x48] sm:$0xff] }
  0xe0   : > { %311 = vst.msk [vmem:[#allocation2 + $0x50] sm:$0xff] %vm300_vm3, %v282_v39  ;;  %2010 = vmatmul.msk.bf16.gmra.mxu3 %vm143_vm2, %v2073_v45 }
  0xe1   : > { %613 = vst.msk [vmem:[#allocation2 + $0x130] sm:$0xff] %vm300_vm3, %v585_v40 }
  0xe2   : > { %v832_v46 = vpop.f32.mrf.mxu2  ;;  %1216 = vst.msk [vmem:[#allocation2 + $0x2e8] sm:$0xff] %vm300_vm3, %v1188_v44 }
  0xe3   : > { %v833_v35 = vadd.f32 %v2276_v2, %v832_v46  ;;  %v229_v47 = vpop.f32.mrf.mxu0  ;;  %v532_v48 = vpop.f32.mrf.mxu1 }
  0xe4   : > { %v230_v49 = vadd.f32 %v2258_v55, %v229_v47  ;;  %v533_v50 = vadd.f32 %v2263_v56, %v532_v48  ;;  %v1134_v53 = vpop.f32.mrf.mxu3 }
  0xe5   : > { %v1618_v51 = vld [vmem:[#allocation4 + $0x4] sm:$0x7]  ;;  %v887_v52 = vmax.f32 %v833_v35, 0.0  ;;  %v1135_v6 = vadd.f32 %v2334_v0, %v1134_v53 }
  0xe6   : > { %1649 = vst.msk [vmem:[%s2397_s22 + $0x4] sm:$0x7] %vm1264_vm5, %v1618_v51  ;;  %v283_v54 = vmax.f32 %v230_v49, 0.0  ;;  %v586_v57 = vmax.f32 %v533_v50, 0.0 }
  0xe7   : > { %915 = vst.msk [vmem:[#allocation2 + $0x210] sm:$0xff] %vm300_vm3, %v887_v52  ;;  %v1189_v8 = vmax.f32 %v1135_v6, 0.0  ;;  %v1268_v47 = vld [vmem:[#allocation2 + $0x50] sm:$0xff] }
  0xe8   : > { %312 = vst.msk [vmem:[#allocation2 + $0x58] sm:$0xff] %vm300_vm3, %v283_v54 }
  0xe9   : > { %614 = vst.msk [vmem:[#allocation2 + $0x138] sm:$0xff] %vm300_vm3, %v586_v57 }
  0xea   : > { %v834_v58 = vpop.f32.mrf.mxu2  ;;  %1217 = vst.msk [vmem:[#allocation2 + $0x2f0] sm:$0xff] %vm300_vm3, %v1189_v8 }
  0xeb   : > { %v835_v59 = vadd.f32 %v2276_v2, %v834_v58  ;;  %v232_v60 = vpop.f32.mrf.mxu0  ;;  %v535_v61 = vpop.f32.mrf.mxu1 }
  0xec   : > { %v233_v62 = vadd.f32 %v2258_v55, %v232_v60  ;;  %v536_v63 = vadd.f32 %v2263_v56, %v535_v61  ;;  %v1136_v3 = vpop.f32.mrf.mxu3 }
  0xed   : > { %v888_v1 = vmax.f32 %v835_v59, 0.0  ;;  %v1137_v7 = vadd.f32 %v2334_v0, %v1136_v3 }
  0xee   : > { %v284_v4 = vmax.f32 %v233_v62, 0.0  ;;  %v587_v5 = vmax.f32 %v536_v63, 0.0 }
  0xef   : > { %916 = vst.msk [vmem:[#allocation2 + $0x218] sm:$0xff] %vm300_vm3, %v888_v1  ;;  %v1190_v9 = vmax.f32 %v1137_v7, 0.0  ;;  %v1269_v7 = vld [vmem:[#allocation2 + $0x58] sm:$0xf] }
  0xf0   : > { %313 = vst.msk [vmem:[#allocation2 + $0x60] sm:$0xff] %vm300_vm3, %v284_v4 }
  0xf1   : > { %615 = vst.msk [vmem:[#allocation2 + $0x140] sm:$0xff] %vm300_vm3, %v587_v5 }
  0xf2   : > { %v837_v10 = vpop.f32.mrf.mxu2  ;;  %1218 = vst.msk [vmem:[#allocation2 + $0x2f8] sm:$0xff] %vm300_vm3, %v1190_v9 }
  0xf3   : > { %v838_v12 = vadd.f32 %v2276_v2, %v837_v10  ;;  %v234_v13 = vpop.f32.mrf.mxu0  ;;  %v537_v14 = vpop.f32.mrf.mxu1 }
  0xf4   : > { %v235_v15 = vadd.f32 %v2258_v55, %v234_v13  ;;  %v538_v16 = vadd.f32 %v2263_v56, %v537_v14  ;;  %v1139_v17 = vpop.f32.mrf.mxu3 }
  0xf5   : > { %v889_v11 = vmax.f32 %v838_v12, 0.0  ;;  %v1140_v35 = vadd.f32 %v2334_v0, %v1139_v17 }
  0xf6   : > { %v285_v18 = vmax.f32 %v235_v15, 0.0  ;;  %v588_v19 = vmax.f32 %v538_v16, 0.0 }
  0xf7   : > { %v1270_v21 = vld [vmem:[#allocation2 + $0x60] sm:$0xff]  ;;  %917 = vst.msk [vmem:[#allocation2 + $0x220] sm:$0xff] %vm300_vm3, %v889_v11  ;;  %v1191_v50 = vmax.f32 %v1140_v35, 0.0 }
  0xf8   : > { %v1274_v22 = vmax.f32 %v1266_v20, %v1270_v21  ;;  %314 = vst.msk [vmem:[#allocation2 + $0x68] sm:$0xff] %vm300_vm3, %v285_v18 }
  0xf9   : > { %616 = vst.msk [vmem:[#allocation2 + $0x148] sm:$0xff] %vm300_vm3, %v588_v19 }
  0xfa   : > { %1278 = vst.msk [vmem:[#allocation3] sm:$0xff] %vm300_vm3, %v1274_v22  ;;  %v839_v23 = vpop.f32.mrf.mxu2 }
  0xfb   : > { %v840_v24 = vadd.f32 %v2276_v2, %v839_v23  ;;  %v237_v25 = vpop.f32.mrf.mxu0  ;;  %v540_v26 = vpop.f32.mrf.mxu1  ;;  %1219 = vst.msk [vmem:[#allocation2 + $0x300] sm:$0xff] %vm300_vm3, %v1191_v50 }
  0xfc   : > { %v238_v27 = vadd.f32 %v2258_v55, %v237_v25  ;;  %v541_v28 = vadd.f32 %v2263_v56, %v540_v26  ;;  %v1141_v30 = vpop.f32.mrf.mxu3 }
  0xfd   : > { %v890_v29 = vmax.f32 %v840_v24, 0.0  ;;  %v1142_v53 = vadd.f32 %v2334_v0, %v1141_v30 }
  0xfe   : > { %v286_v31 = vmax.f32 %v238_v27, 0.0  ;;  %v589_v32 = vmax.f32 %v541_v28, 0.0 }
  0xff   : > { %v1271_v34 = vld [vmem:[#allocation2 + $0x68] sm:$0xff]  ;;  %918 = vst.msk [vmem:[#allocation2 + $0x228] sm:$0xff] %vm300_vm3, %v890_v29  ;;  %v1192_v61 = vmax.f32 %v1142_v53, 0.0 }
 0x100   : > { %v1275_v36 = vmax.f32 %v1267_v33, %v1271_v34  ;;  %315 = vst.msk [vmem:[#allocation2 + $0x70] sm:$0xff] %vm300_vm3, %v286_v31 }
 0x101   : > { %617 = vst.msk [vmem:[#allocation2 + $0x150] sm:$0xff] %vm300_vm3, %v589_v32 }
 0x102   : > { %1279 = vst.msk [vmem:[#allocation3 + $0x8] sm:$0xff] %vm300_vm3, %v1275_v36  ;;  %v842_v37 = vpop.f32.mrf.mxu2 }
 0x103   : > { %v843_v38 = vadd.f32 %v2276_v2, %v842_v37  ;;  %v239_v39 = vpop.f32.mrf.mxu0  ;;  %v542_v40 = vpop.f32.mrf.mxu1  ;;  %1220 = vst.msk [vmem:[#allocation2 + $0x308] sm:$0xff] %vm300_vm3, %v1192_v61 }
 0x104   : > { %v240_v41 = vadd.f32 %v2258_v55, %v239_v39  ;;  %v543_v42 = vadd.f32 %v2263_v56, %v542_v40  ;;  %v1144_v44 = vpop.f32.mrf.mxu3 }
 0x105   : > { %v891_v43 = vmax.f32 %v843_v38, 0.0  ;;  %v1145_v10 = vadd.f32 %v2334_v0, %v1144_v44 }
 0x106   : > { %v287_v45 = vmax.f32 %v240_v41, 0.0  ;;  %v590_v46 = vmax.f32 %v543_v42, 0.0 }
 0x107   : > { %v1272_v48 = vld [vmem:[#allocation2 + $0x70] sm:$0xff]  ;;  %919 = vst.msk [vmem:[#allocation2 + $0x230] sm:$0xff] %vm300_vm3, %v891_v43  ;;  %v1193_v16 = vmax.f32 %v1145_v10, 0.0 }
 0x108   : > { %v1276_v49 = vmax.f32 %v1268_v47, %v1272_v48  ;;  %316 = vst.msk [vmem:[#allocation2 + $0x78] sm:$0xff] %vm300_vm3, %v287_v45 }
 0x109   : > { %v1282_v51 = vld [vmem:[#allocation3] ss:$2 sm:$0xff]  ;;  %v1284_v52 = vld [vmem:[#allocation3 + $0x1] ss:$2 sm:$0xff]  ;;  %618 = vst.msk [vmem:[#allocation2 + $0x158] sm:$0xff] %vm300_vm3, %v590_v46 }
 0x10a   : > { %v1286_v54 = vmax.f32 %v1282_v51, %v1284_v52  ;;  %1280 = vst.msk [vmem:[#allocation3 + $0x10] sm:$0xff] %vm300_vm3, %v1276_v49  ;;  %v844_v57 = vpop.f32.mrf.mxu2 }
 0x10b   : > { %v845_v58 = vadd.f32 %v2276_v2, %v844_v57  ;;  %v242_v59 = vpop.f32.mrf.mxu0  ;;  %v545_v60 = vpop.f32.mrf.mxu1  ;;  %1221 = vst.msk [vmem:[#allocation2 + $0x310] sm:$0xff] %vm300_vm3, %v1193_v16 }
 0x10c   : > { %v1288_v62 = vpack.c.bf16 %v1286_v54, %v1286_v54  ;;  %v243_v63 = vadd.f32 %v2258_v55, %v242_v59  ;;  %v546_v1 = vadd.f32 %v2263_v56, %v545_v60  ;;  %v1146_v4 = vpop.f32.mrf.mxu3 }
 0x10d   : > { %v892_v3 = vmax.f32 %v845_v58, 0.0  ;;  %v1147_v27 = vadd.f32 %v2334_v0, %v1146_v4 }
 0x10e   : > { %1291 = vst.msk [vmem:[#allocation4 + $0x8] sm:$0xf] %vm1250_vm4, %v1288_v62  ;;  %v288_v5 = vmax.f32 %v243_v63, 0.0  ;;  %v591_v6 = vmax.f32 %v546_v1, 0.0 }
 0x10f   : > { %v1273_v8 = vld [vmem:[#allocation2 + $0x78] sm:$0xf]  ;;  %920 = vst.msk [vmem:[#allocation2 + $0x238] sm:$0xff] %vm300_vm3, %v892_v3  ;;  %v1194_v36 = vmax.f32 %v1147_v27, 0.0 }
 0x110   : > { %v1277_v9 = vmax.f32 %v1269_v7, %v1273_v8  ;;  %317 = vst.msk [vmem:[#allocation2 + $0x80] sm:$0xff] %vm300_vm3, %v288_v5 }
 0x111   : > { %619 = vst.msk [vmem:[#allocation2 + $0x160] sm:$0xff] %vm300_vm3, %v591_v6 }
 0x112   : > { %1281 = vst.msk [vmem:[#allocation3 + $0x18] sm:$0xf] %vm1250_vm4, %v1277_v9  ;;  %v847_v12 = vpop.f32.mrf.mxu2 }
 0x113   : > { %v848_v13 = vadd.f32 %v2276_v2, %v847_v12  ;;  %v244_v14 = vpop.f32.mrf.mxu0  ;;  %v547_v15 = vpop.f32.mrf.mxu1  ;;  %1222 = vst.msk [vmem:[#allocation2 + $0x318] sm:$0xff] %vm300_vm3, %v1194_v36 }
 0x114   : > { %v245_v11 = vadd.f32 %v2258_v55, %v244_v14  ;;  %v548_v17 = vadd.f32 %v2263_v56, %v547_v15  ;;  %v1149_v20 = vpop.f32.mrf.mxu3 }
 0x115   : > { %v1619_v18 = vld [vmem:[#allocation4 + $0x8] sm:$0xf]  ;;  %v893_v19 = vmax.f32 %v848_v13, 0.0  ;;  %v1150_v40 = vadd.f32 %v2334_v0, %v1149_v20 }
 0x116   : > { %1650 = vst.msk [vmem:[%s2397_s22 + $0x8] sm:$0xf] %vm1250_vm4, %v1619_v18  ;;  %v289_v21 = vmax.f32 %v245_v11, 0.0  ;;  %v592_v22 = vmax.f32 %v548_v17, 0.0 }
 0x117   : > { %921 = vst.msk [vmem:[#allocation2 + $0x240] sm:$0xff] %vm300_vm3, %v893_v19  ;;  %v1195_v42 = vmax.f32 %v1150_v40, 0.0  ;;  %v1293_v17 = vld [vmem:[#allocation2 + $0x80] sm:$0xff] }
 0x118   : > { %318 = vst.msk [vmem:[#allocation2 + $0x88] sm:$0xff] %vm300_vm3, %v289_v21 }
 0x119   : > { %v1283_v23 = vld [vmem:[#allocation3 + $0x10] ss:$2 sm:$0x3f]  ;;  %v1285_v24 = vld [vmem:[#allocation3 + $0x11] ss:$2 sm:$0x3f] }
 0x11a   : > { %v1287_v25 = vmax.f32 %v1283_v23, %v1285_v24  ;;  %620 = vst.msk [vmem:[#allocation2 + $0x168] sm:$0xff] %vm300_vm3, %v592_v22  ;;  %v849_v26 = vpop.f32.mrf.mxu2 }
 0x11b   : > { %v850_v28 = vadd.f32 %v2276_v2, %v849_v26  ;;  %v247_v29 = vpop.f32.mrf.mxu0  ;;  %v550_v30 = vpop.f32.mrf.mxu1  ;;  %1223 = vst.msk [vmem:[#allocation2 + $0x320] sm:$0xff] %vm300_vm3, %v1195_v42 }
 0x11c   : > { %v1289_v31 = vpack.c.bf16 %v1287_v25, %v1287_v25  ;;  %v248_v32 = vadd.f32 %v2258_v55, %v247_v29  ;;  %v551_v33 = vadd.f32 %v2263_v56, %v550_v30  ;;  %v1151_v37 = vpop.f32.mrf.mxu3 }
 0x11d   : > { %v894_v34 = vmax.f32 %v850_v28, 0.0  ;;  %v1152_v41 = vadd.f32 %v2334_v0, %v1151_v37 }
 0x11e   : > { %1292 = vst.msk [vmem:[#allocation4 + $0xc] sm:$0x7] %vm1264_vm5, %v1289_v31  ;;  %v290_v38 = vmax.f32 %v248_v32, 0.0  ;;  %v593_v39 = vmax.f32 %v551_v33, 0.0 }
 0x11f   : > { %922 = vst.msk [vmem:[#allocation2 + $0x248] sm:$0xff] %vm300_vm3, %v894_v34  ;;  %v1196_v43 = vmax.f32 %v1152_v41, 0.0  ;;  %v1294_v29 = vld [vmem:[#allocation2 + $0x88] sm:$0xff] }
 0x120   : > { %319 = vst.msk [vmem:[#allocation2 + $0x90] sm:$0xff] %vm300_vm3, %v290_v38 }
 0x121   : > { %621 = vst.msk [vmem:[#allocation2 + $0x170] sm:$0xff] %vm300_vm3, %v593_v39 }
 0x122   : > { %v852_v44 = vpop.f32.mrf.mxu2  ;;  %1224 = vst.msk [vmem:[#allocation2 + $0x328] sm:$0xff] %vm300_vm3, %v1196_v43 }
 0x123   : > { %v853_v45 = vadd.f32 %v2276_v2, %v852_v44  ;;  %v249_v46 = vpop.f32.mrf.mxu0  ;;  %v552_v35 = vpop.f32.mrf.mxu1 }
 0x124   : > { %v250_v47 = vadd.f32 %v2258_v55, %v249_v46  ;;  %v553_v48 = vadd.f32 %v2263_v56, %v552_v35  ;;  %v1154_v51 = vpop.f32.mrf.mxu3 }
 0x125   : > { %v1620_v49 = vld [vmem:[#allocation4 + $0xc] sm:$0x7]  ;;  %v895_v50 = vmax.f32 %v853_v45, 0.0  ;;  %v1155_v4 = vadd.f32 %v2334_v0, %v1154_v51 }
 0x126   : > { %1651 = vst.msk [vmem:[%s2397_s22 + $0xc] sm:$0x7] %vm1264_vm5, %v1620_v49  ;;  %v291_v52 = vmax.f32 %v250_v47, 0.0  ;;  %v594_v53 = vmax.f32 %v553_v48, 0.0 }
 0x127   : > { %923 = vst.msk [vmem:[#allocation2 + $0x250] sm:$0xff] %vm300_vm3, %v895_v50  ;;  %v1197_v6 = vmax.f32 %v1155_v4, 0.0  ;;  %v1295_v43 = vld [vmem:[#allocation2 + $0x90] sm:$0xff]  ;;  %v2090_v4 = vld [vmem:[%s2718_s2] ss:$0 sm:$0xff] }
 0x128   : > { %320 = vst.msk [vmem:[#allocation2 + $0x98] sm:$0xff] %vm300_vm3, %v291_v52 }
 0x129   : > { %622 = vst.msk [vmem:[#allocation2 + $0x178] sm:$0xff] %vm300_vm3, %v594_v53 }
 0x12a   : > { %v854_v54 = vpop.f32.mrf.mxu2  ;;  %1225 = vst.msk [vmem:[#allocation2 + $0x330] sm:$0xff] %vm300_vm3, %v1197_v6  ;;  %v2091_v6 = vld [vmem:[%s2718_s2] ss:$0 sm:$0xff] }
 0x12b   : > { %v855_v57 = vadd.f32 %v2276_v2, %v854_v54  ;;  %v252_v58 = vpop.f32.mrf.mxu0  ;;  %v555_v59 = vpop.f32.mrf.mxu1 }
 0x12c   : > { %v253_v60 = vadd.f32 %v2258_v55, %v252_v58  ;;  %v556_v61 = vadd.f32 %v2263_v56, %v555_v59  ;;  %v1156_v63 = vpop.f32.mrf.mxu3 }
 0x12d   : > { %v896_v62 = vmax.f32 %v855_v57, 0.0  ;;  %v1157_v5 = vadd.f32 %v2334_v0, %v1156_v63 }
 0x12e   : > { %v292_v1 = vmax.f32 %v253_v60, 0.0  ;;  %v595_v3 = vmax.f32 %v556_v61, 0.0 }
 0x12f   : > { %924 = vst.msk [vmem:[#allocation2 + $0x258] sm:$0xff] %vm300_vm3, %v896_v62  ;;  %v1198_v7 = vmax.f32 %v1157_v5, 0.0  ;;  %v1296_v61 = vld [vmem:[#allocation2 + $0x98] sm:$0xf] }
 0x130   : > { %321 = vst.msk [vmem:[#allocation2 + $0xa0] sm:$0xff] %vm300_vm3, %v292_v1 }
 0x131   : > { %623 = vst.msk [vmem:[#allocation2 + $0x180] sm:$0xff] %vm300_vm3, %v595_v3 }
 0x132   : > { %v857_v8 = vpop.f32.mrf.mxu2  ;;  %1226 = vst.msk [vmem:[#allocation2 + $0x338] sm:$0xff] %vm300_vm3, %v1198_v7 }
 0x133   : > { %v858_v9 = vadd.f32 %v2276_v2, %v857_v8  ;;  %v254_v10 = vpop.f32.mrf.mxu0  ;;  %v557_v12 = vpop.f32.mrf.mxu1 }
 0x134   : > { %v255_v13 = vadd.f32 %v2258_v55, %v254_v10  ;;  %v558_v14 = vadd.f32 %v2263_v56, %v557_v12  ;;  %v2534_v32 = vpop.f32.mrf.mxu3 }
 0x135   : > { %v897_v15 = vmax.f32 %v858_v9, 0.0 }
 0x136   : > { %v293_v16 = vmax.f32 %v255_v13, 0.0  ;;  %v596_v11 = vmax.f32 %v558_v14, 0.0 }
 0x137   : > { %v1297_v18 = vld [vmem:[#allocation2 + $0xa0] sm:$0xff]  ;;  %925 = vst.msk [vmem:[#allocation2 + $0x260] sm:$0xff] %vm300_vm3, %v897_v15 }
 0x138   : > { %v1301_v19 = vmax.f32 %v1293_v17, %v1297_v18  ;;  %322 = vst.msk [vmem:[#allocation2 + $0xa8] sm:$0xff] %vm300_vm3, %v293_v16 }
 0x139   : > { %624 = vst.msk [vmem:[#allocation2 + $0x188] sm:$0xff] %vm300_vm3, %v596_v11 }
 0x13a   : > { %1305 = vst.msk [vmem:[#allocation3] sm:$0xff] %vm300_vm3, %v1301_v19  ;;  %v859_v20 = vpop.f32.mrf.mxu2  ;;  %v2092_v19 = vld [vmem:[%s2718_s2] ss:$0 sm:$0xff] }
 0x13b   : > { %v860_v21 = vadd.f32 %v2276_v2, %v859_v20  ;;  %v257_v22 = vpop.f32.mrf.mxu0  ;;  %v560_v23 = vpop.f32.mrf.mxu1 }
 0x13c   : > { %v258_v24 = vadd.f32 %v2258_v55, %v257_v22  ;;  %v561_v25 = vadd.f32 %v2263_v56, %v560_v23  ;;  %v2545_v49 = vpop.f32.mrf.mxu3 }
 0x13d   : > { %v898_v26 = vmax.f32 %v860_v21, 0.0 }
 0x13e   : > { %v294_v27 = vmax.f32 %v258_v24, 0.0  ;;  %v597_v28 = vmax.f32 %v561_v25, 0.0 }
 0x13f   : > { %v1298_v30 = vld [vmem:[#allocation2 + $0xa8] sm:$0xff]  ;;  %926 = vst.msk [vmem:[#allocation2 + $0x268] sm:$0xff] %vm300_vm3, %v898_v26 }
 0x140   : > { %v1302_v31 = vmax.f32 %v1294_v29, %v1298_v30  ;;  %323 = vst.msk [vmem:[#allocation2 + $0xb0] sm:$0xff] %vm300_vm3, %v294_v27  ;;  %v1325_v30 = vld [vmem:[#allocation2 + $0xe8] sm:$0xff] }
 0x141   : > { %625 = vst.msk [vmem:[#allocation2 + $0x190] sm:$0xff] %vm300_vm3, %v597_v28 }
 0x142   : > { %1306 = vst.msk [vmem:[#allocation3 + $0x8] sm:$0xff] %vm300_vm3, %v1302_v31  ;;  %v862_v33 = vpop.f32.mrf.mxu2 }
 0x143   : > { %v863_v34 = vadd.f32 %v2276_v2, %v862_v33  ;;  %v259_v36 = vpop.f32.mrf.mxu0  ;;  %v562_v37 = vpop.f32.mrf.mxu1 }
 0x144   : > { %v260_v38 = vadd.f32 %v2258_v55, %v259_v36  ;;  %v563_v39 = vadd.f32 %v2263_v56, %v562_v37  ;;  %v2562_v8 = vpop.f32.mrf.mxu3 }
 0x145   : > { %v899_v40 = vmax.f32 %v863_v34, 0.0  ;;  %v1160_v34 = vadd.f32 %v2334_v0, %v2534_v32 }
 0x146   : > { %v295_v41 = vmax.f32 %v260_v38, 0.0  ;;  %v598_v42 = vmax.f32 %v563_v39, 0.0 }
 0x147   : > { %v1299_v44 = vld [vmem:[#allocation2 + $0xb0] sm:$0xff]  ;;  %927 = vst.msk [vmem:[#allocation2 + $0x270] sm:$0xff] %vm300_vm3, %v899_v40  ;;  %v1199_v39 = vmax.f32 %v1160_v34, 0.0  ;;  %v2093_v34 = vld [vmem:[%s2718_s2] ss:$0 sm:$0xff] }
 0x148   : > { %v1303_v45 = vmax.f32 %v1295_v43, %v1299_v44  ;;  %324 = vst.msk [vmem:[#allocation2 + $0xb8] sm:$0xff] %vm300_vm3, %v295_v41  ;;  %v1351_v41 = vld [vmem:[#allocation2 + $0x120] sm:$0xff]  ;;  %v1162_v43 = vadd.f32 %v2334_v0, %v2545_v49 }
 0x149   : > { %v1309_v46 = vld [vmem:[#allocation3] ss:$2 sm:$0xff]  ;;  %v1311_v35 = vld [vmem:[#allocation3 + $0x1] ss:$2 sm:$0xff]  ;;  %626 = vst.msk [vmem:[#allocation2 + $0x198] sm:$0xff] %vm300_vm3, %v598_v42 }
 0x14a   : > { %v1313_v47 = vmax.f32 %v1309_v46, %v1311_v35  ;;  %1307 = vst.msk [vmem:[#allocation3 + $0x10] sm:$0xff] %vm300_vm3, %v1303_v45  ;;  %v864_v48 = vpop.f32.mrf.mxu2  ;;  %v1352_v35 = vld [vmem:[#allocation2 + $0x128] sm:$0xff] }
 0x14b   : > { %v865_v50 = vadd.f32 %v2276_v2, %v864_v48  ;;  %v262_v51 = vpop.f32.mrf.mxu0  ;;  %v565_v52 = vpop.f32.mrf.mxu1  ;;  %v1347_v48 = vld [vmem:[#allocation2 + $0x100] sm:$0xff]  ;;  %1227 = vst.msk [vmem:[#allocation2 + $0x340] sm:$0xff] %vm300_vm3, %v1199_v39  ;;  %v1349_v39 = vld [vmem:[#allocation2 + $0x110] sm:$0xff] }
 0x14c   : > { %v1315_v53 = vpack.c.bf16 %v1313_v47, %v1313_v47  ;;  %v263_v54 = vadd.f32 %v2258_v55, %v262_v51  ;;  %v566_v57 = vadd.f32 %v2263_v56, %v565_v52  ;;  %v2573_v27 = vpop.f32.mrf.mxu3  ;;  %v1326_v47 = vld [vmem:[#allocation2 + $0xf0] sm:$0xff]  ;;  %v1348_v52 = vld [vmem:[#allocation2 + $0x108] sm:$0xff] }
 0x14d   : > { %v900_v58 = vmax.f32 %v865_v50, 0.0  ;;  %v1200_v50 = vmax.f32 %v1162_v43, 0.0  ;;  %v1167_v43 = vadd.f32 %v2093_v34, %v2573_v27 }
 0x14e   : > { %1318 = vst.msk [vmem:[#allocation4 + $0x10] sm:$0xf] %vm1250_vm4, %v1315_v53  ;;  %v296_v59 = vmax.f32 %v263_v54, 0.0  ;;  %v599_v60 = vmax.f32 %v566_v57, 0.0  ;;  %v1355_v53 = vmax.f32 %v1347_v48, %v1351_v41  ;;  %v1356_v57 = vmax.f32 %v1348_v52, %v1352_v35 }
 0x14f   : > { %v1300_v62 = vld [vmem:[#allocation2 + $0xb8] sm:$0xf]  ;;  %928 = vst.msk [vmem:[#allocation2 + $0x278] sm:$0xff] %vm300_vm3, %v900_v58  ;;  %v1202_v48 = vmax.f32 %v1167_v43, 0.0  ;;  %v1430_v43 = vld [vmem:[#allocation2 + $0x1d0] sm:$0xff] }
 0x150   : > { %v1304_v63 = vmax.f32 %v1296_v61, %v1300_v62  ;;  %325 = vst.msk [vmem:[#allocation2 + $0xc0] sm:$0xff] %vm300_vm3, %v296_v59 }
 0x151   : > { %627 = vst.msk [vmem:[#allocation2 + $0x1a0] sm:$0xff] %vm300_vm3, %v599_v60 }
 0x152   : > { %1308 = vst.msk [vmem:[#allocation3 + $0x18] sm:$0xf] %vm1250_vm4, %v1304_v63  ;;  %v867_v55 = vpop.f32.mrf.mxu2 }
 0x153   : > { %v868_v56 = vadd.f32 %v2276_v2, %v867_v55  ;;  %v264_v1 = vpop.f32.mrf.mxu0  ;;  %v567_v3 = vpop.f32.mrf.mxu1  ;;  %v1324_v2 = vld [vmem:[#allocation2 + $0xe0] sm:$0xff]  ;;  %1228 = vst.msk [vmem:[#allocation2 + $0x348] sm:$0xff] %vm300_vm3, %v1200_v50 }
 0x154   : > { %v265_v5 = vadd.f32 %v2090_v4, %v264_v1  ;;  %v568_v7 = vadd.f32 %v2091_v6, %v567_v3  ;;  %v1169_v46 = vpop.f32.mrf.mxu3  ;;  %v1378_v3 = vld [vmem:[#allocation2 + $0x160] sm:$0xff]  ;;  %1230 = vst.msk [vmem:[#allocation2 + $0x358] sm:$0xff] %vm300_vm3, %v1202_v48  ;;  %v1435_v48 = vld [vmem:[#allocation2 + $0x1f8] sm:$0xf] }
 0x155   : > { %v1621_v9 = vld [vmem:[#allocation4 + $0x10] sm:$0xf]  ;;  %v901_v10 = vmax.f32 %v868_v56, 0.0 }
 0x156   : > { %1652 = vst.msk [vmem:[%s2397_s22 + $0x10] sm:$0xf] %vm1250_vm4, %v1621_v9  ;;  %v297_v12 = vmax.f32 %v265_v5, 0.0  ;;  %v600_v14 = vmax.f32 %v568_v7, 0.0  ;;  %v1374_v7 = vld [vmem:[#allocation2 + $0x140] sm:$0xff] }
 0x157   : > { %v1320_v13 = vld [vmem:[#allocation2 + $0xc0] sm:$0xff]  ;;  %929 = vst.msk [vmem:[#allocation2 + $0x280] sm:$0xff] %vm300_vm3, %v901_v10  ;;  %v1375_v10 = vld [vmem:[#allocation2 + $0x148] sm:$0xff] }
 0x158   : > { %v1328_v15 = vmax.f32 %v1320_v13, %v1324_v2  ;;  %326 = vst.msk [vmem:[#allocation2 + $0xc8] sm:$0xff] %vm300_vm3, %v297_v12  ;;  %v1382_v12 = vmax.f32 %v1374_v7, %v1378_v3  ;;  %v1376_v3 = vld [vmem:[#allocation2 + $0x150] sm:$0xff] }
 0x159   : > { %v1310_v16 = vld [vmem:[#allocation3 + $0x10] ss:$2 sm:$0x3f]  ;;  %v1312_v11 = vld [vmem:[#allocation3 + $0x11] ss:$2 sm:$0x3f] }
 0x15a   : > { %v1314_v17 = vmax.f32 %v1310_v16, %v1312_v11  ;;  %1332 = vst.msk [vmem:[#allocation3] sm:$0xff] %vm300_vm3, %v1328_v15  ;;  %v869_v18 = vpop.f32.mrf.mxu2 }
 0x15b   : > { %628 = vst.msk [vmem:[#allocation2 + $0x1a8] sm:$0xff] %vm300_vm3, %v600_v14  ;;  %v870_v20 = vadd.f32 %v2092_v19, %v869_v18  ;;  %v267_v21 = vpop.f32.mrf.mxu0  ;;  %v570_v22 = vpop.f32.mrf.mxu1 }
 0x15c   : > { %v1316_v23 = vpack.c.bf16 %v1314_v17, %v1314_v17  ;;  %v268_v24 = vadd.f32 %v2090_v4, %v267_v21  ;;  %v571_v25 = vadd.f32 %v2091_v6, %v570_v22  ;;  %v1171_v1 = vpop.f32.mrf.mxu3 }
 0x15d   : > { %v902_v26 = vmax.f32 %v870_v20, 0.0  ;;  %v1172_v5 = vadd.f32 %v2334_v0, %v1171_v1  ;;  %v1405_v20 = vld [vmem:[#allocation2 + $0x1a0] sm:$0xff] }
 0x15e   : > { %1319 = vst.msk [vmem:[#allocation4 + $0x14] sm:$0x7] %vm1264_vm5, %v1316_v23  ;;  %v298_v28 = vmax.f32 %v268_v24, 0.0  ;;  %v601_v29 = vmax.f32 %v571_v25, 0.0  ;;  %v1401_v23 = vld [vmem:[#allocation2 + $0x180] sm:$0xff]  ;;  %v1402_v24 = vld [vmem:[#allocation2 + $0x188] sm:$0xff] }
 0x15f   : > { %v1321_v31 = vld [vmem:[#allocation2 + $0xc8] sm:$0xff]  ;;  %930 = vst.msk [vmem:[#allocation2 + $0x288] sm:$0xff] %vm300_vm3, %v902_v26  ;;  %v1204_v2 = vmax.f32 %v1172_v5, 0.0  ;;  %v1409_v25 = vmax.f32 %v1401_v23, %v1405_v20  ;;  %v1459_v1 = vld [vmem:[#allocation2 + $0x220] sm:$0xff] }
 0x160   : > { %v1329_v33 = vmax.f32 %v1321_v31, %v1325_v30  ;;  %327 = vst.msk [vmem:[#allocation2 + $0xd0] sm:$0xff] %vm300_vm3, %v298_v28  ;;  %v1353_v30 = vld [vmem:[#allocation2 + $0x130] sm:$0xff]  ;;  %v1483_v23 = vld [vmem:[#allocation2 + $0x248] sm:$0xff] }
 0x161   : > { %629 = vst.msk [vmem:[#allocation2 + $0x1b0] sm:$0xff] %vm300_vm3, %v601_v29 }
 0x162   : > { %1333 = vst.msk [vmem:[#allocation3 + $0x8] sm:$0xff] %vm300_vm3, %v1329_v33  ;;  %v872_v36 = vpop.f32.mrf.mxu2  ;;  %v1406_v21 = vld [vmem:[#allocation2 + $0x1a8] sm:$0xff]  ;;  %v1354_v33 = vld [vmem:[#allocation2 + $0x138] sm:$0xf] }
 0x163   : > { %v873_v37 = vadd.f32 %v2092_v19, %v872_v36  ;;  %v269_v38 = vpop.f32.mrf.mxu0  ;;  %v572_v40 = vpop.f32.mrf.mxu1  ;;  %1232 = vst.msk [vmem:[#allocation2 + $0x368] sm:$0xff] %vm300_vm3, %v1204_v2  ;;  %v1410_v29 = vmax.f32 %v1402_v24, %v1406_v21  ;;  %v1165_v36 = vadd.f32 %v2093_v34, %v2562_v8  ;;  %v1433_v8 = vld [vmem:[#allocation2 + $0x1e8] sm:$0xff] }
 0x164   : > { %v270_v45 = vadd.f32 %v2090_v4, %v269_v38  ;;  %v573_v51 = vadd.f32 %v2091_v6, %v572_v40  ;;  %v1170_v4 = vadd.f32 %v2334_v0, %v1169_v46  ;;  %v1379_v6 = vld [vmem:[#allocation2 + $0x168] sm:$0xff]  ;;  %v1327_v0 = vld [vmem:[#allocation2 + $0xf8] sm:$0xf]  ;;  %v1174_v22 = vpop.f32.mrf.mxu3  ;;  %v1432_v38 = vld [vmem:[#allocation2 + $0x1e0] sm:$0xff] }
 0x165   : > { %v1622_v42 = vld [vmem:[#allocation4 + $0x14] sm:$0x7]  ;;  %v903_v44 = vmax.f32 %v873_v37, 0.0  ;;  %v1383_v13 = vmax.f32 %v1375_v10, %v1379_v6  ;;  %v1428_v37 = vld [vmem:[#allocation2 + $0x1c0] sm:$0xff]  ;;  %v1350_v40 = vld [vmem:[#allocation2 + $0x118] sm:$0xf] }
 0x166   : > { %1653 = vst.msk [vmem:[%s2397_s22 + $0x14] sm:$0x7] %vm1264_vm5, %v1622_v42  ;;  %v299_v59 = vmax.f32 %v270_v45, 0.0  ;;  %v602_v62 = vmax.f32 %v573_v51, 0.0  ;;  %v1203_v9 = vmax.f32 %v1170_v4, 0.0  ;;  %v1201_v46 = vmax.f32 %v1165_v36, 0.0 }
 0x167   : > { %v1322_v32 = vld [vmem:[#allocation2 + $0xd0] sm:$0xff]  ;;  %931 = vst.msk [vmem:[#allocation2 + $0x290] sm:$0xff] %vm300_vm3, %v903_v44  ;;  %v1357_v44 = vmax.f32 %v1349_v39, %v1353_v30  ;;  %v1358_v35 = vmax.f32 %v1350_v40, %v1354_v33  ;;  %v1175_v51 = vadd.f32 %v2093_v34, %v1174_v22  ;;  %v1436_v27 = vmax.f32 %v1428_v37, %v1432_v38  ;;  %v1377_v4 = vld [vmem:[#allocation2 + $0x158] sm:$0xf]  ;;  %v1460_v10 = vld [vmem:[#allocation2 + $0x228] sm:$0xff] }
 0x168   : > { %v1330_v54 = vmax.f32 %v1322_v32, %v1326_v47  ;;  %328 = vst.msk [vmem:[#allocation2 + $0xd8] sm:$0xff] %vm300_vm3, %v299_v59  ;;  %v1429_v32 = vld [vmem:[#allocation2 + $0x1c8] sm:$0xff]  ;;  %v1407_v22 = vld [vmem:[#allocation2 + $0x1b0] sm:$0xff] }
 0x169   : > { %v1336_v49 = vld [vmem:[#allocation3] ss:$2 sm:$0xff]  ;;  %v1338_v58 = vld [vmem:[#allocation3 + $0x1] ss:$2 sm:$0xff]  ;;  %630 = vst.msk [vmem:[#allocation2 + $0x1b8] sm:$0xff] %vm300_vm3, %v602_v62 }
 0x16a   : > { %v1340_v60 = vmax.f32 %v1336_v49, %v1338_v58  ;;  %1359 = vst.msk [vmem:[#allocation3] sm:$0xff] %vm300_vm3, %v1355_v53  ;;  %v874_v61 = vpop.f32.mrf.mxu2  ;;  %v1455_v62 = vld [vmem:[#allocation2 + $0x200] sm:$0xff] }
 0x16b   : > { %1360 = vst.msk [vmem:[#allocation3 + $0x8] sm:$0xff] %vm300_vm3, %v1356_v57  ;;  %v875_v63 = vadd.f32 %v2092_v19, %v874_v61  ;;  %v1205_v61 = vmax.f32 %v1175_v51, 0.0  ;;  %v1510_v51 = vld [vmem:[#allocation2 + $0x288] sm:$0xff] }
 0x16c   : > { %v1342_v55 = vpack.c.bf16 %v1340_v60, %v1340_v60  ;;  %1334 = vst.msk [vmem:[#allocation3 + $0x10] sm:$0xff] %vm300_vm3, %v1330_v54  ;;  %v1176_v52 = vpop.f32.mrf.mxu3  ;;  %v1437_v54 = vmax.f32 %v1429_v32, %v1433_v8  ;;  %v1380_v60 = vld [vmem:[#allocation2 + $0x170] sm:$0xff]  ;;  %v1509_v32 = vld [vmem:[#allocation2 + $0x280] sm:$0xff] }
 0x16d   : > { %v904_v56 = vmax.f32 %v875_v63, 0.0  ;;  %1231 = vst.msk [vmem:[#allocation2 + $0x360] sm:$0xff] %vm300_vm3, %v1203_v9  ;;  %v1177_v59 = vadd.f32 %v2093_v34, %v1176_v52  ;;  %v1381_v63 = vld [vmem:[#allocation2 + $0x178] sm:$0xf]  ;;  %v1384_v5 = vmax.f32 %v1376_v3, %v1380_v60  ;;  %v1456_v9 = vld [vmem:[#allocation2 + $0x208] sm:$0xff]  ;;  %v1513_v8 = vld [vmem:[#allocation2 + $0x2a0] sm:$0xff] }
 0x16e   : > { %1345 = vst.msk [vmem:[#allocation4 + $0x18] sm:$0xf] %vm1250_vm4, %v1342_v55 }
 0x16f   : > { %932 = vst.msk [vmem:[#allocation2 + $0x298] sm:$0xff] %vm300_vm3, %v904_v56  ;;  %v1323_v11 = vld [vmem:[#allocation2 + $0xd8] sm:$0xf]  ;;  %v1206_v7 = vmax.f32 %v1177_v59, 0.0 }
 0x170   : > { %v1331_v19 = vmax.f32 %v1323_v11, %v1327_v0  ;;  %1229 = vst.msk [vmem:[#allocation2 + $0x350] sm:$0xff] %vm300_vm3, %v1201_v46 }
 0x171   : > { %1233 = vst.msk [vmem:[#allocation2 + $0x370] sm:$0xff] %vm300_vm3, %v1205_v61 }
 0x172   : > { %v1363_v14 = vld [vmem:[#allocation3] ss:$2 sm:$0xff]  ;;  %v1365_v15 = vld [vmem:[#allocation3 + $0x1] ss:$2 sm:$0xff]  ;;  %1335 = vst.msk [vmem:[#allocation3 + $0x18] sm:$0xf] %vm1250_vm4, %v1331_v19 }
 0x173   : > { %v1367_v16 = vmax.f32 %v1363_v14, %v1365_v15  ;;  %1386 = vst.msk [vmem:[#allocation3] sm:$0xff] %vm300_vm3, %v1382_v12  ;;  %v1385_v12 = vmax.f32 %v1377_v4, %v1381_v63  ;;  %v1463_v14 = vmax.f32 %v1455_v62, %v1459_v1  ;;  %v1464_v15 = vmax.f32 %v1456_v9, %v1460_v10  ;;  %v1486_v19 = vld [vmem:[#allocation2 + $0x260] sm:$0xff]  ;;  %v1458_v4 = vld [vmem:[#allocation2 + $0x218] sm:$0xf]  ;;  %v1537_v9 = vld [vmem:[#allocation2 + $0x2c8] sm:$0xff] }
 0x174   : > { %1387 = vst.msk [vmem:[#allocation3 + $0x8] sm:$0xff] %vm300_vm3, %v1383_v13  ;;  %v1541_v10 = vld [vmem:[#allocation2 + $0x2e8] sm:$0xff] }
 0x175   : > { %v1369_v17 = vpack.c.bf16 %v1367_v16, %v1367_v16  ;;  %v1623_v18 = vld [vmem:[#allocation4 + $0x18] sm:$0xf]  ;;  %1234 = vst.msk [vmem:[#allocation2 + $0x378] sm:$0xff] %vm300_vm3, %v1206_v7  ;;  %v1540_v7 = vld [vmem:[#allocation2 + $0x2e0] sm:$0xff] }
 0x176   : > { %1654 = vst.msk [vmem:[%s2397_s22 + $0x18] sm:$0xf] %vm1250_vm4, %v1623_v18  ;;  %v1482_v18 = vld [vmem:[#allocation2 + $0x240] sm:$0xff] }
 0x177   : > { %1372 = vst.msk [vmem:[#allocation4 + $0x20] sm:$0xf] %vm1250_vm4, %v1369_v17  ;;  %v1490_v37 = vmax.f32 %v1482_v18, %v1486_v19 }
 0x179   : > { %v1337_v45 = vld [vmem:[#allocation3 + $0x10] ss:$2 sm:$0x3f]  ;;  %v1339_v47 = vld [vmem:[#allocation3 + $0x11] ss:$2 sm:$0x3f] }
 0x17a   : > { %v1341_v50 = vmax.f32 %v1337_v45, %v1339_v47  ;;  %1361 = vst.msk [vmem:[#allocation3 + $0x10] sm:$0xff] %vm300_vm3, %v1357_v44  ;;  %v1434_v44 = vld [vmem:[#allocation2 + $0x1f0] sm:$0xff]  ;;  %v1431_v47 = vld [vmem:[#allocation2 + $0x1d8] sm:$0xf] }
 0x17b   : > { %v1390_v26 = vld [vmem:[#allocation3] ss:$2 sm:$0xff]  ;;  %v1392_v28 = vld [vmem:[#allocation3 + $0x1] ss:$2 sm:$0xff]  ;;  %1362 = vst.msk [vmem:[#allocation3 + $0x18] sm:$0xf] %vm1250_vm4, %v1358_v35  ;;  %v1439_v52 = vmax.f32 %v1431_v47, %v1435_v48 }
 0x17c   : > { %v1394_v31 = vmax.f32 %v1390_v26, %v1392_v28  ;;  %1413 = vst.msk [vmem:[#allocation3] sm:$0xff] %vm300_vm3, %v1409_v25  ;;  %v1343_v53 = vpack.c.bf16 %v1341_v50, %v1341_v50  ;;  %v1408_v25 = vld [vmem:[#allocation2 + $0x1b8] sm:$0xf]  ;;  %v1487_v26 = vld [vmem:[#allocation2 + $0x268] sm:$0xff]  ;;  %v1403_v28 = vld [vmem:[#allocation2 + $0x190] sm:$0xff]  ;;  %v1438_v50 = vmax.f32 %v1430_v43, %v1434_v44 }
 0x17d   : > { %1414 = vst.msk [vmem:[#allocation3 + $0x8] sm:$0xff] %vm300_vm3, %v1410_v29  ;;  %v1404_v29 = vld [vmem:[#allocation2 + $0x198] sm:$0xf]  ;;  %v1411_v30 = vmax.f32 %v1403_v28, %v1407_v22  ;;  %v1491_v38 = vmax.f32 %v1483_v23, %v1487_v26  ;;  %v1488_v22 = vld [vmem:[#allocation2 + $0x270] sm:$0xff]  ;;  %v1563_v28 = vld [vmem:[#allocation2 + $0x300] sm:$0xff] }
 0x17e   : > { %v1396_v41 = vpack.c.bf16 %v1394_v31, %v1394_v31  ;;  %v1625_v42 = vld [vmem:[#allocation4 + $0x20] sm:$0xf]  ;;  %1346 = vst.msk [vmem:[#allocation4 + $0x1c] sm:$0x7] %vm1264_vm5, %v1343_v53  ;;  %v1412_v36 = vmax.f32 %v1404_v29, %v1408_v25  ;;  %v1489_v25 = vld [vmem:[#allocation2 + $0x278] sm:$0xf] }
 0x17f   : > { %1656 = vst.msk [vmem:[%s2397_s22 + $0x20] sm:$0xf] %vm1250_vm4, %v1625_v42  ;;  %v1567_v29 = vld [vmem:[#allocation2 + $0x320] sm:$0xff]  ;;  %v1512_v48 = vld [vmem:[#allocation2 + $0x298] sm:$0xf] }
 0x180   : > { %1399 = vst.msk [vmem:[#allocation4 + $0x28] sm:$0xf] %vm1250_vm4, %v1396_v41 }
 0x182   : > { %v1364_v6 = vld [vmem:[#allocation3 + $0x10] ss:$2 sm:$0x3f]  ;;  %v1366_v2 = vld [vmem:[#allocation3 + $0x11] ss:$2 sm:$0x3f] }
 0x183   : > { %v1368_v13 = vmax.f32 %v1364_v6, %v1366_v2  ;;  %1388 = vst.msk [vmem:[#allocation3 + $0x10] sm:$0xff] %vm300_vm3, %v1384_v5  ;;  %v1462_v5 = vld [vmem:[#allocation2 + $0x238] sm:$0xf]  ;;  %v1536_v6 = vld [vmem:[#allocation2 + $0x2c0] sm:$0xff] }
 0x184   : > { %v1417_v57 = vld [vmem:[#allocation3] ss:$2 sm:$0xff]  ;;  %v1419_v49 = vld [vmem:[#allocation3 + $0x1] ss:$2 sm:$0xff]  ;;  %1389 = vst.msk [vmem:[#allocation3 + $0x18] sm:$0xf] %vm1250_vm4, %v1385_v12  ;;  %v1466_v2 = vmax.f32 %v1458_v4, %v1462_v5 }
 0x185   : > { %v1421_v58 = vmax.f32 %v1417_v57, %v1419_v49  ;;  %1440 = vst.msk [vmem:[#allocation3] sm:$0xff] %vm300_vm3, %v1436_v27  ;;  %v1370_v11 = vpack.c.bf16 %v1368_v13, %v1368_v13  ;;  %v1624_v24 = vld [vmem:[#allocation4 + $0x1c] sm:$0x7]  ;;  %v1517_v57 = vmax.f32 %v1509_v32, %v1513_v8  ;;  %v1515_v32 = vld [vmem:[#allocation2 + $0x2b0] sm:$0xff]  ;;  %v1590_v8 = vld [vmem:[#allocation2 + $0x340] sm:$0xff] }
 0x186   : > { %1441 = vst.msk [vmem:[#allocation3 + $0x8] sm:$0xff] %vm300_vm3, %v1437_v54  ;;  %v1514_v54 = vld [vmem:[#allocation2 + $0x2a8] sm:$0xff]  ;;  %v1539_v5 = vld [vmem:[#allocation2 + $0x2d8] sm:$0xf] }
 0x187   : > { %v1627_v55 = vld [vmem:[#allocation4 + $0x28] sm:$0xf]  ;;  %v1423_v56 = vpack.c.bf16 %v1421_v58, %v1421_v58  ;;  %1373 = vst.msk [vmem:[#allocation4 + $0x24] sm:$0x7] %vm1264_vm5, %v1370_v11  ;;  %v1518_v60 = vmax.f32 %v1510_v51, %v1514_v54  ;;  %v1516_v51 = vld [vmem:[#allocation2 + $0x2b8] sm:$0xf] }
 0x188   : > { %1658 = vst.msk [vmem:[%s2397_s22 + $0x28] sm:$0xf] %vm1250_vm4, %v1627_v55  ;;  %v1457_v55 = vld [vmem:[#allocation2 + $0x210] sm:$0xff]  ;;  %v1520_v54 = vmax.f32 %v1512_v48, %v1516_v51 }
 0x189   : > { %1426 = vst.msk [vmem:[#allocation4 + $0x30] sm:$0xf] %vm1250_vm4, %v1423_v56  ;;  %v1461_v56 = vld [vmem:[#allocation2 + $0x230] sm:$0xff] }
 0x18a   : > { %1655 = vst.msk [vmem:[%s2397_s22 + $0x1c] sm:$0x7] %vm1264_vm5, %v1624_v24  ;;  %v1465_v12 = vmax.f32 %v1457_v55, %v1461_v56  ;;  %v1595_v55 = vld [vmem:[#allocation2 + $0x368] sm:$0xff]  ;;  %v1538_v56 = vld [vmem:[#allocation2 + $0x2d0] sm:$0xff] }
 0x18b   : > { %v1391_v31 = vld [vmem:[#allocation3 + $0x10] ss:$2 sm:$0x3f]  ;;  %v1393_v33 = vld [vmem:[#allocation3 + $0x11] ss:$2 sm:$0x3f] }
 0x18c   : > { %v1395_v34 = vmax.f32 %v1391_v31, %v1393_v33  ;;  %1415 = vst.msk [vmem:[#allocation3 + $0x10] sm:$0xff] %vm300_vm3, %v1411_v30  ;;  %v1564_v30 = vld [vmem:[#allocation2 + $0x308] sm:$0xff] }
 0x18d   : > { %v1444_v16 = vld [vmem:[#allocation3] ss:$2 sm:$0xff]  ;;  %v1446_v0 = vld [vmem:[#allocation3 + $0x1] ss:$2 sm:$0xff]  ;;  %1416 = vst.msk [vmem:[#allocation3 + $0x18] sm:$0xf] %vm1250_vm4, %v1412_v36 }
 0x18e   : > { %v1448_v17 = vmax.f32 %v1444_v16, %v1446_v0  ;;  %1467 = vst.msk [vmem:[#allocation3] sm:$0xff] %vm300_vm3, %v1463_v14  ;;  %v1397_v41 = vpack.c.bf16 %v1395_v34, %v1395_v34  ;;  %v1626_v35 = vld [vmem:[#allocation4 + $0x24] sm:$0x7]  ;;  %v1545_v0 = vmax.f32 %v1537_v9, %v1541_v10  ;;  %v1568_v31 = vld [vmem:[#allocation2 + $0x328] sm:$0xff] }
 0x18f   : > { %1468 = vst.msk [vmem:[#allocation3 + $0x8] sm:$0xff] %vm300_vm3, %v1464_v15  ;;  %v1544_v15 = vmax.f32 %v1536_v6, %v1540_v7  ;;  %v1543_v6 = vld [vmem:[#allocation2 + $0x2f8] sm:$0xf] }
 0x190   : > { %v1450_v20 = vpack.c.bf16 %v1448_v17, %v1448_v17  ;;  %v1629_v21 = vld [vmem:[#allocation4 + $0x30] sm:$0xf]  ;;  %1400 = vst.msk [vmem:[#allocation4 + $0x2c] sm:$0x7] %vm1264_vm5, %v1397_v41  ;;  %v1547_v10 = vmax.f32 %v1539_v5, %v1543_v6 }
 0x191   : > { %1660 = vst.msk [vmem:[%s2397_s22 + $0x30] sm:$0xf] %vm1250_vm4, %v1629_v21  ;;  %v1484_v21 = vld [vmem:[#allocation2 + $0x250] sm:$0xff] }
 0x192   : > { %1453 = vst.msk [vmem:[#allocation4 + $0x38] sm:$0xf] %vm1250_vm4, %v1450_v20  ;;  %v1485_v20 = vld [vmem:[#allocation2 + $0x258] sm:$0xf]  ;;  %v1492_v33 = vmax.f32 %v1484_v21, %v1488_v22 }
 0x193   : > { %1657 = vst.msk [vmem:[%s2397_s22 + $0x24] sm:$0x7] %vm1264_vm5, %v1626_v35  ;;  %v1493_v34 = vmax.f32 %v1485_v20, %v1489_v25 }
 0x194   : > { %v1418_v27 = vld [vmem:[#allocation3 + $0x10] ss:$2 sm:$0x3f]  ;;  %v1420_v53 = vld [vmem:[#allocation3 + $0x11] ss:$2 sm:$0x3f] }
 0x195   : > { %v1422_v49 = vmax.f32 %v1418_v27, %v1420_v53  ;;  %1442 = vst.msk [vmem:[#allocation3 + $0x10] sm:$0xff] %vm300_vm3, %v1438_v50  ;;  %v1594_v50 = vld [vmem:[#allocation2 + $0x360] sm:$0xff] }
 0x196   : > { %v1471_v39 = vld [vmem:[#allocation3] ss:$2 sm:$0xff]  ;;  %v1473_v40 = vld [vmem:[#allocation3 + $0x1] ss:$2 sm:$0xff]  ;;  %1443 = vst.msk [vmem:[#allocation3 + $0x18] sm:$0xf] %vm1250_vm4, %v1439_v52 }
 0x197   : > { %v1475_v42 = vmax.f32 %v1471_v39, %v1473_v40  ;;  %1494 = vst.msk [vmem:[#allocation3] sm:$0xff] %vm300_vm3, %v1490_v37  ;;  %v1628_v62 = vld [vmem:[#allocation4 + $0x2c] sm:$0x7]  ;;  %v1424_v63 = vpack.c.bf16 %v1422_v49, %v1422_v49  ;;  %v1572_v40 = vmax.f32 %v1564_v30, %v1568_v31  ;;  %v1598_v49 = vmax.f32 %v1590_v8, %v1594_v50  ;;  %v1592_v31 = vld [vmem:[#allocation2 + $0x350] sm:$0xff] }
 0x198   : > { %1495 = vst.msk [vmem:[#allocation3 + $0x8] sm:$0xff] %vm300_vm3, %v1491_v38  ;;  %v1571_v38 = vmax.f32 %v1563_v28, %v1567_v29 }
 0x199   : > { %v1477_v45 = vpack.c.bf16 %v1475_v42, %v1475_v42  ;;  %v1631_v46 = vld [vmem:[#allocation4 + $0x38] sm:$0xf]  ;;  %1659 = vst.msk [vmem:[%s2397_s22 + $0x2c] sm:$0x7] %vm1264_vm5, %v1628_v62 }
 0x19a   : > { %1662 = vst.msk [vmem:[%s2397_s22 + $0x38] sm:$0xf] %vm1250_vm4, %v1631_v46 }
 0x19b   : > { %1480 = vst.msk [vmem:[#allocation4 + $0x40] sm:$0xf] %vm1250_vm4, %v1477_v45  ;;  %v1511_v45 = vld [vmem:[#allocation2 + $0x290] sm:$0xff] }
 0x19c   : > { %1427 = vst.msk [vmem:[#allocation4 + $0x34] sm:$0x7] %vm1264_vm5, %v1424_v63  ;;  %v1519_v52 = vmax.f32 %v1511_v45, %v1515_v32 }
 0x19d   : > { %v1445_v13 = vld [vmem:[#allocation3 + $0x10] ss:$2 sm:$0x3f]  ;;  %v1447_v14 = vld [vmem:[#allocation3 + $0x11] ss:$2 sm:$0x3f] }
 0x19e   : > { %v1449_v16 = vmax.f32 %v1445_v13, %v1447_v14  ;;  %1469 = vst.msk [vmem:[#allocation3 + $0x10] sm:$0xff] %vm300_vm3, %v1465_v12 }
 0x19f   : > { %v1498_v58 = vld [vmem:[#allocation3] ss:$2 sm:$0xff]  ;;  %v1500_v59 = vld [vmem:[#allocation3 + $0x1] ss:$2 sm:$0xff]  ;;  %1470 = vst.msk [vmem:[#allocation3 + $0x18] sm:$0xf] %vm1250_vm4, %v1466_v2 }
 0x1a0   : > { %v1502_v61 = vmax.f32 %v1498_v58, %v1500_v59  ;;  %1521 = vst.msk [vmem:[#allocation3] sm:$0xff] %vm300_vm3, %v1517_v57  ;;  %v1451_v19 = vpack.c.bf16 %v1449_v16, %v1449_v16  ;;  %v1565_v16 = vld [vmem:[#allocation2 + $0x310] sm:$0xff] }
 0x1a1   : > { %1522 = vst.msk [vmem:[#allocation3 + $0x8] sm:$0xff] %vm300_vm3, %v1518_v60 }
 0x1a2   : > { %v1504_v1 = vpack.c.bf16 %v1502_v61, %v1502_v61  ;;  %v1633_v3 = vld [vmem:[#allocation4 + $0x40] sm:$0xf]  ;;  %1454 = vst.msk [vmem:[#allocation4 + $0x3c] sm:$0x7] %vm1264_vm5, %v1451_v19  ;;  %v1591_v61 = vld [vmem:[#allocation2 + $0x348] sm:$0xff] }
 0x1a3   : > { %1664 = vst.msk [vmem:[%s2397_s22 + $0x40] sm:$0xf] %vm1250_vm4, %v1633_v3  ;;  %v1630_v26 = vld [vmem:[#allocation4 + $0x34] sm:$0x7]  ;;  %v1599_v7 = vmax.f32 %v1591_v61, %v1595_v55 }
 0x1a4   : > { %1507 = vst.msk [vmem:[#allocation4 + $0x48] sm:$0xf] %vm1250_vm4, %v1504_v1  ;;  %v1542_v1 = vld [vmem:[#allocation2 + $0x2f0] sm:$0xff] }
 0x1a5   : > { %1661 = vst.msk [vmem:[%s2397_s22 + $0x34] sm:$0x7] %vm1264_vm5, %v1630_v26  ;;  %v1546_v9 = vmax.f32 %v1538_v56, %v1542_v1 }
 0x1a6   : > { %v1472_v36 = vld [vmem:[#allocation3 + $0x10] ss:$2 sm:$0x3f]  ;;  %v1474_v37 = vld [vmem:[#allocation3 + $0x11] ss:$2 sm:$0x3f] }
 0x1a7   : > { %v1476_v39 = vmax.f32 %v1472_v36, %v1474_v37  ;;  %1496 = vst.msk [vmem:[#allocation3 + $0x10] sm:$0xff] %vm300_vm3, %v1492_v33  ;;  %v1596_v33 = vld [vmem:[#allocation2 + $0x370] sm:$0xff]  ;;  %v1597_v36 = vld [vmem:[#allocation2 + $0x378] sm:$0xf] }
 0x1a8   : > { %v1525_v11 = vld [vmem:[#allocation3] ss:$2 sm:$0xff]  ;;  %v1527_v17 = vld [vmem:[#allocation3 + $0x1] ss:$2 sm:$0xff]  ;;  %1497 = vst.msk [vmem:[#allocation3 + $0x18] sm:$0xf] %vm1250_vm4, %v1493_v34  ;;  %v1600_v37 = vmax.f32 %v1592_v31, %v1596_v33 }
 0x1a9   : > { %v1529_v18 = vmax.f32 %v1525_v11, %v1527_v17  ;;  %1548 = vst.msk [vmem:[#allocation3] sm:$0xff] %vm300_vm3, %v1544_v15  ;;  %v1478_v44 = vpack.c.bf16 %v1476_v39, %v1476_v39  ;;  %v1632_v47 = vld [vmem:[#allocation4 + $0x3c] sm:$0x7]  ;;  %v1569_v11 = vld [vmem:[#allocation2 + $0x330] sm:$0xff]  ;;  %v1570_v17 = vld [vmem:[#allocation2 + $0x338] sm:$0xf] }
 0x1aa   : > { %1549 = vst.msk [vmem:[#allocation3 + $0x8] sm:$0xff] %vm300_vm3, %v1545_v0  ;;  %v1566_v0 = vld [vmem:[#allocation2 + $0x318] sm:$0xf]  ;;  %v1573_v22 = vmax.f32 %v1565_v16, %v1569_v11 }
 0x1ab   : > { %v1635_v23 = vld [vmem:[#allocation4 + $0x48] sm:$0xf]  ;;  %v1531_v24 = vpack.c.bf16 %v1529_v18, %v1529_v18  ;;  %1481 = vst.msk [vmem:[#allocation4 + $0x44] sm:$0x7] %vm1264_vm5, %v1478_v44  ;;  %v1593_v34 = vld [vmem:[#allocation2 + $0x358] sm:$0xf] }
 0x1ac   : > { %1666 = vst.msk [vmem:[%s2397_s22 + $0x48] sm:$0xf] %vm1250_vm4, %v1635_v23  ;;  %v1574_v23 = vmax.f32 %v1566_v0, %v1570_v17 }
 0x1ad   : > { %1534 = vst.msk [vmem:[#allocation4 + $0x50] sm:$0xf] %vm1250_vm4, %v1531_v24 }
 0x1ae   : > { %1663 = vst.msk [vmem:[%s2397_s22 + $0x3c] sm:$0x7] %vm1264_vm5, %v1632_v47 }
 0x1af   : > { %v1499_v27 = vld [vmem:[#allocation3 + $0x10] ss:$2 sm:$0x3f]  ;;  %v1501_v53 = vld [vmem:[#allocation3 + $0x11] ss:$2 sm:$0x3f] }
 0x1b0   : > { %v1503_v57 = vmax.f32 %v1499_v27, %v1501_v53  ;;  %1523 = vst.msk [vmem:[#allocation3 + $0x10] sm:$0xff] %vm300_vm3, %v1519_v52 }
 0x1b1   : > { %v1552_v41 = vld [vmem:[#allocation3] ss:$2 sm:$0xff]  ;;  %v1554_v42 = vld [vmem:[#allocation3 + $0x1] ss:$2 sm:$0xff]  ;;  %1524 = vst.msk [vmem:[#allocation3 + $0x18] sm:$0xf] %vm1250_vm4, %v1520_v54 }
 0x1b2   : > { %v1556_v43 = vmax.f32 %v1552_v41, %v1554_v42  ;;  %1575 = vst.msk [vmem:[#allocation3] sm:$0xff] %vm300_vm3, %v1571_v38  ;;  %v1505_v62 = vpack.c.bf16 %v1503_v57, %v1503_v57  ;;  %v1634_v63 = vld [vmem:[#allocation4 + $0x44] sm:$0x7]  ;;  %v1601_v42 = vmax.f32 %v1593_v34, %v1597_v36 }
 0x1b3   : > { %1576 = vst.msk [vmem:[#allocation3 + $0x8] sm:$0xff] %vm300_vm3, %v1572_v40 }
 0x1b4   : > { %v1558_v46 = vpack.c.bf16 %v1556_v43, %v1556_v43  ;;  %v1637_v35 = vld [vmem:[#allocation4 + $0x50] sm:$0xf]  ;;  %1665 = vst.msk [vmem:[%s2397_s22 + $0x44] sm:$0x7] %vm1264_vm5, %v1634_v63 }
 0x1b5   : > { %1668 = vst.msk [vmem:[%s2397_s22 + $0x50] sm:$0xf] %vm1250_vm4, %v1637_v35 }
 0x1b6   : > { %1561 = vst.msk [vmem:[#allocation4 + $0x58] sm:$0xf] %vm1250_vm4, %v1558_v46 }
 0x1b7   : > { %1508 = vst.msk [vmem:[#allocation4 + $0x4c] sm:$0x7] %vm1264_vm5, %v1505_v62 }
 0x1b8   : > { %v1526_v12 = vld [vmem:[#allocation3 + $0x10] ss:$2 sm:$0x3f]  ;;  %v1528_v2 = vld [vmem:[#allocation3 + $0x11] ss:$2 sm:$0x3f] }
 0x1b9   : > { %v1530_v13 = vmax.f32 %v1526_v12, %v1528_v2  ;;  %1550 = vst.msk [vmem:[#allocation3 + $0x10] sm:$0xff] %vm300_vm3, %v1546_v9 }
 0x1ba   : > { %v1579_v58 = vld [vmem:[#allocation3] ss:$2 sm:$0xff]  ;;  %v1581_v59 = vld [vmem:[#allocation3 + $0x1] ss:$2 sm:$0xff]  ;;  %1551 = vst.msk [vmem:[#allocation3 + $0x18] sm:$0xf] %vm1250_vm4, %v1547_v10 }
 0x1bb   : > { %v1583_v60 = vmax.f32 %v1579_v58, %v1581_v59  ;;  %1602 = vst.msk [vmem:[#allocation3] sm:$0xff] %vm300_vm3, %v1598_v49  ;;  %v1532_v15 = vpack.c.bf16 %v1530_v13, %v1530_v13 }
 0x1bc   : > { %1603 = vst.msk [vmem:[#allocation3 + $0x8] sm:$0xff] %vm300_vm3, %v1599_v7 }
 0x1bd   : > { %v1585_v3 = vpack.c.bf16 %v1583_v60, %v1583_v60  ;;  %v1639_v4 = vld [vmem:[#allocation4 + $0x58] sm:$0xf]  ;;  %1535 = vst.msk [vmem:[#allocation4 + $0x54] sm:$0x7] %vm1264_vm5, %v1532_v15 }
 0x1be   : > { %1670 = vst.msk [vmem:[%s2397_s22 + $0x58] sm:$0xf] %vm1250_vm4, %v1639_v4  ;;  %v1636_v14 = vld [vmem:[#allocation4 + $0x4c] sm:$0x7] }
 0x1bf   : > { %1588 = vst.msk [vmem:[#allocation4 + $0x60] sm:$0xf] %vm1250_vm4, %v1585_v3 }
 0x1c0   : > { %1667 = vst.msk [vmem:[%s2397_s22 + $0x4c] sm:$0x7] %vm1264_vm5, %v1636_v14 }
 0x1c1   : > { %v1553_v24 = vld [vmem:[#allocation3 + $0x10] ss:$2 sm:$0x3f]  ;;  %v1555_v25 = vld [vmem:[#allocation3 + $0x11] ss:$2 sm:$0x3f] }
 0x1c2   : > { %v1557_v28 = vmax.f32 %v1553_v24, %v1555_v25  ;;  %1577 = vst.msk [vmem:[#allocation3 + $0x10] sm:$0xff] %vm300_vm3, %v1573_v22 }
 0x1c3   : > { %v1606_v19 = vld [vmem:[#allocation3] ss:$2 sm:$0xff]  ;;  %v1608_v20 = vld [vmem:[#allocation3 + $0x1] ss:$2 sm:$0xff]  ;;  %1578 = vst.msk [vmem:[#allocation3 + $0x18] sm:$0xf] %vm1250_vm4, %v1574_v23 }
 0x1c4   : > { %v1610_v21 = vmax.f32 %v1606_v19, %v1608_v20  ;;  %v1559_v29 = vpack.c.bf16 %v1557_v28, %v1557_v28  ;;  %v1638_v30 = vld [vmem:[#allocation4 + $0x54] sm:$0x7] }
 0x1c5   : > { %1669 = vst.msk [vmem:[%s2397_s22 + $0x54] sm:$0x7] %vm1264_vm5, %v1638_v30 }
 0x1c6   : > { %v1641_v18 = vld [vmem:[#allocation4 + $0x60] sm:$0xf]  ;;  %v1612_v26 = vpack.c.bf16 %v1610_v21, %v1610_v21  ;;  %1562 = vst.msk [vmem:[#allocation4 + $0x5c] sm:$0x7] %vm1264_vm5, %v1559_v29 }
 0x1c7   : > { %1672 = vst.msk [vmem:[%s2397_s22 + $0x60] sm:$0xf] %vm1250_vm4, %v1641_v18 }
 0x1c8   : > { %1615 = vst.msk [vmem:[#allocation4 + $0x68] sm:$0xf] %vm1250_vm4, %v1612_v26 }
 0x1ca   : > { %v1580_v38 = vld [vmem:[#allocation3 + $0x10] ss:$2 sm:$0x3f]  ;;  %v1582_v39 = vld [vmem:[#allocation3 + $0x11] ss:$2 sm:$0x3f] }
 0x1cb   : > { %v1584_v40 = vmax.f32 %v1580_v38, %v1582_v39  ;;  %1604 = vst.msk [vmem:[#allocation3 + $0x10] sm:$0xff] %vm300_vm3, %v1600_v37 }
 0x1cc   : > { %1605 = vst.msk [vmem:[#allocation3 + $0x18] sm:$0xf] %vm1250_vm4, %v1601_v42 }
 0x1cd   : > { %v1586_v43 = vpack.c.bf16 %v1584_v40, %v1584_v40  ;;  %v1640_v44 = vld [vmem:[#allocation4 + $0x5c] sm:$0x7] }
 0x1ce   : > { %1671 = vst.msk [vmem:[%s2397_s22 + $0x5c] sm:$0x7] %vm1264_vm5, %v1640_v44 }
 0x1cf   : > { %v1643_v41 = vld [vmem:[#allocation4 + $0x68] sm:$0xf]  ;;  %1589 = vst.msk [vmem:[#allocation4 + $0x64] sm:$0x7] %vm1264_vm5, %v1586_v43 }
 0x1d0   : > { %1674 = vst.msk [vmem:[%s2397_s22 + $0x68] sm:$0xf] %vm1250_vm4, %v1643_v41 }
 0x1d3   : > { %v1607_v45 = vld [vmem:[#allocation3 + $0x10] ss:$2 sm:$0x3f]  ;;  %v1609_v46 = vld [vmem:[#allocation3 + $0x11] ss:$2 sm:$0x3f] }
 0x1d4   : > { %v1611_v35 = vmax.f32 %v1607_v45, %v1609_v46 }
 0x1d6   : > { %v1642_v47 = vld [vmem:[#allocation4 + $0x64] sm:$0x7]  ;;  %v1613_v48 = vpack.c.bf16 %v1611_v35, %v1611_v35 }
 0x1d7   : > { %1673 = vst.msk [vmem:[%s2397_s22 + $0x64] sm:$0x7] %vm1264_vm5, %v1642_v47 }
 0x1d8   : > { %1616 = vst.msk [vmem:[#allocation4 + $0x6c] sm:$0x7] %vm1264_vm5, %v1613_v48 }
 0x1dc   :  { %19 = sbr.rel (!%p17_p0) target bundleno = 1 (0x1), region = 60 }
 0x1df   : > { %v1644_v32 = vld [vmem:[#allocation4 + $0x6c] sm:$0x7] }
 0x1e0   : > { %1675 = vst.msk [vmem:[%s2397_s22 + $0x6c] sm:$0x7] %vm1264_vm5, %v1644_v32 }

// kernel: cnn_forward.4
= control target key start
LH: loop header
LB: loop body
LE: loop exit
PB: predicated region body
PF: predicated region fallthrough
CT: control target
= control target key end

     0   :  { %s2331_s12 = smov 0   ;;  %s2810_s0 = inlined_call_operand.vmem [shape: bf16[576,80], index: 0, kind: input, shape index: {}]   ;;  %s2811_s1 = inlined_call_operand.vmem [shape: bf16[5,80,32], index: 1, kind: input, shape index: {}]   ;;  %s2812_s2 = inlined_call_operand.vmem [shape: f32[1,32], index: 2, kind: input, shape index: {}]   ;;  %s2813_s3 = inlined_call_operand.vmem [shape: bf16[2,7,7,32], index: 3, kind: output, shape index: {}]  }
   0x1 LB: > { %v2220_v0 = vld [vmem:[%s2811_s1 + $0x48] sm:$0xff]  ;;  %v2219_v1 = vld [vmem:[%s2811_s1 + $0x40] sm:$0xff]  ;;  %s2343_s17 = smul.u32 288, %s2309_s12  ;;  %v2218_v2 = vld [vmem:[%s2811_s1 + $0x38] sm:$0xff]  ;;  %vm208_vm0 = vcmask 654336   ;;  %vm1490_vm1 = vcmask 261120   ;;  %s2309_s12 = sphi %s2331_s12, %s20_s12  }
   0x2   : > { %254 = vmatpush.bf16.msra.mxu0 %v2220_v0  ;;  %2279 = vmatpush.bf16.msra.mxu1 %v2220_v0  ;;  %v2217_v3 = vld [vmem:[%s2811_s1 + $0x30] sm:$0xff]  ;;  %v2216_v4 = vld [vmem:[%s2811_s1 + $0x28] sm:$0xff]  ;;  %v2201_v5 = vld [vmem:[%s2811_s1 + $0x20] sm:$0xff]  ;;  %vm1526_vm2 = vcmask 259072   ;;  %vm1533_vm3 = vcmask 257024   ;;  %s2278_s20 = smul.u32 28, %s2309_s12 }
   0x3   : > { %2281 = vmatpush.bf16.msra.mxu3 %v2220_v0  ;;  %2280 = vmatpush.bf16.msra.mxu2 %v2220_v0  ;;  %s64_s18 = sadd.s32 16, %s2343_s17  ;;  %v2258_v6 = vld [vmem:[%s2811_s1 + $0x98] sm:$0xff]  ;;  %v2277_v7 = vld [vmem:[%s2811_s1 + $0xc0] sm:$0xff]  ;;  %v2239_v12 = vld [vmem:[%s2811_s1 + $0x70] sm:$0xff]  ;;  %s1137_s27 = sadd.s32 64, %s2343_s17 }
   0x4   : > { %s65_s21 = sshra.s32 %s64_s18, 3  ;;  %v2200_v11 = vld [vmem:[%s2811_s1 + $0x18] sm:$0xff]  ;;  %v2257_v13 = vld [vmem:[%s2811_s1 + $0x90] sm:$0xff]  ;;  %v2238_v17 = vld [vmem:[%s2811_s1 + $0x68] sm:$0xff]  ;;  %s844_s28 = sadd.s32 48, %s2343_s17 }
   0x5   : > { %s1688_s24 = sshll.u32 %s65_s21, 2  ;;  %v2276_v14 = vld [vmem:[%s2811_s1 + $0xb8] sm:$0xff]  ;;  %v2199_v16 = vld [vmem:[%s2811_s1 + $0x10] sm:$0xff]  ;;  %v2256_v18 = vld [vmem:[%s2811_s1 + $0x88] sm:$0xff]  ;;  %s551_s21 = sadd.s32 32, %s2343_s17 }
   0x6   : > { %255 = vmatpush.bf16.msra.mxu0 %v2219_v1  ;;  %2282 = vmatpush.bf16.msra.mxu1 %v2219_v1  ;;  %s2358_s29 = scalar_lea.vmem %s2810_s0, %s1688_s24  ;;  %v2275_v19 = vld [vmem:[%s2811_s1 + $0xb0] sm:$0xff]  ;;  %v2198_v20 = vld [vmem:[%s2811_s1 + $0x8] sm:$0xff]  ;;  %v2237_v21 = vld [vmem:[%s2811_s1 + $0x60] sm:$0xff]  ;;  %s552_s22 = sshra.s32 %s551_s21, 3  ;;  %vm1534_vm4 = vsmask.f32 3328 }
   0x7   : > { %2284 = vmatpush.bf16.msra.mxu3 %v2219_v1  ;;  %2283 = vmatpush.bf16.msra.mxu2 %v2219_v1  ;;  %v2202_v8 = vld [vmem:[%s2358_s29] sm:$0xff]  ;;  %v2212_v10 = vld [vmem:[%s2358_s29 + $0x50] sm:$0xff]  ;;  %v2274_v23 = vld [vmem:[%s2811_s1 + $0xa8] sm:$0xff]  ;;  %s1879_s23 = sshll.u32 %s552_s22, 2  ;;  %s22_s30 = sshra.s32 %s2343_s17, 3 }
   0x8   : > { %v2206_v9 = vld [vmem:[%s2358_s29 + $0x20] sm:$0xff]  ;;  %v2236_v24 = vld [vmem:[%s2811_s1 + $0x58] sm:$0xff]  ;;  %v2203_v25 = vld [vmem:[%s2358_s29 + $0x8] sm:$0xff]  ;;  %s2443_s26 = scalar_lea.vmem %s2810_s0, %s1879_s23  ;;  %s1138_s4 = sshra.s32 %s1137_s27, 3 }
   0x9   : > { %v2210_v15 = vld [vmem:[%s2358_s29 + $0x40] sm:$0xff]  ;;  %v2207_v26 = vld [vmem:[%s2358_s29 + $0x28] sm:$0xff]  ;;  %v2213_v27 = vld [vmem:[%s2358_s29 + $0x58] sm:$0xff]  ;;  %s845_s5 = sshra.s32 %s844_s28, 3  ;;  %s1687_s6 = sshll.u32 %s22_s30, 2 }
   0xa   : > { %256 = vmatpush.bf16.msra.mxu0 %v2218_v2  ;;  %2285 = vmatpush.bf16.msra.mxu1 %v2218_v2  ;;  %v2255_v22 = vld [vmem:[%s2811_s1 + $0x80] sm:$0xff]  ;;  %v2211_v28 = vld [vmem:[%s2358_s29 + $0x48] sm:$0xff]  ;;  %v2235_v29 = vld [vmem:[%s2811_s1 + $0x50] sm:$0xff]  ;;  %s2081_s7 = sshll.u32 %s1138_s4, 2  ;;  %s1980_s8 = sshll.u32 %s845_s5, 2 }
   0xb   : > { %2287 = vmatpush.bf16.msra.mxu3 %v2218_v2  ;;  %2286 = vmatpush.bf16.msra.mxu2 %v2218_v2  ;;  %v2254_v30 = vld [vmem:[%s2811_s1 + $0x78] sm:$0xff]  ;;  %v2197_v31 = vld [vmem:[%s2811_s1] sm:$0xff]  ;;  %v2204_v33 = vld [vmem:[%s2358_s29 + $0x10] sm:$0xff]  ;;  %s2464_s10 = scalar_lea.vmem %s2810_s0, %s1687_s6  ;;  %s2469_s14 = scalar_lea.vmem %s2810_s0, %s2081_s7 }
   0xc   : > { %v2273_v32 = vld [vmem:[%s2811_s1 + $0xa0] sm:$0xff]  ;;  %v2208_v34 = vld [vmem:[%s2358_s29 + $0x30] sm:$0xff]  ;;  %v2205_v37 = vld [vmem:[%s2358_s29 + $0x18] sm:$0xff]  ;;  %s2474_s16 = scalar_lea.vmem %s2810_s0, %s1980_s8  ;;  %s2679_s23 = scalar_lea.vmem %s2813_s3, %s2278_s20 }
   0xd   : > { %v2214_v35 = vld [vmem:[%s2358_s29 + $0x60] sm:$0xff]  ;;  %v2209_v38 = vld [vmem:[%s2358_s29 + $0x38] sm:$0xff]  ;;  %v2215_v39 = vld [vmem:[%s2358_s29 + $0x68] sm:$0xff]  ;;  %s20_s12 = sadd.s32 1, %s2309_s12  }
   0xe   : > { %257 = vmatpush.bf16.msra.mxu0 %v2217_v3  ;;  %2288 = vmatpush.bf16.msra.mxu1 %v2217_v3  ;;  %v2221_v36 = vld [vmem:[%s2443_s26] sm:$0xff]  ;;  %v2222_v40 = vld [vmem:[%s2443_s26 + $0x8] sm:$0xff]  ;;  %v2223_v44 = vld [vmem:[%s2443_s26 + $0x10] sm:$0xff]  ;;  %p17_p0 = scmp.ge.s32.totalorder %s20_s12, 2  }
   0xf   : > { %2290 = vmatpush.bf16.msra.mxu3 %v2217_v3  ;;  %2289 = vmatpush.bf16.msra.mxu2 %v2217_v3  ;;  %v2183_v41 = vld [vmem:[%s2464_s10] sm:$0xff]  ;;  %v2184_v45 = vld [vmem:[%s2464_s10 + $0x8] sm:$0xff]  ;;  %v2224_v48 = vld [vmem:[%s2443_s26 + $0x18] sm:$0xff] }
  0x10   : > { %v2259_v42 = vld [vmem:[%s2469_s14] sm:$0xff]  ;;  %v2260_v46 = vld [vmem:[%s2469_s14 + $0x8] sm:$0xff]  ;;  %v2185_v49 = vld [vmem:[%s2464_s10 + $0x10] sm:$0xff] }
  0x11   : > { %v2240_v43 = vld [vmem:[%s2474_s16] sm:$0xff]  ;;  %v2241_v47 = vld [vmem:[%s2474_s16 + $0x8] sm:$0xff]  ;;  %v2261_v50 = vld [vmem:[%s2469_s14 + $0x10] sm:$0xff] }
  0x12   : > { %258 = vmatpush.bf16.msra.mxu0 %v2216_v4  ;;  %2291 = vmatpush.bf16.msra.mxu1 %v2216_v4  ;;  %v2242_v51 = vld [vmem:[%s2474_s16 + $0x10] sm:$0xff]  ;;  %v2225_v52 = vld [vmem:[%s2443_s26 + $0x20] sm:$0xff]  ;;  %v2186_v53 = vld [vmem:[%s2464_s10 + $0x18] sm:$0xff] }
  0x13   : > { %2293 = vmatpush.bf16.msra.mxu3 %v2216_v4  ;;  %2292 = vmatpush.bf16.msra.mxu2 %v2216_v4  ;;  %v2262_v54 = vld [vmem:[%s2469_s14 + $0x18] sm:$0xff]  ;;  %v2226_v56 = vld [vmem:[%s2443_s26 + $0x28] sm:$0xff]  ;;  %v2187_v57 = vld [vmem:[%s2464_s10 + $0x20] sm:$0xff] }
  0x14   : > { %v2243_v55 = vld [vmem:[%s2474_s16 + $0x18] sm:$0xff]  ;;  %v2263_v58 = vld [vmem:[%s2469_s14 + $0x20] sm:$0xff]  ;;  %v2227_v62 = vld [vmem:[%s2443_s26 + $0x30] sm:$0xff] }
  0x15   : > { %1775 = vmatmul.msk.bf16.vlgmr.msra.gmra.mxu0 %vm208_vm0, %v2202_v8  ;;  %1779 = vmatmul.msk.bf16.vlgmr.msra.gmra.mxu1 %vm208_vm0, %v2206_v9  ;;  %v2244_v61 = vld [vmem:[%s2474_s16 + $0x20] sm:$0xff]  ;;  %v2188_v4 = vld [vmem:[%s2464_s10 + $0x28] sm:$0xff]  ;;  %vm2663_vm5 = vmand %vm1533_vm3, %vm1534_vm4 }
  0x16   : > { %475 = vmatpush.bf16.msrb.mxu1 %v2201_v5  ;;  %1326 = vmatpush.bf16.msrb.mxu0 %v2277_v7  ;;  %v2264_v5 = vld [vmem:[%s2469_s14 + $0x28] sm:$0xff] }
  0x17   : > { %1033 = vmatpush.bf16.msrb.mxu3 %v2258_v6  ;;  %740 = vmatpush.bf16.msrb.mxu2 %v2239_v12  ;;  %v2245_v8 = vld [vmem:[%s2474_s16 + $0x28] sm:$0xff] }
  0x18   : > { %1785 = vmatmul.msk.bf16.vlgmr.msra.gmra.mxu3 %vm208_vm0, %v2212_v10  ;;  %1783 = vmatmul.msk.bf16.vlgmr.msra.gmra.mxu2 %vm208_vm0, %v2210_v15  ;;  %v2228_v10 = vld [vmem:[%s2443_s26 + $0x38] sm:$0xff] }
  0x1a   : > { %476 = vmatpush.bf16.msrb.mxu1 %v2200_v11  ;;  %1327 = vmatpush.bf16.msrb.mxu0 %v2276_v14 }
  0x1b   : > { %1034 = vmatpush.bf16.msrb.mxu3 %v2257_v13  ;;  %741 = vmatpush.bf16.msrb.mxu2 %v2238_v17  ;;  %v2265_v17 = vld [vmem:[%s2469_s14 + $0x30] sm:$0xff] }
  0x1e   : > { %477 = vmatpush.bf16.msrb.mxu1 %v2199_v16  ;;  %1328 = vmatpush.bf16.msrb.mxu0 %v2275_v19  ;;  %v2189_v16 = vld [vmem:[%s2464_s10 + $0x30] sm:$0xff] }
  0x1f   : > { %1035 = vmatpush.bf16.msrb.mxu3 %v2256_v18  ;;  %742 = vmatpush.bf16.msrb.mxu2 %v2237_v21 }
  0x22   : > { %478 = vmatpush.bf16.msrb.mxu1 %v2198_v20  ;;  %1329 = vmatpush.bf16.msrb.mxu0 %v2274_v23  ;;  %v2246_v20 = vld [vmem:[%s2474_s16 + $0x30] sm:$0xff] }
  0x23   : > { %1036 = vmatpush.bf16.msrb.mxu3 %v2255_v22  ;;  %743 = vmatpush.bf16.msrb.mxu2 %v2236_v24  ;;  %v2229_v22 = vld [vmem:[%s2443_s26 + $0x40] sm:$0xff] }
  0x25   : > { %1776 = vmatmul.msk.bf16.gmra.mxu0 %vm208_vm0, %v2203_v25  ;;  %1780 = vmatmul.msk.bf16.gmra.mxu1 %vm208_vm0, %v2207_v26 }
  0x26   : > { %479 = vmatpush.bf16.msrb.mxu1 %v2197_v31  ;;  %1330 = vmatpush.bf16.msrb.mxu0 %v2273_v32  ;;  %v2247_v32 = vld [vmem:[%s2474_s16 + $0x38] sm:$0xff] }
  0x27   : > { %744 = vmatpush.bf16.msrb.mxu2 %v2235_v29  ;;  %1037 = vmatpush.bf16.msrb.mxu3 %v2254_v30  ;;  %v2266_v29 = vld [vmem:[%s2469_s14 + $0x38] sm:$0xff] }
  0x28   : > { %1786 = vmatmul.msk.bf16.gmra.mxu3 %vm208_vm0, %v2213_v27  ;;  %1784 = vmatmul.msk.bf16.gmra.mxu2 %vm208_vm0, %v2211_v28  ;;  %v2190_v28 = vld [vmem:[%s2464_s10 + $0x38] sm:$0xff] }
  0x35   : > { %1777 = vmatmul.msk.bf16.gmra.mxu0 %vm208_vm0, %v2204_v33  ;;  %1781 = vmatmul.msk.bf16.gmra.mxu1 %vm208_vm0, %v2208_v34  ;;  %v2230_v34 = vld [vmem:[%s2443_s26 + $0x48] sm:$0xff] }
  0x38   : > { %1787 = vmatmul.msk.bf16.gmra.mxu3 %vm208_vm0, %v2214_v35  ;;  %1966 = vmatmul.msk.bf16.vlgmr.msrb.gmra.mxu2 %vm208_vm0, %v2221_v36 }
  0x45   : > { %1778 = vmatmul.msk.bf16.gmra.mxu0 %vm208_vm0, %v2205_v37  ;;  %1782 = vmatmul.msk.bf16.gmra.mxu1 %vm208_vm0, %v2209_v38 }
  0x48   : > { %1788 = vmatmul.msk.bf16.gmra.mxu3 %vm208_vm0, %v2215_v39  ;;  %1967 = vmatmul.msk.bf16.gmra.mxu2 %vm208_vm0, %v2222_v40  ;;  %v2191_v40 = vld [vmem:[%s2464_s10 + $0x40] sm:$0xff] }
  0x55   : > { %1865 = vmatmul.msk.bf16.vlgmr.msrb.gmra.mxu1 %vm208_vm0, %v2183_v41  ;;  %2168 = vmatmul.msk.bf16.vlgmr.msrb.gmra.mxu0 %vm208_vm0, %v2259_v42  ;;  %v2267_v41 = vld [vmem:[%s2469_s14 + $0x40] sm:$0xff] }
  0x58   : > { %2067 = vmatmul.msk.bf16.vlgmr.msrb.gmra.mxu3 %vm208_vm0, %v2240_v43  ;;  %1968 = vmatmul.msk.bf16.gmra.mxu2 %vm208_vm0, %v2223_v44  ;;  %v2248_v44 = vld [vmem:[%s2474_s16 + $0x40] sm:$0xff] }
  0x65   : > { %1866 = vmatmul.msk.bf16.gmra.mxu1 %vm208_vm0, %v2184_v45  ;;  %2169 = vmatmul.msk.bf16.gmra.mxu0 %vm208_vm0, %v2260_v46 }
  0x68   : > { %2068 = vmatmul.msk.bf16.gmra.mxu3 %vm208_vm0, %v2241_v47  ;;  %1969 = vmatmul.msk.bf16.gmra.mxu2 %vm208_vm0, %v2224_v48  ;;  %v2231_v47 = vld [vmem:[%s2443_s26 + $0x50] sm:$0xff] }
  0x75   : > { %1867 = vmatmul.msk.bf16.gmra.mxu1 %vm208_vm0, %v2185_v49  ;;  %2170 = vmatmul.msk.bf16.gmra.mxu0 %vm208_vm0, %v2261_v50 }
  0x78   : > { %2069 = vmatmul.msk.bf16.gmra.mxu3 %vm208_vm0, %v2242_v51  ;;  %1970 = vmatmul.msk.bf16.gmra.mxu2 %vm208_vm0, %v2225_v52  ;;  %v2608_v51 = vld [vmem:[%s2812_s2] ss:$0 sm:$0xff] }
  0x85   : > { %1868 = vmatmul.msk.bf16.gmra.mxu1 %vm208_vm0, %v2186_v53  ;;  %2171 = vmatmul.msk.bf16.gmra.mxu0 %vm208_vm0, %v2262_v54 }
  0x88   : > { %2070 = vmatmul.msk.bf16.gmra.mxu3 %vm208_vm0, %v2243_v55  ;;  %1971 = vmatmul.msk.bf16.gmra.mxu2 %vm208_vm0, %v2226_v56 }
  0x92   : > { %v2510_v59 = vpop.f32.mrf.mxu0  ;;  %v2512_v60 = vpop.f32.mrf.mxu1 }
  0x95   : > { %1869 = vmatmul.msk.bf16.gmra.mxu1 %vm208_vm0, %v2187_v57  ;;  %2172 = vmatmul.msk.bf16.gmra.mxu0 %vm208_vm0, %v2263_v58 }
  0x98   : > { %2071 = vmatmul.msk.bf16.gmra.mxu3 %vm208_vm0, %v2244_v61  ;;  %1972 = vmatmul.msk.bf16.gmra.mxu2 %vm208_vm0, %v2227_v62  ;;  %v2192_v62 = vld [vmem:[%s2464_s10 + $0x48] sm:$0xff] }
  0x9a   : > { %v2522_v0 = vpop.f32.mrf.mxu0  ;;  %v2524_v1 = vpop.f32.mrf.mxu1 }
  0x9b   : > { %v2519_v63 = vpop.f32.mrf.mxu3  ;;  %v2526_v2 = vpop.f32.mrf.mxu2 }
  0xa2   : > { %v2532_v6 = vpop.f32.mrf.mxu0  ;;  %v2534_v7 = vpop.f32.mrf.mxu1 }
  0xa3   : > { %v2528_v3 = vpop.f32.mrf.mxu3  ;;  %v2537_v9 = vpop.f32.mrf.mxu2 }
  0xa5   : > { %1870 = vmatmul.msk.bf16.gmra.mxu1 %vm208_vm0, %v2188_v4  ;;  %2173 = vmatmul.msk.bf16.gmra.mxu0 %vm208_vm0, %v2264_v5  ;;  %v2268_v4 = vld [vmem:[%s2469_s14 + $0x48] sm:$0xff] }
  0xa8   : > { %2072 = vmatmul.msk.bf16.gmra.mxu3 %vm208_vm0, %v2245_v8  ;;  %1973 = vmatmul.msk.bf16.gmra.mxu2 %vm208_vm0, %v2228_v10 }
  0xaa   : > { %v2546_v12 = vpop.f32.mrf.mxu0  ;;  %v2548_v13 = vpop.f32.mrf.mxu1 }
  0xab   : > { %v2543_v11 = vpop.f32.mrf.mxu3  ;;  %v2550_v14 = vpop.f32.mrf.mxu2 }
  0xb2   : > { %v2556_v18 = vpop.f32.mrf.mxu0  ;;  %v2558_v19 = vpop.f32.mrf.mxu1 }
  0xb3   : > { %v2552_v15 = vpop.f32.mrf.mxu3  ;;  %v2561_v21 = vpop.f32.mrf.mxu2 }
  0xb5   : > { %1871 = vmatmul.msk.bf16.gmra.mxu1 %vm208_vm0, %v2189_v16  ;;  %2174 = vmatmul.msk.bf16.gmra.mxu0 %vm208_vm0, %v2265_v17  ;;  %v2249_v16 = vld [vmem:[%s2474_s16 + $0x48] sm:$0xff] }
  0xb8   : > { %2073 = vmatmul.msk.bf16.gmra.mxu3 %vm208_vm0, %v2246_v20  ;;  %1974 = vmatmul.msk.bf16.gmra.mxu2 %vm208_vm0, %v2229_v22  ;;  %v2232_v22 = vld [vmem:[%s2443_s26 + $0x58] sm:$0xff] }
  0xba   : > { %v2570_v24 = vpop.f32.mrf.mxu0  ;;  %v2572_v25 = vpop.f32.mrf.mxu1 }
  0xbb   : > { %v2567_v23 = vpop.f32.mrf.mxu3  ;;  %v746_v26 = vpop.f32.mrf.mxu2 }
  0xc2   : > { %v2578_v30 = vpop.f32.mrf.mxu0  ;;  %v2580_v31 = vpop.f32.mrf.mxu1 }
  0xc3   : > { %v2574_v27 = vpop.f32.mrf.mxu3  ;;  %v748_v33 = vpop.f32.mrf.mxu2 }
  0xc5   : > { %1872 = vmatmul.msk.bf16.gmra.mxu1 %vm208_vm0, %v2190_v28  ;;  %2175 = vmatmul.msk.bf16.gmra.mxu0 %vm208_vm0, %v2266_v29 }
  0xc8   : > { %2074 = vmatmul.msk.bf16.gmra.mxu3 %vm208_vm0, %v2247_v32  ;;  %1975 = vmatmul.msk.bf16.gmra.mxu2 %vm208_vm0, %v2230_v34 }
  0xca   : > { %v2590_v36 = vpop.f32.mrf.mxu0  ;;  %v2592_v37 = vpop.f32.mrf.mxu1 }
  0xcb   : > { %v2587_v35 = vpop.f32.mrf.mxu3  ;;  %v751_v38 = vpop.f32.mrf.mxu2 }
  0xd2   : > { %v481_v42 = vpop.f32.mrf.mxu1  ;;  %v1332_v43 = vpop.f32.mrf.mxu0 }
  0xd3   : > { %v2594_v39 = vpop.f32.mrf.mxu3  ;;  %v482_v45 = vadd.f32 %v481_v42, %v2510_v59  ;;  %v753_v46 = vpop.f32.mrf.mxu2 }
  0xd5   : > { %1873 = vmatmul.msk.bf16.gmra.mxu1 %vm208_vm0, %v2191_v40  ;;  %2176 = vmatmul.msk.bf16.gmra.mxu0 %vm208_vm0, %v2267_v41  ;;  %v816_v48 = vadd.f32 %v746_v26, %v482_v45 }
  0xd8   : > { %2075 = vmatmul.msk.bf16.gmra.mxu3 %vm208_vm0, %v2248_v44  ;;  %1976 = vmatmul.msk.bf16.gmra.mxu2 %vm208_vm0, %v2231_v47 }
  0xda   : > { %v483_v52 = vpop.f32.mrf.mxu1  ;;  %v1334_v53 = vpop.f32.mrf.mxu0 }
  0xdb   : > { %v1039_v49 = vpop.f32.mrf.mxu3  ;;  %v484_v55 = vadd.f32 %v483_v52, %v2522_v0  ;;  %v756_v56 = vpop.f32.mrf.mxu2 }
  0xdc   : > { %v1109_v50 = vadd.f32 %v1039_v49, %v816_v48  ;;  %v2269_v48 = vld [vmem:[%s2469_s14 + $0x50] sm:$0xff] }
  0xdd   : > { %v817_v59 = vadd.f32 %v748_v33, %v484_v55 }
  0xde   : > { %v1402_v54 = vadd.f32 %v1332_v43, %v1109_v50 }
  0xe0   : > { %v1434_v57 = vadd.f32 %v2608_v51, %v1402_v54 }
  0xe2   : > { %v1462_v58 = vmax.f32 %v1434_v57, 0.0  ;;  %v486_v8 = vpop.f32.mrf.mxu1  ;;  %v1337_v10 = vpop.f32.mrf.mxu0 }
  0xe3   : > { %v1041_v61 = vpop.f32.mrf.mxu3  ;;  %v487_v20 = vadd.f32 %v486_v8, %v2532_v6  ;;  %v758_v0 = vpop.f32.mrf.mxu2 }
  0xe4   : > { %1491 = vst.msk [vmem:[#allocation2] sm:$0xff] %vm1490_vm1, %v1462_v58  ;;  %v1110_v5 = vadd.f32 %v1041_v61, %v817_v59 }
  0xe5   : > { %1874 = vmatmul.msk.bf16.gmra.mxu1 %vm208_vm0, %v2192_v62  ;;  %2177 = vmatmul.msk.bf16.gmra.mxu0 %vm208_vm0, %v2268_v4  ;;  %v818_v29 = vadd.f32 %v751_v38, %v487_v20  ;;  %v2193_v38 = vld [vmem:[%s2464_s10 + $0x50] sm:$0xff] }
  0xe6   : > { %v1403_v17 = vadd.f32 %v1334_v53, %v1110_v5  ;;  %v2250_v53 = vld [vmem:[%s2474_s16 + $0x50] sm:$0xff] }
  0xe8   : > { %v1435_v26 = vadd.f32 %v2608_v51, %v1403_v17  ;;  %2076 = vmatmul.msk.bf16.gmra.mxu3 %vm208_vm0, %v2249_v16  ;;  %1977 = vmatmul.msk.bf16.gmra.mxu2 %vm208_vm0, %v2232_v22 }
  0xea   : > { %v1463_v28 = vmax.f32 %v1435_v26, 0.0  ;;  %v488_v33 = vpop.f32.mrf.mxu1  ;;  %v1339_v34 = vpop.f32.mrf.mxu0 }
  0xeb   : > { %v1044_v32 = vpop.f32.mrf.mxu3  ;;  %v489_v41 = vadd.f32 %v488_v33, %v2546_v12  ;;  %v761_v42 = vpop.f32.mrf.mxu2  ;;  %v2233_v12 = vld [vmem:[%s2443_s26 + $0x60] sm:$0xff]  ;;  %v2270_v33 = vld [vmem:[%s2469_s14 + $0x58] sm:$0xff] }
  0xec   : > { %1492 = vst.msk [vmem:[#allocation2 + $0x8] sm:$0xff] %vm1490_vm1, %v1463_v28  ;;  %v1111_v6 = vadd.f32 %v1044_v32, %v818_v29  ;;  %v1519_v61 = vld [vmem:[#allocation2] sm:$0xff]  ;;  %v2194_v28 = vld [vmem:[%s2464_s10 + $0x58] sm:$0xff] }
  0xed   : > { %v819_v45 = vadd.f32 %v753_v46, %v489_v41 }
  0xee   : > { %v1404_v40 = vadd.f32 %v1337_v10, %v1111_v6 }
  0xf0   : > { %v1436_v43 = vadd.f32 %v2608_v51, %v1404_v40 }
  0xf2   : > { %v1464_v44 = vmax.f32 %v1436_v43, 0.0  ;;  %v491_v50 = vpop.f32.mrf.mxu1  ;;  %v1342_v52 = vpop.f32.mrf.mxu0  ;;  %v2251_v43 = vld [vmem:[%s2474_s16 + $0x58] sm:$0xff] }
  0xf3   : > { %v1046_v47 = vpop.f32.mrf.mxu3  ;;  %v492_v55 = vadd.f32 %v491_v50, %v2556_v18  ;;  %v2631_v57 = vpop.f32.mrf.mxu2  ;;  %v1520_v29 = vld [vmem:[#allocation2 + $0x8] sm:$0x3f] }
  0xf4   : > { %1493 = vst.msk [vmem:[#allocation2 + $0x10] sm:$0xff] %vm1490_vm1, %v1464_v44  ;;  %v1112_v49 = vadd.f32 %v1046_v47, %v819_v45  ;;  %v2234_v47 = vld [vmem:[%s2443_s26 + $0x68] sm:$0xff] }
  0xf5   : > { %1875 = vmatmul.msk.bf16.gmra.mxu1 %vm208_vm0, %v2193_v38  ;;  %2178 = vmatmul.msk.bf16.gmra.mxu0 %vm208_vm0, %v2269_v48  ;;  %v820_v59 = vadd.f32 %v756_v56, %v492_v55 }
  0xf6   : > { %v1405_v54 = vadd.f32 %v1339_v34, %v1112_v49 }
  0xf8   : > { %v1437_v46 = vadd.f32 %v2608_v51, %v1405_v54  ;;  %2077 = vmatmul.msk.bf16.gmra.mxu3 %vm208_vm0, %v2250_v53  ;;  %1978 = vmatmul.msk.bf16.gmra.mxu2 %vm208_vm0, %v2233_v12 }
  0xfa   : > { %v1465_v58 = vmax.f32 %v1437_v46, 0.0  ;;  %v493_v8 = vpop.f32.mrf.mxu1  ;;  %v1344_v10 = vpop.f32.mrf.mxu0 }
  0xfb   : > { %v1521_v62 = vld [vmem:[#allocation2 + $0x10] sm:$0xff]  ;;  %v1049_v4 = vpop.f32.mrf.mxu3  ;;  %v494_v17 = vadd.f32 %v493_v8, %v2570_v24  ;;  %v2642_v56 = vpop.f32.mrf.mxu2 }
  0xfc   : > { %v1523_v18 = vmax.f32 %v1519_v61, %v1521_v62  ;;  %1494 = vst.msk [vmem:[#allocation2 + $0x18] sm:$0xff] %vm1490_vm1, %v1465_v58  ;;  %v1113_v5 = vadd.f32 %v1049_v4, %v820_v59  ;;  %v1536_v61 = vld [vmem:[#allocation4] sm:$0xf] }
  0xfd   : > { %v821_v26 = vadd.f32 %v758_v0, %v494_v17 }
  0xfe   : > { %1525 = vst.msk [vmem:[#allocation3] sm:$0xff] %vm1490_vm1, %v1523_v18  ;;  %v1406_v16 = vadd.f32 %v1342_v52, %v1113_v5 }
 0x100   : > { %v1438_v20 = vadd.f32 %v2608_v51, %v1406_v16  ;;  %v2271_v16 = vld [vmem:[%s2469_s14 + $0x60] sm:$0xff] }
 0x102   : > { %v1466_v22 = vmax.f32 %v1438_v20, 0.0  ;;  %v496_v41 = vpop.f32.mrf.mxu1  ;;  %v1347_v24 = vpop.f32.mrf.mxu0 }
 0x103   : > { %v1522_v32 = vld [vmem:[#allocation2 + $0x18] sm:$0x3f]  ;;  %v1051_v6 = vpop.f32.mrf.mxu3  ;;  %v497_v45 = vadd.f32 %v496_v41, %v2578_v30  ;;  %v2651_v0 = vpop.f32.mrf.mxu2 }
 0x104   : > { %v1524_v34 = vmax.f32 %v1520_v29, %v1522_v32  ;;  %1495 = vst.msk [vmem:[#allocation2 + $0x20] sm:$0xff] %vm1490_vm1, %v1466_v22  ;;  %v1114_v40 = vadd.f32 %v1051_v6, %v821_v26  ;;  %v2252_v26 = vld [vmem:[%s2474_s16 + $0x60] sm:$0xff] }
 0x105   : > { %1876 = vmatmul.msk.bf16.gmra.mxu1 %vm208_vm0, %v2194_v28  ;;  %2179 = vmatmul.msk.bf16.gmra.mxu0 %vm208_vm0, %v2270_v33  ;;  %v822_v49 = vadd.f32 %v761_v42, %v497_v45  ;;  %v1645_v32 = vld [vmem:[%s2679_s23] sm:$0xf] }
 0x106   : > { %1527 = vst.msk [vmem:[#allocation3 + $0x8] sm:$0x3f] %vm1526_vm2, %v1524_v34  ;;  %v1407_v44 = vadd.f32 %v1344_v10, %v1114_v40  ;;  %v2195_v10 = vld [vmem:[%s2464_s10 + $0x60] sm:$0xff] }
 0x108   : > { %v1439_v38 = vadd.f32 %v2608_v51, %v1407_v44  ;;  %2078 = vmatmul.msk.bf16.gmra.mxu3 %vm208_vm0, %v2251_v43  ;;  %1979 = vmatmul.msk.bf16.gmra.mxu2 %vm208_vm0, %v2234_v47 }
 0x10a   : > { %v1467_v48 = vmax.f32 %v1439_v38, 0.0  ;;  %v498_v52 = vpop.f32.mrf.mxu1  ;;  %v1349_v53 = vpop.f32.mrf.mxu0 }
 0x10b   : > { %v1054_v50 = vpop.f32.mrf.mxu3  ;;  %v499_v58 = vadd.f32 %v498_v52, %v2590_v36  ;;  %v2661_v42 = vpop.f32.mrf.mxu2 }
 0x10c   : > { %1496 = vst.msk [vmem:[#allocation2 + $0x28] sm:$0xff] %vm1490_vm1, %v1467_v48  ;;  %v1115_v30 = vadd.f32 %v1054_v50, %v822_v49 }
 0x10d   : > { %v1528_v54 = vld [vmem:[#allocation3] ss:$2 sm:$0x7f]  ;;  %v1530_v55 = vld [vmem:[#allocation3 + $0x1] ss:$2 sm:$0x7f]  ;;  %v823_v8 = vadd.f32 %v2631_v57, %v499_v58 }
 0x10e   : > { %v1531_v12 = vmax.f32 %v1528_v54, %v1530_v55  ;;  %v1408_v46 = vadd.f32 %v1347_v24, %v1115_v30  ;;  %v1539_v24 = vld [vmem:[#allocation2 + $0x20] sm:$0xff]  ;;  %v2196_v54 = vld [vmem:[%s2464_s10 + $0x68] sm:$0xff] }
 0x10f   : > { %v2272_v55 = vld [vmem:[%s2469_s14 + $0x68] sm:$0xff] }
 0x110   : > { %v1532_v62 = vpack.c.bf16 %v1531_v12, %v1531_v12  ;;  %v1440_v4 = vadd.f32 %v2608_v51, %v1408_v46 }
 0x112   : > { %v1537_v18 = vsel %vm2663_vm5, %v1532_v62, %v1536_v61  ;;  %v1468_v5 = vmax.f32 %v1440_v4, 0.0  ;;  %v501_v20 = vpop.f32.mrf.mxu1  ;;  %v1352_v22 = vpop.f32.mrf.mxu0  ;;  %v2253_v4 = vld [vmem:[%s2474_s16 + $0x68] sm:$0xff] }
 0x113   : > { %1538 = vst [vmem:[#allocation4] sm:$0xf] %v1537_v18  ;;  %v1056_v36 = vpop.f32.mrf.mxu3  ;;  %v502_v57 = vadd.f32 %v501_v20, %v2512_v60  ;;  %v773_v29 = vpop.f32.mrf.mxu2  ;;  %v1540_v12 = vld [vmem:[#allocation2 + $0x28] sm:$0x3f] }
 0x114   : > { %1497 = vst.msk [vmem:[#allocation2 + $0x30] sm:$0xff] %vm1490_vm1, %v1468_v5  ;;  %v1116_v17 = vadd.f32 %v1056_v36, %v823_v8 }
 0x115   : > { %1877 = vmatmul.msk.bf16.gmra.mxu1 %vm208_vm0, %v2195_v10  ;;  %2180 = vmatmul.msk.bf16.gmra.mxu0 %vm208_vm0, %v2271_v16  ;;  %v824_v40 = vadd.f32 %v2642_v56, %v502_v57 }
 0x116   : > { %v1409_v28 = vadd.f32 %v1349_v53, %v1116_v17 }
 0x118   : > { %v1441_v6 = vadd.f32 %v2608_v51, %v1409_v28  ;;  %2079 = vmatmul.msk.bf16.gmra.mxu3 %vm208_vm0, %v2252_v26 }
 0x11a   : > { %v1635_v33 = vld [vmem:[#allocation4] sm:$0xf]  ;;  %v1469_v34 = vmax.f32 %v1441_v6, 0.0  ;;  %v503_v47 = vpop.f32.mrf.mxu1  ;;  %v1354_v38 = vpop.f32.mrf.mxu0 }
 0x11b   : > { %v1646_v41 = vsel %vm2663_vm5, %v1635_v33, %v1645_v32  ;;  %v1541_v43 = vld [vmem:[#allocation2 + $0x30] sm:$0xff]  ;;  %v1059_v60 = vpop.f32.mrf.mxu3  ;;  %v504_v56 = vadd.f32 %v503_v47, %v2524_v1  ;;  %v776_v49 = vpop.f32.mrf.mxu2 }
 0x11c   : > { %1647 = vst [vmem:[%s2679_s23] sm:$0xf] %v1646_v41  ;;  %v1543_v44 = vmax.f32 %v1539_v24, %v1541_v43  ;;  %v1117_v45 = vadd.f32 %v1059_v60, %v824_v40  ;;  %v1552_v33 = vld [vmem:[#allocation4 + $0x4] sm:$0xf] }
 0x11d   : > { %1498 = vst.msk [vmem:[#allocation2 + $0x38] sm:$0xff] %vm1490_vm1, %v1469_v34  ;;  %v825_v52 = vadd.f32 %v2651_v0, %v504_v56 }
 0x11e   : > { %1545 = vst.msk [vmem:[#allocation3] sm:$0xff] %vm1490_vm1, %v1543_v44  ;;  %v1410_v48 = vadd.f32 %v1352_v22, %v1117_v45 }
 0x120   : > { %v1442_v50 = vadd.f32 %v2608_v51, %v1410_v48  ;;  %v1648_v48 = vld [vmem:[%s2679_s23 + $0x4] sm:$0xf] }
 0x122   : > { %v1470_v30 = vmax.f32 %v1442_v50, 0.0  ;;  %v506_v61 = vpop.f32.mrf.mxu1  ;;  %v1357_v62 = vpop.f32.mrf.mxu0 }
 0x123   : > { %v1061_v53 = vpop.f32.mrf.mxu3  ;;  %v507_v1 = vadd.f32 %v506_v61, %v2534_v7  ;;  %v778_v8 = vpop.f32.mrf.mxu2 }
 0x124   : > { %v1542_v46 = vld [vmem:[#allocation2 + $0x38] sm:$0x3f]  ;;  %1499 = vst.msk [vmem:[#allocation2 + $0x40] sm:$0xff] %vm1490_vm1, %v1470_v30  ;;  %v1118_v58 = vadd.f32 %v1061_v53, %v825_v52 }
 0x125   : > { %v1544_v18 = vmax.f32 %v1540_v12, %v1542_v46  ;;  %1878 = vmatmul.msk.bf16.gmra.mxu1 %vm208_vm0, %v2196_v54  ;;  %2181 = vmatmul.msk.bf16.gmra.mxu0 %vm208_vm0, %v2272_v55  ;;  %v826_v10 = vadd.f32 %v2661_v42, %v507_v1 }
 0x126   : > { %v1411_v5 = vadd.f32 %v1354_v38, %v1118_v58 }
 0x127   : > { %1546 = vst.msk [vmem:[#allocation3 + $0x8] sm:$0x3f] %vm1526_vm2, %v1544_v18 }
 0x128   : > { %v1443_v0 = vadd.f32 %v2608_v51, %v1411_v5  ;;  %2080 = vmatmul.msk.bf16.gmra.mxu3 %vm208_vm0, %v2253_v4 }
 0x12a   : > { %v1471_v36 = vmax.f32 %v1443_v0, 0.0  ;;  %v508_v20 = vpop.f32.mrf.mxu1  ;;  %v1359_v7 = vpop.f32.mrf.mxu0 }
 0x12b   : > { %v1064_v16 = vpop.f32.mrf.mxu3  ;;  %v509_v57 = vadd.f32 %v508_v20, %v2548_v13  ;;  %v781_v6 = vpop.f32.mrf.mxu2  ;;  %v1555_v54 = vld [vmem:[#allocation2 + $0x40] sm:$0xff] }
 0x12c   : > { %1500 = vst.msk [vmem:[#allocation2 + $0x48] sm:$0xff] %vm1490_vm1, %v1471_v36  ;;  %v1119_v17 = vadd.f32 %v1064_v16, %v826_v10 }
 0x12d   : > { %v827_v42 = vadd.f32 %v773_v29, %v509_v57 }
 0x12e   : > { %v1547_v22 = vld [vmem:[#allocation3] ss:$2 sm:$0x7f]  ;;  %v1548_v26 = vld [vmem:[#allocation3 + $0x1] ss:$2 sm:$0x7f]  ;;  %v1412_v28 = vadd.f32 %v1357_v62, %v1119_v17 }
 0x12f   : > { %v1549_v32 = vmax.f32 %v1547_v22, %v1548_v26 }
 0x130   : > { %v1444_v34 = vadd.f32 %v2608_v51, %v1412_v28 }
 0x131   : > { %v1550_v40 = vpack.c.bf16 %v1549_v32, %v1549_v32 }
 0x132   : > { %v1472_v41 = vmax.f32 %v1444_v34, 0.0  ;;  %v511_v44 = vpop.f32.mrf.mxu1  ;;  %v1362_v45 = vpop.f32.mrf.mxu0 }
 0x133   : > { %v1553_v24 = vsel %vm2663_vm5, %v1550_v40, %v1552_v33  ;;  %v1066_v43 = vpop.f32.mrf.mxu3  ;;  %v512_v47 = vadd.f32 %v511_v44, %v2558_v19  ;;  %v783_v56 = vpop.f32.mrf.mxu2  ;;  %v1556_v5 = vld [vmem:[#allocation2 + $0x48] sm:$0x3f] }
 0x134   : > { %1554 = vst [vmem:[#allocation4 + $0x4] sm:$0xf] %v1553_v24  ;;  %v1120_v60 = vadd.f32 %v1066_v43, %v827_v42 }
 0x135   : > { %1501 = vst.msk [vmem:[#allocation2 + $0x50] sm:$0xff] %vm1490_vm1, %v1472_v41  ;;  %v828_v29 = vadd.f32 %v776_v49, %v512_v47 }
 0x136   : > { %v1413_v13 = vadd.f32 %v1359_v7, %v1120_v60  ;;  %v1568_v60 = vld [vmem:[#allocation4 + $0x8] sm:$0xf] }
 0x138   : > { %v1445_v38 = vadd.f32 %v2608_v51, %v1413_v13 }
 0x13a   : > { %v1473_v50 = vmax.f32 %v1445_v38, 0.0  ;;  %v513_v46 = vpop.f32.mrf.mxu1  ;;  %v1364_v58 = vpop.f32.mrf.mxu0 }
 0x13b   : > { %v1636_v30 = vld [vmem:[#allocation4 + $0x4] sm:$0xf]  ;;  %v1069_v52 = vpop.f32.mrf.mxu3  ;;  %v514_v62 = vadd.f32 %v513_v46, %v2572_v25  ;;  %v786_v36 = vpop.f32.mrf.mxu2 }
 0x13c   : > { %v1649_v53 = vsel %vm2663_vm5, %v1636_v30, %v1648_v48  ;;  %v1557_v55 = vld [vmem:[#allocation2 + $0x50] sm:$0xff]  ;;  %1502 = vst.msk [vmem:[#allocation2 + $0x58] sm:$0xff] %vm1490_vm1, %v1473_v50  ;;  %v1121_v12 = vadd.f32 %v1069_v52, %v828_v29  ;;  %v1651_v52 = vld [vmem:[%s2679_s23 + $0x8] sm:$0xf] }
 0x13d   : > { %1650 = vst [vmem:[%s2679_s23 + $0x4] sm:$0xf] %v1649_v53  ;;  %v1559_v19 = vmax.f32 %v1555_v54, %v1557_v55  ;;  %v829_v18 = vadd.f32 %v778_v8, %v514_v62 }
 0x13e   : > { %v1414_v61 = vadd.f32 %v1362_v45, %v1121_v12 }
 0x13f   : > { %1561 = vst.msk [vmem:[#allocation3] sm:$0xff] %vm1490_vm1, %v1559_v19 }
 0x140   : > { %v1446_v49 = vadd.f32 %v2608_v51, %v1414_v61 }
 0x142   : > { %v1474_v4 = vmax.f32 %v1446_v49, 0.0  ;;  %v516_v17 = vpop.f32.mrf.mxu1  ;;  %v1367_v20 = vpop.f32.mrf.mxu0 }
 0x143   : > { %v1558_v1 = vld [vmem:[#allocation2 + $0x58] sm:$0x3f]  ;;  %v1071_v0 = vpop.f32.mrf.mxu3  ;;  %v517_v25 = vadd.f32 %v516_v17, %v2580_v31  ;;  %v788_v41 = vpop.f32.mrf.mxu2 }
 0x144   : > { %v1560_v10 = vmax.f32 %v1556_v5, %v1558_v1  ;;  %1503 = vst.msk [vmem:[#allocation2 + $0x60] sm:$0xff] %vm1490_vm1, %v1474_v4  ;;  %v1122_v16 = vadd.f32 %v1071_v0, %v829_v18 }
 0x145   : > { %v830_v28 = vadd.f32 %v781_v6, %v517_v25 }
 0x146   : > { %1562 = vst.msk [vmem:[#allocation3 + $0x8] sm:$0x3f] %vm1526_vm2, %v1560_v10  ;;  %v1415_v7 = vadd.f32 %v1364_v58, %v1122_v16 }
 0x148   : > { %v1447_v22 = vadd.f32 %v2608_v51, %v1415_v7 }
 0x14a   : > { %v1475_v26 = vmax.f32 %v1447_v22, 0.0  ;;  %v518_v32 = vpop.f32.mrf.mxu1  ;;  %v1369_v33 = vpop.f32.mrf.mxu0 }
 0x14b   : > { %v1074_v8 = vpop.f32.mrf.mxu3  ;;  %v519_v43 = vadd.f32 %v518_v32, %v2592_v37  ;;  %v791_v30 = vpop.f32.mrf.mxu2  ;;  %v1571_v46 = vld [vmem:[#allocation2 + $0x60] sm:$0xff] }
 0x14c   : > { %1504 = vst.msk [vmem:[#allocation2 + $0x68] sm:$0xff] %vm1490_vm1, %v1475_v26  ;;  %v1123_v57 = vadd.f32 %v1074_v8, %v830_v28 }
 0x14d   : > { %v1563_v34 = vld [vmem:[#allocation3] ss:$2 sm:$0x7f]  ;;  %v1564_v40 = vld [vmem:[#allocation3 + $0x1] ss:$2 sm:$0x7f]  ;;  %v831_v13 = vadd.f32 %v783_v56, %v519_v43 }
 0x14e   : > { %v1565_v42 = vmax.f32 %v1563_v34, %v1564_v40  ;;  %v1416_v24 = vadd.f32 %v1367_v20, %v1123_v57 }
 0x150   : > { %v1566_v31 = vpack.c.bf16 %v1565_v42, %v1565_v42  ;;  %v1448_v44 = vadd.f32 %v2608_v51, %v1416_v24 }
 0x152   : > { %v1569_v6 = vsel %vm2663_vm5, %v1566_v31, %v1568_v60  ;;  %v1476_v45 = vmax.f32 %v1448_v44, 0.0  ;;  %v521_v48 = vpop.f32.mrf.mxu1  ;;  %v1372_v50 = vpop.f32.mrf.mxu0 }
 0x153   : > { %1570 = vst [vmem:[#allocation4 + $0x8] sm:$0xf] %v1569_v6  ;;  %v1076_v47 = vpop.f32.mrf.mxu3  ;;  %v522_v37 = vadd.f32 %v521_v48, %v2526_v2  ;;  %v793_v1 = vpop.f32.mrf.mxu2  ;;  %v1572_v16 = vld [vmem:[#allocation2 + $0x68] sm:$0x3f] }
 0x154   : > { %1505 = vst.msk [vmem:[#allocation2 + $0x70] sm:$0xff] %vm1490_vm1, %v1476_v45  ;;  %v1124_v38 = vadd.f32 %v1076_v47, %v831_v13 }
 0x155   : > { %v832_v12 = vadd.f32 %v786_v36, %v522_v37 }
 0x156   : > { %v1417_v29 = vadd.f32 %v1369_v33, %v1124_v38 }
 0x158   : > { %v1449_v53 = vadd.f32 %v2608_v51, %v1417_v29 }
 0x15a   : > { %v1637_v54 = vld [vmem:[#allocation4 + $0x8] sm:$0xf]  ;;  %v1477_v55 = vmax.f32 %v1449_v53, 0.0  ;;  %v523_v49 = vpop.f32.mrf.mxu1  ;;  %v1374_v4 = vpop.f32.mrf.mxu0  ;;  %v1654_v53 = vld [vmem:[%s2679_s23 + $0xc] sm:$0xf] }
 0x15b   : > { %v1652_v56 = vsel %vm2663_vm5, %v1637_v54, %v1651_v52  ;;  %v1573_v58 = vld [vmem:[#allocation2 + $0x70] sm:$0xff]  ;;  %v1079_v19 = vpop.f32.mrf.mxu3  ;;  %v524_v18 = vadd.f32 %v523_v49, %v2537_v9  ;;  %v796_v33 = vpop.f32.mrf.mxu2 }
 0x15c   : > { %1653 = vst [vmem:[%s2679_s23 + $0x8] sm:$0xf] %v1652_v56  ;;  %v1575_v61 = vmax.f32 %v1571_v46, %v1573_v58  ;;  %v1125_v62 = vadd.f32 %v1079_v19, %v832_v12 }
 0x15d   : > { %1506 = vst.msk [vmem:[#allocation2 + $0x78] sm:$0xff] %vm1490_vm1, %v1477_v55  ;;  %v833_v36 = vadd.f32 %v788_v41, %v524_v18 }
 0x15e   : > { %1577 = vst.msk [vmem:[#allocation3] sm:$0xff] %vm1490_vm1, %v1575_v61  ;;  %v1418_v2 = vadd.f32 %v1372_v50, %v1125_v62 }
 0x160   : > { %v1450_v5 = vadd.f32 %v2608_v51, %v1418_v2 }
 0x162   : > { %v1478_v0 = vmax.f32 %v1450_v5, 0.0  ;;  %v526_v7 = vpop.f32.mrf.mxu1  ;;  %v1377_v25 = vpop.f32.mrf.mxu0 }
 0x163   : > { %v1081_v10 = vpop.f32.mrf.mxu3  ;;  %v527_v28 = vadd.f32 %v526_v7, %v2550_v14  ;;  %v1584_v14 = vld [vmem:[#allocation4 + $0xc] sm:$0xf]  ;;  %v798_v37 = vpop.f32.mrf.mxu2 }
 0x164   : > { %v1574_v17 = vld [vmem:[#allocation2 + $0x78] sm:$0x3f]  ;;  %1507 = vst.msk [vmem:[#allocation2 + $0x80] sm:$0xff] %vm1490_vm1, %v1478_v0  ;;  %v1126_v20 = vadd.f32 %v1081_v10, %v833_v36 }
 0x165   : > { %v1576_v22 = vmax.f32 %v1572_v16, %v1574_v17  ;;  %v834_v57 = vadd.f32 %v791_v30, %v527_v28 }
 0x166   : > { %v1419_v26 = vadd.f32 %v1374_v4, %v1126_v20 }
 0x167   : > { %1578 = vst.msk [vmem:[#allocation3 + $0x8] sm:$0x3f] %vm1526_vm2, %v1576_v22 }
 0x168   : > { %v1451_v9 = vadd.f32 %v2608_v51, %v1419_v26 }
 0x16a   : > { %v1479_v8 = vmax.f32 %v1451_v9, 0.0  ;;  %v528_v40 = vpop.f32.mrf.mxu1  ;;  %v1379_v41 = vpop.f32.mrf.mxu0 }
 0x16b   : > { %v1084_v32 = vpop.f32.mrf.mxu3  ;;  %v529_v60 = vadd.f32 %v528_v40, %v2561_v21  ;;  %v1587_v58 = vld [vmem:[#allocation2 + $0x80] sm:$0xff]  ;;  %v801_v18 = vpop.f32.mrf.mxu2 }
 0x16c   : > { %1508 = vst.msk [vmem:[#allocation2 + $0x88] sm:$0xff] %vm1490_vm1, %v1479_v8  ;;  %v1127_v34 = vadd.f32 %v1084_v32, %v834_v57 }
 0x16d   : > { %v835_v13 = vadd.f32 %v793_v1, %v529_v60  ;;  %v1600_v60 = vld [vmem:[#allocation4 + $0x10] sm:$0xf] }
 0x16e   : > { %v1579_v42 = vld [vmem:[#allocation3] ss:$2 sm:$0x7f]  ;;  %v1580_v24 = vld [vmem:[#allocation3 + $0x1] ss:$2 sm:$0x7f]  ;;  %v1420_v43 = vadd.f32 %v1377_v25, %v1127_v34 }
 0x16f   : > { %v1581_v31 = vmax.f32 %v1579_v42, %v1580_v24 }
 0x170   : > { %v1452_v44 = vadd.f32 %v2608_v51, %v1420_v43 }
 0x171   : > { %v1582_v6 = vpack.c.bf16 %v1581_v31, %v1581_v31 }
 0x172   : > { %v1480_v45 = vmax.f32 %v1452_v44, 0.0  ;;  %v531_v50 = vpop.f32.mrf.mxu1  ;;  %v1382_v29 = vpop.f32.mrf.mxu0 }
 0x173   : > { %v1585_v47 = vsel %vm2663_vm5, %v1582_v6, %v1584_v14  ;;  %v1086_v38 = vpop.f32.mrf.mxu3  ;;  %v532_v30 = vadd.f32 %v531_v50, %v2519_v63  ;;  %v1588_v36 = vld [vmem:[#allocation2 + $0x88] sm:$0x3f]  ;;  %v803_v28 = vpop.f32.mrf.mxu2 }
 0x174   : > { %1586 = vst [vmem:[#allocation4 + $0xc] sm:$0xf] %v1585_v47  ;;  %v1128_v48 = vadd.f32 %v1086_v38, %v835_v13 }
 0x175   : > { %1509 = vst.msk [vmem:[#allocation2 + $0x90] sm:$0xff] %vm1490_vm1, %v1480_v45  ;;  %v836_v55 = vadd.f32 %v796_v33, %v532_v30 }
 0x176   : > { %v1421_v21 = vadd.f32 %v1379_v41, %v1128_v48 }
 0x178   : > { %v1453_v52 = vadd.f32 %v2608_v51, %v1421_v21 }
 0x17a   : > { %v1481_v54 = vmax.f32 %v1453_v52, 0.0  ;;  %v533_v62 = vpop.f32.mrf.mxu1  ;;  %v1384_v49 = vpop.f32.mrf.mxu0 }
 0x17b   : > { %v1638_v12 = vld [vmem:[#allocation4 + $0xc] sm:$0xf]  ;;  %v1089_v56 = vpop.f32.mrf.mxu3  ;;  %v534_v2 = vadd.f32 %v533_v62, %v2528_v3  ;;  %v806_v45 = vpop.f32.mrf.mxu2 }
 0x17c   : > { %v1655_v46 = vsel %vm2663_vm5, %v1638_v12, %v1654_v53  ;;  %v1589_v19 = vld [vmem:[#allocation2 + $0x90] sm:$0xff]  ;;  %1510 = vst.msk [vmem:[#allocation2 + $0x98] sm:$0xff] %vm1490_vm1, %v1481_v54  ;;  %v1129_v61 = vadd.f32 %v1089_v56, %v836_v55 }
 0x17d   : > { %1656 = vst [vmem:[%s2679_s23 + $0xc] sm:$0xf] %v1655_v46  ;;  %v1591_v4 = vmax.f32 %v1587_v58, %v1589_v19  ;;  %v837_v0 = vadd.f32 %v798_v37, %v534_v2 }
 0x17e   : > { %v1422_v63 = vadd.f32 %v1382_v29, %v1129_v61  ;;  %v1657_v29 = vld [vmem:[%s2679_s23 + $0x10] sm:$0xf] }
 0x17f   : > { %1593 = vst.msk [vmem:[#allocation3] sm:$0xff] %vm1490_vm1, %v1591_v4 }
 0x180   : > { %v1454_v5 = vadd.f32 %v2608_v51, %v1422_v63 }
 0x182   : > { %v1482_v1 = vmax.f32 %v1454_v5, 0.0  ;;  %v536_v7 = vpop.f32.mrf.mxu1  ;;  %v1387_v25 = vpop.f32.mrf.mxu0 }
 0x183   : > { %v1590_v10 = vld [vmem:[#allocation2 + $0x98] sm:$0x3f]  ;;  %v1091_v16 = vpop.f32.mrf.mxu3  ;;  %v537_v3 = vadd.f32 %v536_v7, %v2543_v11 }
 0x184   : > { %v1592_v17 = vmax.f32 %v1588_v36, %v1590_v10  ;;  %1511 = vst.msk [vmem:[#allocation2 + $0xa0] sm:$0xff] %vm1490_vm1, %v1482_v1  ;;  %v1130_v20 = vadd.f32 %v1091_v16, %v837_v0 }
 0x185   : > { %v838_v8 = vadd.f32 %v801_v18, %v537_v3 }
 0x186   : > { %1594 = vst.msk [vmem:[#allocation3 + $0x8] sm:$0x3f] %vm1526_vm2, %v1592_v17  ;;  %v1423_v22 = vadd.f32 %v1384_v49, %v1130_v20 }
 0x188   : > { %v1455_v26 = vadd.f32 %v2608_v51, %v1423_v22 }
 0x18a   : > { %v1483_v9 = vmax.f32 %v1455_v26, 0.0  ;;  %v538_v33 = vpop.f32.mrf.mxu1  ;;  %v1389_v41 = vpop.f32.mrf.mxu0 }
 0x18b   : > { %v1094_v57 = vpop.f32.mrf.mxu3  ;;  %v539_v43 = vadd.f32 %v538_v33, %v2552_v15  ;;  %v1603_v54 = vld [vmem:[#allocation2 + $0xa0] sm:$0xff] }
 0x18c   : > { %1512 = vst.msk [vmem:[#allocation2 + $0xa8] sm:$0xff] %vm1490_vm1, %v1483_v9  ;;  %v1131_v32 = vadd.f32 %v1094_v57, %v838_v8 }
 0x18d   : > { %v1595_v34 = vld [vmem:[#allocation3] ss:$2 sm:$0x7f]  ;;  %v1596_v40 = vld [vmem:[#allocation3 + $0x1] ss:$2 sm:$0x7f]  ;;  %v839_v6 = vadd.f32 %v803_v28, %v539_v43 }
 0x18e   : > { %v1597_v42 = vmax.f32 %v1595_v34, %v1596_v40  ;;  %v1424_v24 = vadd.f32 %v1387_v25, %v1131_v32  ;;  %v1616_v32 = vld [vmem:[#allocation4 + $0x14] sm:$0xf] }
 0x190   : > { %v1598_v11 = vpack.c.bf16 %v1597_v42, %v1597_v42  ;;  %v1456_v31 = vadd.f32 %v2608_v51, %v1424_v24 }
 0x192   : > { %v1601_v14 = vsel %vm2663_vm5, %v1598_v11, %v1600_v60  ;;  %v1484_v44 = vmax.f32 %v1456_v31, 0.0  ;;  %v541_v38 = vpop.f32.mrf.mxu1  ;;  %v1392_v50 = vpop.f32.mrf.mxu0 }
 0x193   : > { %1602 = vst [vmem:[#allocation4 + $0x10] sm:$0xf] %v1601_v14  ;;  %v1096_v13 = vpop.f32.mrf.mxu3  ;;  %v542_v15 = vadd.f32 %v541_v38, %v2567_v23  ;;  %v808_v23 = vpop.f32.mrf.mxu2  ;;  %v1604_v18 = vld [vmem:[#allocation2 + $0xa8] sm:$0x3f]  ;;  %v1660_v14 = vld [vmem:[%s2679_s23 + $0x14] sm:$0xf] }
 0x194   : > { %1513 = vst.msk [vmem:[#allocation2 + $0xb0] sm:$0xff] %vm1490_vm1, %v1484_v44  ;;  %v1132_v47 = vadd.f32 %v1096_v13, %v839_v6 }
 0x195   : > { %v840_v52 = vadd.f32 %v806_v45, %v542_v15 }
 0x196   : > { %v1425_v48 = vadd.f32 %v1389_v41, %v1132_v47 }
 0x198   : > { %v1457_v37 = vadd.f32 %v2608_v51, %v1425_v48 }
 0x19a   : > { %v1639_v21 = vld [vmem:[#allocation4 + $0x10] sm:$0xf]  ;;  %v1485_v30 = vmax.f32 %v1457_v37, 0.0  ;;  %v543_v58 = vpop.f32.mrf.mxu1  ;;  %v1394_v49 = vpop.f32.mrf.mxu0 }
 0x19b   : > { %v1658_v53 = vsel %vm2663_vm5, %v1639_v21, %v1657_v29  ;;  %v1605_v55 = vld [vmem:[#allocation2 + $0xb0] sm:$0xff]  ;;  %v1099_v12 = vpop.f32.mrf.mxu3  ;;  %v544_v61 = vadd.f32 %v543_v58, %v2574_v27  ;;  %v811_v17 = vpop.f32.mrf.mxu2  ;;  %v1632_v21 = vld [vmem:[#allocation4 + $0x18] sm:$0xf] }
 0x19c   : > { %1659 = vst [vmem:[%s2679_s23 + $0x10] sm:$0xf] %v1658_v53  ;;  %v1607_v56 = vmax.f32 %v1603_v54, %v1605_v55  ;;  %v1133_v46 = vadd.f32 %v1099_v12, %v840_v52  ;;  %v1663_v53 = vld [vmem:[%s2679_s23 + $0x18] sm:$0xf] }
 0x19d   : > { %1514 = vst.msk [vmem:[#allocation2 + $0xb8] sm:$0xff] %vm1490_vm1, %v1485_v30  ;;  %v841_v63 = vadd.f32 %v808_v23, %v544_v61 }
 0x19e   : > { %1609 = vst.msk [vmem:[#allocation3] sm:$0xff] %vm1490_vm1, %v1607_v56  ;;  %v1426_v19 = vadd.f32 %v1392_v50, %v1133_v46 }
 0x1a0   : > { %v1458_v62 = vadd.f32 %v2608_v51, %v1426_v19 }
 0x1a2   : > { %v1486_v4 = vmax.f32 %v1458_v62, 0.0  ;;  %v546_v0 = vpop.f32.mrf.mxu1  ;;  %v1397_v25 = vpop.f32.mrf.mxu0 }
 0x1a3   : > { %v1101_v2 = vpop.f32.mrf.mxu3  ;;  %v547_v16 = vadd.f32 %v546_v0, %v2587_v35  ;;  %v813_v40 = vpop.f32.mrf.mxu2 }
 0x1a4   : > { %v1606_v5 = vld [vmem:[#allocation2 + $0xb8] sm:$0x3f]  ;;  %1515 = vst.msk [vmem:[#allocation2 + $0xc0] sm:$0xff] %vm1490_vm1, %v1486_v4  ;;  %v1134_v1 = vadd.f32 %v1101_v2, %v841_v63 }
 0x1a5   : > { %v1608_v36 = vmax.f32 %v1604_v18, %v1606_v5  ;;  %v842_v7 = vadd.f32 %v811_v17, %v547_v16 }
 0x1a6   : > { %v1427_v10 = vadd.f32 %v1394_v49, %v1134_v1 }
 0x1a7   : > { %1610 = vst.msk [vmem:[#allocation3 + $0x8] sm:$0x3f] %vm1526_vm2, %v1608_v36 }
 0x1a8   : > { %v1459_v27 = vadd.f32 %v2608_v51, %v1427_v10 }
 0x1aa   : > { %v1487_v20 = vmax.f32 %v1459_v27, 0.0  ;;  %v548_v26 = vpop.f32.mrf.mxu1  ;;  %v1399_v11 = vpop.f32.mrf.mxu0 }
 0x1ab   : > { %v1104_v22 = vpop.f32.mrf.mxu3  ;;  %v549_v57 = vadd.f32 %v548_v26, %v2594_v39  ;;  %v1619_v13 = vld [vmem:[#allocation2 + $0xc0] sm:$0xff] }
 0x1ac   : > { %1516 = vst.msk [vmem:[#allocation2 + $0xc8] sm:$0xff] %vm1490_vm1, %v1487_v20  ;;  %v1135_v3 = vadd.f32 %v1104_v22, %v842_v7 }
 0x1ad   : > { %v843_v42 = vadd.f32 %v813_v40, %v549_v57 }
 0x1ae   : > { %v1611_v28 = vld [vmem:[#allocation3] ss:$2 sm:$0x7f]  ;;  %v1612_v9 = vld [vmem:[#allocation3 + $0x1] ss:$2 sm:$0x7f]  ;;  %v1428_v8 = vadd.f32 %v1397_v25, %v1135_v3 }
 0x1af   : > { %v1613_v35 = vmax.f32 %v1611_v28, %v1612_v9 }
 0x1b0   : > { %v1460_v33 = vadd.f32 %v2608_v51, %v1428_v8 }
 0x1b1   : > { %v1614_v34 = vpack.c.bf16 %v1613_v35, %v1613_v35 }
 0x1b2   : > { %v1488_v41 = vmax.f32 %v1460_v33, 0.0 }
 0x1b3   : > { %v1617_v24 = vsel %vm2663_vm5, %v1614_v34, %v1616_v32  ;;  %v1106_v43 = vpop.f32.mrf.mxu3  ;;  %v1620_v48 = vld [vmem:[#allocation2 + $0xc8] sm:$0x3f] }
 0x1b4   : > { %1618 = vst [vmem:[#allocation4 + $0x14] sm:$0xf] %v1617_v24  ;;  %v1136_v60 = vadd.f32 %v1106_v43, %v843_v42 }
 0x1b5   : > { %1517 = vst.msk [vmem:[#allocation2 + $0xd0] sm:$0xff] %vm1490_vm1, %v1488_v41 }
 0x1b6   : > { %v1429_v39 = vadd.f32 %v1399_v11, %v1136_v60 }
 0x1b8   : > { %v1461_v31 = vadd.f32 %v2608_v51, %v1429_v39 }
 0x1ba   : > { %v1489_v44 = vmax.f32 %v1461_v31, 0.0 }
 0x1bb   : > { %v1640_v6 = vld [vmem:[#allocation4 + $0x14] sm:$0xf] }
 0x1bc   : > { %v1661_v45 = vsel %vm2663_vm5, %v1640_v6, %v1660_v14  ;;  %v1621_v47 = vld [vmem:[#allocation2 + $0xd0] sm:$0xff]  ;;  %1518 = vst.msk [vmem:[#allocation2 + $0xd8] sm:$0xff] %vm1490_vm1, %v1489_v44 }
 0x1bd   : > { %1662 = vst [vmem:[%s2679_s23 + $0x14] sm:$0xf] %v1661_v45  ;;  %v1623_v38 = vmax.f32 %v1619_v13, %v1621_v47 }
 0x1bf   : > { %1625 = vst.msk [vmem:[#allocation3] sm:$0xff] %vm1490_vm1, %v1623_v38 }
 0x1c3   : > { %v1622_v15 = vld [vmem:[#allocation2 + $0xd8] sm:$0x3f] }
 0x1c4   : > { %v1624_v50 = vmax.f32 %v1620_v48, %v1622_v15 }
 0x1c6   : > { %1626 = vst.msk [vmem:[#allocation3 + $0x8] sm:$0x3f] %vm1526_vm2, %v1624_v50 }
 0x1cd   : > { %v1627_v51 = vld [vmem:[#allocation3] ss:$2 sm:$0x7f]  ;;  %v1628_v29 = vld [vmem:[#allocation3 + $0x1] ss:$2 sm:$0x7f] }
 0x1ce   : > { %v1629_v37 = vmax.f32 %v1627_v51, %v1628_v29 }
 0x1d0   : > { %v1630_v30 = vpack.c.bf16 %v1629_v37, %v1629_v37 }
 0x1d2   : > { %v1633_v52 = vsel %vm2663_vm5, %v1630_v30, %v1632_v21 }
 0x1d3   : > { %1634 = vst [vmem:[#allocation4 + $0x18] sm:$0xf] %v1633_v52 }
 0x1d8   :  { %19 = sbr.rel (!%p17_p0) target bundleno = 1 (0x1), region = 56 }
 0x1da   : > { %v1641_v54 = vld [vmem:[#allocation4 + $0x18] sm:$0xf] }
 0x1db   : > { %v1664_v55 = vsel %vm2663_vm5, %v1641_v54, %v1663_v53 }
 0x1dc   : > { %1665 = vst [vmem:[%s2679_s23 + $0x18] sm:$0xf] %v1664_v55 }

// kernel: cnn_forward.5
= control target key start
LH: loop header
LB: loop body
LE: loop exit
PB: predicated region body
PF: predicated region fallthrough
CT: control target
= control target key end

     0   :  { %s1882_s0 = inlined_call_operand.vmem [shape: bf16[2,1568], index: 0, kind: input, shape index: {}]   ;;  %s1883_s1 = inlined_call_operand.vmem [shape: bf16[1568,128], index: 1, kind: input, shape index: {}]   ;;  %s1884_s2 = inlined_call_operand.vmem [shape: f32[1,128], index: 2, kind: input, shape index: {}]   ;;  %s1885_s3 = inlined_call_operand.hbm [shape: f32[2,128], index: 3, kind: output, shape index: {}]  }
   0x1   :  { %v1424_v0 = vld [vmem:[%s1883_s1 + $0x38] sm:$0xff]  ;;  %v1423_v4 = vld [vmem:[%s1883_s1 + $0x30] sm:$0xff]  ;;  %v1422_v8 = vld [vmem:[%s1883_s1 + $0x28] sm:$0xff] }
   0x2   :  { %v1440_v1 = vld [vmem:[%s1883_s1 + $0xb8] sm:$0xff]  ;;  %838 = vmatpush.bf16.msra.mxu0 %v1424_v0  ;;  %v1439_v5 = vld [vmem:[%s1883_s1 + $0xb0] sm:$0xff]  ;;  %v1438_v9 = vld [vmem:[%s1883_s1 + $0xa8] sm:$0xff] }
   0x3   :  { %v1432_v2 = vld [vmem:[%s1883_s1 + $0x78] sm:$0xff]  ;;  %864 = vmatpush.bf16.msra.mxu2 %v1440_v1  ;;  %v1431_v6 = vld [vmem:[%s1883_s1 + $0x70] sm:$0xff]  ;;  %v1430_v10 = vld [vmem:[%s1883_s1 + $0x68] sm:$0xff] }
   0x4   :  { %v1448_v3 = vld [vmem:[%s1883_s1 + $0xf8] sm:$0xff]  ;;  %851 = vmatpush.bf16.msra.mxu1 %v1432_v2  ;;  %v1447_v7 = vld [vmem:[%s1883_s1 + $0xf0] sm:$0xff]  ;;  %v1446_v11 = vld [vmem:[%s1883_s1 + $0xe8] sm:$0xff] }
   0x5   :  { %877 = vmatpush.bf16.msra.mxu3 %v1448_v3  ;;  %v1421_v12 = vld [vmem:[%s1883_s1 + $0x20] sm:$0xff]  ;;  %v1420_v16 = vld [vmem:[%s1883_s1 + $0x18] sm:$0xff]  ;;  %v1419_v21 = vld [vmem:[%s1883_s1 + $0x10] sm:$0xff] }
   0x6   :  { %839 = vmatpush.bf16.msra.mxu0 %v1423_v4  ;;  %v1437_v13 = vld [vmem:[%s1883_s1 + $0xa0] sm:$0xff]  ;;  %v1436_v17 = vld [vmem:[%s1883_s1 + $0x98] sm:$0xff]  ;;  %v1435_v22 = vld [vmem:[%s1883_s1 + $0x90] sm:$0xff] }
   0x7   :  { %865 = vmatpush.bf16.msra.mxu2 %v1439_v5  ;;  %v1429_v14 = vld [vmem:[%s1883_s1 + $0x60] sm:$0xff]  ;;  %v1428_v18 = vld [vmem:[%s1883_s1 + $0x58] sm:$0xff] }
   0x8   :  { %852 = vmatpush.bf16.msra.mxu1 %v1431_v6  ;;  %v1445_v15 = vld [vmem:[%s1883_s1 + $0xe0] sm:$0xff]  ;;  %v1444_v19 = vld [vmem:[%s1883_s1 + $0xd8] sm:$0xff] }
   0x9   :  { %878 = vmatpush.bf16.msra.mxu3 %v1447_v7  ;;  %v16_v20 = vld [vmem:[%s1882_s0] sm:$0xff] }
   0xa   :  { %840 = vmatpush.bf16.msra.mxu0 %v1422_v8  ;;  %219 = vst [vmem:[#allocation1] ss:$9 sm:$0xff] %v16_v20 }
   0xb   :  { %866 = vmatpush.bf16.msra.mxu2 %v1438_v9 }
   0xc   :  { %853 = vmatpush.bf16.msra.mxu1 %v1430_v10 }
   0xd   :  { %879 = vmatpush.bf16.msra.mxu3 %v1446_v11 }
   0xe   :  { %841 = vmatpush.bf16.msra.mxu0 %v1421_v12 }
   0xf   :  { %867 = vmatpush.bf16.msra.mxu2 %v1437_v13 }
  0x10   :  { %854 = vmatpush.bf16.msra.mxu1 %v1429_v14 }
  0x11   :  { %880 = vmatpush.bf16.msra.mxu3 %v1445_v15 }
  0x12   :  { %842 = vmatpush.bf16.msra.mxu0 %v1420_v16 }
  0x13   :  { %868 = vmatpush.bf16.msra.mxu2 %v1436_v17 }
  0x14   :  { %8 = vsyncpa [#allocation3], 0  ;;  %855 = vmatpush.bf16.msra.mxu1 %v1428_v18  ;;  %v1427_v23 = vld [vmem:[%s1883_s1 + $0x50] sm:$0xff]  ;;  %v1418_v25 = vld [vmem:[%s1883_s1 + $0x8] sm:$0xff]  ;;  %vm835_vm0 = vcmask 261120   ;;  %s1015_s23 = sshll.u32 %s1885_s3, 4  ;;  %s1016_s23 = int_to_ptr.hbm [resolvable:$true] %s1015_s23 }
  0x15   :  { %881 = vmatpush.bf16.msra.mxu3 %v1444_v19  ;;  %v1443_v24 = vld [vmem:[%s1883_s1 + $0xd0] sm:$0xff]  ;;  %v1434_v26 = vld [vmem:[%s1883_s1 + $0x88] sm:$0xff]  ;;  %v1417_v29 = vld [vmem:[%s1883_s1] sm:$0xff] }
  0x16   :  { %843 = vmatpush.bf16.msra.mxu0 %v1419_v21  ;;  %v1426_v27 = vld [vmem:[%s1883_s1 + $0x48] sm:$0xff]  ;;  %v1433_v30 = vld [vmem:[%s1883_s1 + $0x80] sm:$0xff]  ;;  %v1456_v31 = vld [vmem:[%s1883_s1 + $0x138] sm:$0xff] }
  0x17   :  { %869 = vmatpush.bf16.msra.mxu2 %v1435_v22  ;;  %v1442_v28 = vld [vmem:[%s1883_s1 + $0xc8] sm:$0xff]  ;;  %v1472_v32 = vld [vmem:[%s1883_s1 + $0x1b8] sm:$0xff]  ;;  %v1425_v33 = vld [vmem:[%s1883_s1 + $0x40] sm:$0xff] }
  0x18   :  { %856 = vmatpush.bf16.msra.mxu1 %v1427_v23  ;;  %v1441_v34 = vld [vmem:[%s1883_s1 + $0xc0] sm:$0xff]  ;;  %v1464_v35 = vld [vmem:[%s1883_s1 + $0x178] sm:$0xff]  ;;  %v1455_v37 = vld [vmem:[%s1883_s1 + $0x130] sm:$0xff] }
  0x19   :  { %882 = vmatpush.bf16.msra.mxu3 %v1443_v24  ;;  %v1480_v36 = vld [vmem:[%s1883_s1 + $0x1f8] sm:$0xff]  ;;  %v1471_v38 = vld [vmem:[%s1883_s1 + $0x1b0] sm:$0xff]  ;;  %v220_v40 = vld [vmem:[#allocation1] sm:$0xff] }
  0x1a   :  { %844 = vmatpush.bf16.msra.mxu0 %v1418_v25  ;;  %v222_v39 = vld [vmem:[#allocation1 + $0x12] sm:$0xff]  ;;  %v223_v43 = vld [vmem:[#allocation1 + $0x1b] sm:$0xff]  ;;  %v221_v44 = vld [vmem:[#allocation1 + $0x9] sm:$0xff] }
  0x1b   :  { %870 = vmatpush.bf16.msra.mxu2 %v1434_v26  ;;  %v1463_v41 = vld [vmem:[%s1883_s1 + $0x170] sm:$0xff]  ;;  %v1454_v45 = vld [vmem:[%s1883_s1 + $0x128] sm:$0xff]  ;;  %v1697_v49 = vld [vmem:[#allocation1 + $0x3f] sm:$0xff] }
  0x1c   :  { %857 = vmatpush.bf16.msra.mxu1 %v1426_v27  ;;  %v1479_v42 = vld [vmem:[%s1883_s1 + $0x1f0] sm:$0xff]  ;;  %v1470_v46 = vld [vmem:[%s1883_s1 + $0x1a8] sm:$0xff]  ;;  %v1453_v54 = vld [vmem:[%s1883_s1 + $0x120] sm:$0xff] }
  0x1d   :  { %883 = vmatpush.bf16.msra.mxu3 %v1442_v28  ;;  %v1693_v47 = vld [vmem:[#allocation1 + $0x36] sm:$0xff]  ;;  %v1695_v48 = vld [vmem:[#allocation1 + $0x24] sm:$0xff]  ;;  %v1702_v51 = vld [vmem:[#allocation1 + $0x2d] sm:$0xff] }
  0x1e   :  { %845 = vmatpush.bf16.msra.mxu0 %v1417_v29  ;;  %v17_v50 = vld [vmem:[%s1882_s0 + $0x8] sm:$0x1f]  ;;  %v1469_v55 = vld [vmem:[%s1883_s1 + $0x1a0] sm:$0xff]  ;;  %v1452_v58 = vld [vmem:[%s1883_s1 + $0x118] sm:$0xff] }
  0x1f   :  { %871 = vmatpush.bf16.msra.mxu2 %v1433_v30  ;;  %v1462_v52 = vld [vmem:[%s1883_s1 + $0x168] sm:$0xff]  ;;  %229 = vst [vmem:[#allocation1] ss:$9 sm:$0xff] %v17_v50  ;;  %v1461_v56 = vld [vmem:[%s1883_s1 + $0x160] sm:$0xff]  ;;  %v1468_v59 = vld [vmem:[%s1883_s1 + $0x198] sm:$0xff] }
  0x20   :  { %858 = vmatpush.bf16.msra.mxu1 %v1425_v33  ;;  %v1478_v53 = vld [vmem:[%s1883_s1 + $0x1e8] sm:$0xff]  ;;  %v1477_v57 = vld [vmem:[%s1883_s1 + $0x1e0] sm:$0xff]  ;;  %v1460_v60 = vld [vmem:[%s1883_s1 + $0x158] sm:$0xff] }
  0x21   :  { %884 = vmatpush.bf16.msra.mxu3 %v1441_v34  ;;  %846 = vmatmul.bf16.vlgmr.msra.gmra.mxu0 %v220_v40  ;;  %v1476_v61 = vld [vmem:[%s1883_s1 + $0x1d8] sm:$0xff]  ;;  %v1451_v62 = vld [vmem:[%s1883_s1 + $0x110] sm:$0xff]  ;;  %v1450_v2 = vld [vmem:[%s1883_s1 + $0x108] sm:$0xff] }
  0x22   :  { %890 = vmatpush.bf16.msrb.mxu0 %v1456_v31  ;;  %872 = vmatmul.bf16.vlgmr.msra.gmra.mxu2 %v222_v39  ;;  %v1467_v63 = vld [vmem:[%s1883_s1 + $0x190] sm:$0xff]  ;;  %v1466_v3 = vld [vmem:[%s1883_s1 + $0x188] sm:$0xff]  ;;  %v1449_v6 = vld [vmem:[%s1883_s1 + $0x100] sm:$0xff] }
  0x23   :  { %916 = vmatpush.bf16.msrb.mxu2 %v1472_v32  ;;  %859 = vmatmul.bf16.vlgmr.msra.gmra.mxu1 %v221_v44  ;;  %v1459_v0 = vld [vmem:[%s1883_s1 + $0x150] sm:$0xff]  ;;  %v1458_v4 = vld [vmem:[%s1883_s1 + $0x148] sm:$0xff]  ;;  %v1465_v7 = vld [vmem:[%s1883_s1 + $0x180] sm:$0xff] }
  0x24   :  { %903 = vmatpush.bf16.msrb.mxu1 %v1464_v35  ;;  %885 = vmatmul.bf16.vlgmr.msra.gmra.mxu3 %v223_v43  ;;  %v1475_v1 = vld [vmem:[%s1883_s1 + $0x1d0] sm:$0xff]  ;;  %v1474_v5 = vld [vmem:[%s1883_s1 + $0x1c8] sm:$0xff]  ;;  %v1488_v8 = vld [vmem:[%s1883_s1 + $0x238] sm:$0xff] }
  0x25   :  { %929 = vmatpush.bf16.msrb.mxu3 %v1480_v36  ;;  %v1504_v9 = vld [vmem:[%s1883_s1 + $0x2b8] sm:$0xff]  ;;  %v1457_v10 = vld [vmem:[%s1883_s1 + $0x140] sm:$0xff]  ;;  %v1487_v14 = vld [vmem:[%s1883_s1 + $0x230] sm:$0xff] }
  0x26   :  { %891 = vmatpush.bf16.msrb.mxu0 %v1455_v37  ;;  %v1473_v11 = vld [vmem:[%s1883_s1 + $0x1c0] sm:$0xff]  ;;  %v1496_v12 = vld [vmem:[%s1883_s1 + $0x278] sm:$0xff]  ;;  %v1503_v15 = vld [vmem:[%s1883_s1 + $0x2b0] sm:$0xff] }
  0x27   :  { %917 = vmatpush.bf16.msrb.mxu2 %v1471_v38  ;;  %v1512_v13 = vld [vmem:[%s1883_s1 + $0x2f8] sm:$0xff]  ;;  %v1495_v16 = vld [vmem:[%s1883_s1 + $0x270] sm:$0xff]  ;;  %v1486_v18 = vld [vmem:[%s1883_s1 + $0x228] sm:$0xff] }
  0x28   :  { %904 = vmatpush.bf16.msrb.mxu1 %v1463_v41  ;;  %v1511_v17 = vld [vmem:[%s1883_s1 + $0x2f0] sm:$0xff]  ;;  %v1502_v19 = vld [vmem:[%s1883_s1 + $0x2a8] sm:$0xff]  ;;  %v1485_v22 = vld [vmem:[%s1883_s1 + $0x220] sm:$0xff] }
  0x29   :  { %930 = vmatpush.bf16.msrb.mxu3 %v1479_v42  ;;  %v1494_v20 = vld [vmem:[%s1883_s1 + $0x268] sm:$0xff]  ;;  %v1501_v23 = vld [vmem:[%s1883_s1 + $0x2a0] sm:$0xff]  ;;  %v1484_v26 = vld [vmem:[%s1883_s1 + $0x218] sm:$0xff] }
  0x2a   :  { %892 = vmatpush.bf16.msrb.mxu0 %v1454_v45  ;;  %v1510_v21 = vld [vmem:[%s1883_s1 + $0x2e8] sm:$0xff]  ;;  %v1493_v24 = vld [vmem:[%s1883_s1 + $0x260] sm:$0xff]  ;;  %v1500_v27 = vld [vmem:[%s1883_s1 + $0x298] sm:$0xff] }
  0x2b   :  { %918 = vmatpush.bf16.msrb.mxu2 %v1470_v46  ;;  %v1509_v25 = vld [vmem:[%s1883_s1 + $0x2e0] sm:$0xff]  ;;  %v1492_v28 = vld [vmem:[%s1883_s1 + $0x258] sm:$0xff]  ;;  %v1483_v30 = vld [vmem:[%s1883_s1 + $0x210] sm:$0xff] }
  0x2c   :  { %905 = vmatpush.bf16.msrb.mxu1 %v1462_v52  ;;  %v1508_v29 = vld [vmem:[%s1883_s1 + $0x2d8] sm:$0xff]  ;;  %v1499_v31 = vld [vmem:[%s1883_s1 + $0x290] sm:$0xff]  ;;  %v1482_v34 = vld [vmem:[%s1883_s1 + $0x208] sm:$0xff] }
  0x2d   :  { %931 = vmatpush.bf16.msrb.mxu3 %v1478_v53  ;;  %v1491_v32 = vld [vmem:[%s1883_s1 + $0x250] sm:$0xff]  ;;  %v1498_v35 = vld [vmem:[%s1883_s1 + $0x288] sm:$0xff]  ;;  %v1481_v38 = vld [vmem:[%s1883_s1 + $0x200] sm:$0xff] }
  0x2e   :  { %893 = vmatpush.bf16.msrb.mxu0 %v1453_v54  ;;  %v1507_v33 = vld [vmem:[%s1883_s1 + $0x2d0] sm:$0xff]  ;;  %v1490_v36 = vld [vmem:[%s1883_s1 + $0x248] sm:$0xff]  ;;  %v1497_v39 = vld [vmem:[%s1883_s1 + $0x280] sm:$0xff] }
  0x2f   :  { %919 = vmatpush.bf16.msrb.mxu2 %v1469_v55  ;;  %v1506_v37 = vld [vmem:[%s1883_s1 + $0x2c8] sm:$0xff]  ;;  %v1489_v41 = vld [vmem:[%s1883_s1 + $0x240] sm:$0xff]  ;;  %v232_v44 = vld [vmem:[#allocation1 + $0x12] sm:$0xff] }
  0x30   :  { %906 = vmatpush.bf16.msrb.mxu1 %v1461_v56  ;;  %v1514_v40 = vld [vmem:[%s1883_s1 + $0x308] sm:$0xff]  ;;  %v1505_v42 = vld [vmem:[%s1883_s1 + $0x2c0] sm:$0xff] }
  0x31   :  { %932 = vmatpush.bf16.msrb.mxu3 %v1477_v57  ;;  %v230_v43 = vld [vmem:[#allocation1] sm:$0xff]  ;;  %v231_v45 = vld [vmem:[#allocation1 + $0x9] sm:$0xff] }
  0x32   :  { %894 = vmatpush.bf16.msrb.mxu0 %v1452_v58  ;;  %v233_v46 = vld [vmem:[#allocation1 + $0x1b] sm:$0xff] }
  0x33   :  { %920 = vmatpush.bf16.msrb.mxu2 %v1468_v59  ;;  %v1516_v57 = vld [vmem:[%s1884_s2] ss:$0 sm:$0xff] }
  0x34   :  { %907 = vmatpush.bf16.msrb.mxu1 %v1460_v60 }
  0x35   :  { %933 = vmatpush.bf16.msrb.mxu3 %v1476_v61 }
  0x36   :  { %895 = vmatpush.bf16.msrb.mxu0 %v1451_v62 }
  0x37   :  { %921 = vmatpush.bf16.msrb.mxu2 %v1467_v63 }
  0x38   :  { %908 = vmatpush.bf16.msrb.mxu1 %v1459_v0 }
  0x39   :  { %934 = vmatpush.bf16.msrb.mxu3 %v1475_v1 }
  0x3a   :  { %896 = vmatpush.bf16.msrb.mxu0 %v1450_v2 }
  0x3b   :  { %922 = vmatpush.bf16.msrb.mxu2 %v1466_v3 }
  0x3c   :  { %909 = vmatpush.bf16.msrb.mxu1 %v1458_v4 }
  0x3d   :  { %935 = vmatpush.bf16.msrb.mxu3 %v1474_v5 }
  0x3e   :  { %897 = vmatpush.bf16.msrb.mxu0 %v1449_v6 }
  0x3f   :  { %923 = vmatpush.bf16.msrb.mxu2 %v1465_v7 }
  0x40   :  { %910 = vmatpush.bf16.msrb.mxu1 %v1457_v10 }
  0x41   :  { %936 = vmatpush.bf16.msrb.mxu3 %v1473_v11  ;;  %898 = vmatmul.bf16.vlgmr.msrb.gmra.mxu0 %v1695_v48  ;;  %v234_v48 = vld [vmem:[#allocation1 + $0x24] sm:$0xff] }
  0x42   :  { %942 = vmatpush.bf16.msra.mxu0 %v1488_v8  ;;  %924 = vmatmul.bf16.vlgmr.msrb.gmra.mxu2 %v1693_v47  ;;  %v1513_v47 = vld [vmem:[%s1883_s1 + $0x300] sm:$0xff]  ;;  %s1543_s1 = smov [#allocation2]  }
  0x43   :  { %968 = vmatpush.bf16.msra.mxu2 %v1504_v9  ;;  %911 = vmatmul.bf16.vlgmr.msrb.gmra.mxu1 %v1702_v51  ;;  %s1013_s2 = sshll.u32 %s1543_s1, 4  ;;  %s1014_s2 = int_to_ptr.vmem [resolvable:$true] %s1013_s2 }
  0x44   :  { %955 = vmatpush.bf16.msra.mxu1 %v1496_v12  ;;  %937 = vmatmul.bf16.vlgmr.msrb.gmra.mxu3 %v1697_v49 }
  0x45   :  { %981 = vmatpush.bf16.msra.mxu3 %v1512_v13 }
  0x46   :  { %943 = vmatpush.bf16.msra.mxu0 %v1487_v14 }
  0x47   :  { %969 = vmatpush.bf16.msra.mxu2 %v1503_v15 }
  0x48   :  { %956 = vmatpush.bf16.msra.mxu1 %v1495_v16 }
  0x49   :  { %982 = vmatpush.bf16.msra.mxu3 %v1511_v17 }
  0x4a   :  { %944 = vmatpush.bf16.msra.mxu0 %v1486_v18 }
  0x4b   :  { %970 = vmatpush.bf16.msra.mxu2 %v1502_v19 }
  0x4c   :  { %957 = vmatpush.bf16.msra.mxu1 %v1494_v20 }
  0x4d   :  { %983 = vmatpush.bf16.msra.mxu3 %v1510_v21 }
  0x4e   :  { %945 = vmatpush.bf16.msra.mxu0 %v1485_v22 }
  0x4f   :  { %971 = vmatpush.bf16.msra.mxu2 %v1501_v23 }
  0x50   :  { %958 = vmatpush.bf16.msra.mxu1 %v1493_v24 }
  0x51   :  { %984 = vmatpush.bf16.msra.mxu3 %v1509_v25 }
  0x52   :  { %946 = vmatpush.bf16.msra.mxu0 %v1484_v26 }
  0x53   :  { %972 = vmatpush.bf16.msra.mxu2 %v1500_v27 }
  0x54   :  { %959 = vmatpush.bf16.msra.mxu1 %v1492_v28 }
  0x55   :  { %985 = vmatpush.bf16.msra.mxu3 %v1508_v29 }
  0x56   :  { %947 = vmatpush.bf16.msra.mxu0 %v1483_v30 }
  0x57   :  { %973 = vmatpush.bf16.msra.mxu2 %v1499_v31 }
  0x58   :  { %960 = vmatpush.bf16.msra.mxu1 %v1491_v32 }
  0x59   :  { %986 = vmatpush.bf16.msra.mxu3 %v1507_v33 }
  0x5a   :  { %948 = vmatpush.bf16.msra.mxu0 %v1482_v34 }
  0x5b   :  { %974 = vmatpush.bf16.msra.mxu2 %v1498_v35 }
  0x5c   :  { %961 = vmatpush.bf16.msra.mxu1 %v1490_v36 }
  0x5d   :  { %987 = vmatpush.bf16.msra.mxu3 %v1506_v37 }
  0x5e   :  { %949 = vmatpush.bf16.msra.mxu0 %v1481_v38 }
  0x5f   :  { %975 = vmatpush.bf16.msra.mxu2 %v1497_v39 }
  0x60   :  { %962 = vmatpush.bf16.msra.mxu1 %v1489_v41 }
  0x61   :  { %988 = vmatpush.bf16.msra.mxu3 %v1505_v42  ;;  %950 = vmatmul.bf16.vlgmr.msra.gmra.mxu0 %v230_v43 }
  0x62   :  { %1000 = vmatpush.bf16.msrb.mxu0 %v1514_v40  ;;  %976 = vmatmul.bf16.vlgmr.msra.gmra.mxu2 %v232_v44 }
  0x63   :  { %963 = vmatmul.bf16.vlgmr.msra.gmra.mxu1 %v231_v45 }
  0x64   :  { %989 = vmatmul.bf16.vlgmr.msra.gmra.mxu3 %v233_v46 }
  0x66   :  { %1001 = vmatpush.bf16.msrb.mxu0 %v1513_v47 }
  0x71   :  { %1416 = vmatmul.msk.bf16.vlgmr.msrb.gmra.mxu0 %vm835_vm0, %v234_v48 }
  0x9e   :  { %v847_v49 = vpop.f32.mrf.mxu0 }
  0x9f   :  { %v848_v60 = vadd.f32 %v1516_v57, %v847_v49 }
  0xa0   :  { %v860_v50 = vpop.f32.mrf.mxu1 }
  0xa1   :  { %v861_v62 = vadd.f32 %v860_v50, %v848_v60 }
  0xa5   :  { %v873_v51 = vpop.f32.mrf.mxu2 }
  0xa6   :  { %v849_v53 = vpop.f32.mrf.mxu0  ;;  %v874_v2 = vadd.f32 %v873_v51, %v861_v62 }
  0xa7   :  { %v886_v52 = vpop.f32.mrf.mxu3 }
  0xa8   :  { %v862_v54 = vpop.f32.mrf.mxu1  ;;  %v887_v4 = vadd.f32 %v886_v52, %v874_v2 }
  0xad   :  { %v875_v55 = vpop.f32.mrf.mxu2 }
  0xaf   :  { %v888_v56 = vpop.f32.mrf.mxu3 }
  0xbe   :  { %v899_v58 = vpop.f32.mrf.mxu0 }
  0xbf   :  { %v900_v6 = vadd.f32 %v899_v58, %v887_v4 }
  0xc0   :  { %v912_v59 = vpop.f32.mrf.mxu1 }
  0xc1   :  { %v913_v7 = vadd.f32 %v912_v59, %v900_v6 }
  0xc5   :  { %v925_v61 = vpop.f32.mrf.mxu2 }
  0xc6   :  { %v901_v0 = vpop.f32.mrf.mxu0  ;;  %v926_v8 = vadd.f32 %v925_v61, %v913_v7 }
  0xc7   :  { %v938_v63 = vpop.f32.mrf.mxu3 }
  0xc8   :  { %v914_v1 = vpop.f32.mrf.mxu1  ;;  %v939_v11 = vadd.f32 %v938_v63, %v926_v8 }
  0xcd   :  { %v927_v3 = vpop.f32.mrf.mxu2 }
  0xcf   :  { %v940_v5 = vpop.f32.mrf.mxu3 }
  0xde   :  { %v951_v9 = vpop.f32.mrf.mxu0 }
  0xdf   :  { %v952_v12 = vadd.f32 %v951_v9, %v939_v11 }
  0xe0   :  { %v964_v10 = vpop.f32.mrf.mxu1 }
  0xe1   :  { %v965_v16 = vadd.f32 %v964_v10, %v952_v12 }
  0xe5   :  { %v977_v13 = vpop.f32.mrf.mxu2 }
  0xe6   :  { %v953_v14 = vpop.f32.mrf.mxu0  ;;  %v978_v18 = vadd.f32 %v977_v13, %v965_v16 }
  0xe7   :  { %v990_v15 = vpop.f32.mrf.mxu3 }
  0xe8   :  { %v966_v17 = vpop.f32.mrf.mxu1  ;;  %v991_v20 = vadd.f32 %v990_v15, %v978_v18 }
  0xed   :  { %v979_v19 = vpop.f32.mrf.mxu2 }
  0xee   :  { %v1003_v22 = vpop.f32.mrf.mxu0 }
  0xef   :  { %v992_v21 = vpop.f32.mrf.mxu3  ;;  %v1004_v23 = vadd.f32 %v1003_v22, %v991_v20 }
  0xf1   :  { %1007 = vst [vmem:[#allocation2] sm:$0x3] %v1004_v23 }
  0xf2   :  { %1018 = dma.vmem_to_hbm [thread:$0]  %s1014_s2, 32, %s1016_s23, [#allocation3]  }
  0xf6   :  { %v1005_v24 = vpop.f32.mrf.mxu0 }
  0xf7   :  { %1541 = dma.done.wait [#allocation3], 32  }
  0xf8   :  { %1542 = vsyncadd [#allocation3], 4294967264 }
  0xf9   :  { %1023 = vsyncpa [#allocation3], 1 }

</bundles_post_ra>
